<compile_context>
chip_gen: v6e
topology: v6e:2x2x1
jax: 0.10.0
libtpu: 0.0.40
codegen_flags: <defaults>
</compile_context>

<pallas_src>
from functools import partial

import jax
import jax.numpy as jnp
from jax.experimental import pallas as pl
from jax.experimental.pallas import tpu as pltpu

BN_EPS = 1e-5
MATMUL_DTYPE = jnp.bfloat16          # full-rate on the MXU of v5e/v6e/v7x
VMEM_LIMIT = 32 * 1024 * 1024        # explicit scoped-VMEM budget (safe on v7x's 64 MiB)


def _elu(x):
    # ELU(alpha=1); clamp the exp argument so the discarded branch stays finite.
    return jnp.where(x > 0, x, jnp.exp(jnp.minimum(x, 0.0)) - 1.0)


def _round_up(x, m):
    return ((x + m - 1) // m) * m


def _pad_last(a, n):
    pad = n - a.shape[-1]
    if pad == 0:
        return a
    cfg = [(0, 0)] * (a.ndim - 1) + [(0, pad)]
    return jnp.pad(a, cfg)


# --------------------------------------------------------------------------- #
# Stats pass: per-image partial channel sums (lane-dense (H, W*C) layout).     #
# Optionally applies ELU(BN1(.)) first (used for BN2 stats, non-downsample).   #
# --------------------------------------------------------------------------- #
def _stats_kernel(x_ref, s_ref, t_ref, sum_ref, sq_ref, *, apply_act):
    v = x_ref[0]                                   # (H, W*C), lane-dense minor dim
    if apply_act:
        v = _elu(v * s_ref[...] + t_ref[...])
    sum_ref[0] = jnp.sum(v, axis=0, keepdims=True)
    sq_ref[0] = jnp.sum(v * v, axis=0, keepdims=True)


def _channel_partial_stats(x, scale=None, shift=None, apply_act=False):
    """Per-channel sum / sum-of-squares over (B, H, W) of an NHWC tensor."""
    B, H, W, C = x.shape
    WC = W * C
    xf = x.reshape(B, H, WC)                       # free reshape (row-major)
    if apply_act:
        s_wc = jnp.tile(scale.reshape(1, C), (1, W))
        t_wc = jnp.tile(shift.reshape(1, C), (1, W))
    else:
        s_wc = jnp.ones((1, WC), jnp.float32)
        t_wc = jnp.zeros((1, WC), jnp.float32)
    full = lambda a: pl.BlockSpec(a.shape, lambda b: (0,) * a.ndim)
    ps, pq = pl.pallas_call(
        partial(_stats_kernel, apply_act=apply_act),
        grid=(B,),
        in_specs=[pl.BlockSpec((1, H, WC), lambda b: (b, 0, 0)),
                  full(s_wc), full(t_wc)],
        out_specs=[pl.BlockSpec((1, 1, WC), lambda b: (b, 0, 0)),
                   pl.BlockSpec((1, 1, WC), lambda b: (b, 0, 0))],
        out_shape=[jax.ShapeDtypeStruct((B, 1, WC), jnp.float32),
                   jax.ShapeDtypeStruct((B, 1, WC), jnp.float32)],
        compiler_params=pltpu.CompilerParams(
            dimension_semantics=("parallel",), vmem_limit_bytes=VMEM_LIMIT),
    )(xf, s_wc, t_wc)
    # tiny wrapper-side reduce of the per-image / per-W partials
    s = ps.reshape(B, W, C).sum(axis=(0, 1))
    q = pq.reshape(B, W, C).sum(axis=(0, 1))
    return s, q


# --------------------------------------------------------------------------- #
# Downsample pass: BN1+ELU -> conv_down1 (3x3/s2) and conv_down2 (1x1/s2).     #
# BN2 pre-bias statistics come out as per-image partials (parallel grid).      #
# --------------------------------------------------------------------------- #
def _down_kernel(xph_ref, mask_ref, s1_ref, t1_ref, wd1_ref, bd1_ref,
                 wd2_ref, bd2_ref, h1_ref, xds_ref, sum2_ref, sq2_ref):
    x_ph = xph_ref[0]                              # (4, H2+1, W2+1, Cin)  f32
    _, h2p1, w2p1, cin = x_ph.shape
    H2, W2 = h2p1 - 1, w2p1 - 1
    M2 = H2 * W2
    cp = wd1_ref.shape[-1]

    # BN1 (folded scale/shift) + ELU; mask re-zeros the conv "same" padding.
    xn = (_elu(x_ph * s1_ref[...] + t1_ref[...]) * mask_ref[...]).astype(MATMUL_DTYPE)

    # conv_down1 (3x3, stride 2) as 9 accumulated MXU dots (no concat / scratch).
    # tap offset d in {0,1,2}  ->  (stride-2 phase parity, block shift)
    sel = ((0, 0), (1, 0), (0, 1))
    acc = jnp.zeros((M2, cp), jnp.float32)
    for dy in range(3):
        p, a = sel[dy]
        for dx in range(3):
            q, c = sel[dx]
            tap = xn[2 * p + q, a:a + H2, c:c + W2, :].reshape(M2, cin)
            acc = acc + jnp.dot(tap, wd1_ref[3 * dy + dx],
                                preferred_element_type=jnp.float32)

    # BN2 batch statistics on the PRE-BIAS accumulator (better conditioning of
    # E[x^2]-E[x]^2); per-image partials, reduced in the wrapper.
    sum2_ref[0] = jnp.sum(acc, axis=0, keepdims=True)
    sq2_ref[0] = jnp.sum(acc * acc, axis=0, keepdims=True)

    # lane-dense flat store of the conv output (bias fused in the epilogue)
    h1_ref[0] = (acc + bd1_ref[...]).astype(h1_ref.dtype)

    # conv_down2 (1x1, stride 2) on the RAW input: stride-2 phase (1, 1).
    xr = x_ph[3, 0:H2, 0:W2, :].reshape(M2, cin).astype(MATMUL_DTYPE)
    xds_ref[0] = jnp.dot(xr, wd2_ref[...],
                         preferred_element_type=jnp.float32) + bd2_ref[...]


def _down_call(xph, mask_d, s1, t1, wd1, bd1, wd2, bd2, H2, W2, CP):
    B = xph.shape[0]
    M2 = H2 * W2
    full = lambda a: pl.BlockSpec(a.shape, lambda b: (0,) * a.ndim)
    return pl.pallas_call(
        _down_kernel,
        grid=(B,),
        in_specs=[pl.BlockSpec((1,) + xph.shape[1:], lambda b: (b, 0, 0, 0, 0)),
                  full(mask_d), full(s1), full(t1),
                  full(wd1), full(bd1), full(wd2), full(bd2)],
        out_specs=[pl.BlockSpec((1, M2, CP), lambda b: (b, 0, 0)),
                   pl.BlockSpec((1, M2, CP), lambda b: (b, 0, 0)),
                   pl.BlockSpec((1, 1, CP), lambda b: (b, 0, 0)),
                   pl.BlockSpec((1, 1, CP), lambda b: (b, 0, 0))],
        out_shape=[jax.ShapeDtypeStruct((B, M2, CP), MATMUL_DTYPE),   # h1 (bf16)
                   jax.ShapeDtypeStruct((B, M2, CP), jnp.float32),    # residual proj
                   jax.ShapeDtypeStruct((B, 1, CP), jnp.float32),     # BN2 sum
                   jax.ShapeDtypeStruct((B, 1, CP), jnp.float32)],    # BN2 sumsq
        compiler_params=pltpu.CompilerParams(
            dimension_semantics=("parallel",), vmem_limit_bytes=VMEM_LIMIT),
    )(xph, mask_d, s1, t1, wd1, bd1, wd2, bd2)


# --------------------------------------------------------------------------- #
# Final pass: out = conv2(BN2(f)) + residual  (3x3, stride 1, pad 1).          #
# pre_act=True (non-downsample) recomputes f = ELU(BN1(x)) in the kernel.      #
# --------------------------------------------------------------------------- #
def _final_kernel(*refs, pre_act):
    if pre_act:
        (fp_ref, mask_ref, s1_ref, t1_ref, s2_ref, t2_ref,
         w_ref, b_ref, res_ref, out_ref) = refs
    else:
        (fp_ref, mask_ref, s2_ref, t2_ref,
         w_ref, b_ref, res_ref, out_ref) = refs

    f = fp_ref[0].astype(jnp.float32)              # (Hv+2, Wv+2, Cm)
    hp2, wp2, cm = f.shape
    Hv, Wv = hp2 - 2, wp2 - 2
    Mv = Hv * Wv
    cp = w_ref.shape[-1]

    if pre_act:                                    # non-downsample: a = ELU(BN1(x))
        f = _elu(f * s1_ref[...] + t1_ref[...])
    # BN2 (folded scale/shift); mask re-zeros the 1-pixel conv padding ring.
    g = ((f * s2_ref[...] + t2_ref[...]) * mask_ref[...]).astype(MATMUL_DTYPE)

    # conv2 as 9 accumulated MXU dots, f32 accumulation.
    acc = jnp.zeros((Mv, cp), jnp.float32)
    for dy in range(3):
        for dx in range(3):
            tap = g[dy:dy + Hv, dx:dx + Wv, :].reshape(Mv, cm)
            acc = acc + jnp.dot(tap, w_ref[3 * dy + dx],
                                preferred_element_type=jnp.float32)

    # bias + residual fused in the epilogue; flat lane-dense store.
    out_ref[0] = acc + b_ref[...] + res_ref[0]


def _final_call(fp, mask_f, bn1, s2, t2, w_taps, b2, res, pre_act):
    B, Hp2, Wp2, Cm = fp.shape
    Hv, Wv = Hp2 - 2, Wp2 - 2
    Mv = Hv * Wv
    CP = w_taps.shape[-1]
    full = lambda a: pl.BlockSpec(a.shape, lambda b: (0,) * a.ndim)
    extra = list(bn1) if pre_act else []
    ins = [fp, mask_f] + extra + [s2, t2, w_taps, b2, res]
    in_specs = ([pl.BlockSpec((1, Hp2, Wp2, Cm), lambda b: (b, 0, 0, 0)),
                 full(mask_f)]
                + [full(a) for a in extra]
                + [full(s2), full(t2), full(w_taps), full(b2),
                   pl.BlockSpec((1, Mv, CP), lambda b: (b, 0, 0))])
    return pl.pallas_call(
        partial(_final_kernel, pre_act=pre_act),
        grid=(B,),
        in_specs=in_specs,
        out_specs=pl.BlockSpec((1, Mv, CP), lambda b: (b, 0, 0)),
        out_shape=jax.ShapeDtypeStruct((B, Mv, CP), jnp.float32),
        compiler_params=pltpu.CompilerParams(
            dimension_semantics=("parallel",), vmem_limit_bytes=VMEM_LIMIT),
    )(*ins)


# --------------------------------------------------------------------------- #
# Glue helpers (tiny per-channel math and static masks).                       #
# --------------------------------------------------------------------------- #
def _fold_bn(s, q, n, gamma, beta, mean_shift=None):
    e1 = s / n
    var = jnp.maximum(q / n - e1 * e1, 0.0)        # biased variance (training mode)
    mean = e1 if mean_shift is None else e1 + mean_shift
    scale = gamma * jax.lax.rsqrt(var + BN_EPS)
    shift = beta - mean * scale
    return scale.reshape(1, -1), shift.reshape(1, -1)


def _phase_pad_mask(H, W, H2, W2):
    """1 inside the original HxW image, 0 on conv padding — stride-2 phase layout."""
    p = jnp.arange(2)[:, None]
    row = 2 * jnp.arange(H2 + 1)[None, :] + p
    col = 2 * jnp.arange(W2 + 1)[None, :] + p
    rm = (row >= 1) & (row <= H)
    cm = (col >= 1) & (col <= W)
    m = rm[:, None, :, None] & cm[None, :, None, :]        # (p, q, hb, wb)
    return m.astype(jnp.float32).reshape(4, H2 + 1, W2 + 1, 1)


def _pad_mask(Hv, Wv):
    """1 inside, 0 on the 1-pixel zero-padding ring of an (Hv+2, Wv+2) map."""
    rm = (jnp.arange(Hv + 2) >= 1) & (jnp.arange(Hv + 2) <= Hv)
    cm = (jnp.arange(Wv + 2) >= 1) & (jnp.arange(Wv + 2) <= Wv)
    return (rm[:, None] & cm[None, :]).astype(jnp.float32)[:, :, None]


@partial(jax.jit, static_argnames=("downsample",))
def residual_block_forward(x_nchw, params, downsample):
    """ResidualBlock forward (BatchNorm uses training-mode batch statistics)."""
    x = jnp.transpose(x_nchw, (0, 2, 3, 1)).astype(jnp.float32)    # NCHW -> NHWC
    B, H, W, Cin = x.shape

    # BN1 batch statistics -> per-channel scale/shift
    s1, q1 = _channel_partial_stats(x)
    scale1, shift1 = _fold_bn(s1, q1, B * H * W, params["gamma1"], params["beta1"])

    if downsample:
        Cout = params["w_down1"].shape[-1]
        CP = _round_up(Cout, 128)
        H2, W2 = (H - 1) // 2 + 1, (W - 1) // 2 + 1
        M2 = H2 * W2

        # One-time XLA layout plumbing: "same" pad + split into the 4 stride-2
        # phases so the kernel reads contiguous tap slices (no strided VMEM loads).
        Hp, Wp = 2 * (H2 + 1), 2 * (W2 + 1)
        xp = jnp.pad(x, ((0, 0), (1, Hp - H - 1), (1, Wp - W - 1), (0, 0)))
        xph = xp.reshape(B, H2 + 1, 2, W2 + 1, 2, Cin)
        xph = xph.transpose(0, 2, 4, 1, 3, 5).reshape(B, 4, H2 + 1, W2 + 1, Cin)
        mask_d = _phase_pad_mask(H, W, H2, W2)

        # Weights: per-tap (9, Cin, CP) layout, N padded to 128 lanes, pre-cast bf16.
        wd1 = _pad_last(params["w_down1"].reshape(9, Cin, Cout), CP).astype(MATMUL_DTYPE)
        wd2 = _pad_last(params["w_down2"], CP).astype(MATMUL_DTYPE)
        bd1 = _pad_last(params["b_down1"].reshape(1, Cout), CP)
        bd2 = _pad_last(params["b_down2"].reshape(1, Cout), CP)

        h1, xds, s2p, q2p = _down_call(xph, mask_d, scale1, shift1,
                                       wd1, bd1, wd2, bd2, H2, W2, CP)

        # BN2 from pre-bias partial sums (mean shifted by the conv bias).
        s2 = s2p.sum(axis=(0, 1))
        q2 = q2p.sum(axis=(0, 1))
        gamma2 = _pad_last(params["gamma2"], CP)
        beta2 = _pad_last(params["beta2"], CP)
        scale2, shift2 = _fold_bn(s2, q2, B * M2, gamma2, beta2, mean_shift=bd1[0])

        # cheap bf16 pad of the already lane-dense h1 for the 3x3 conv window
        fp = jnp.pad(h1.reshape(B, H2, W2, CP), ((0, 0), (1, 1), (1, 1), (0, 0)))
        mask_f = _pad_mask(H2, W2)
        w2 = jnp.pad(params["w2"].reshape(9, Cout, Cout),
                     ((0, 0), (0, CP - Cout), (0, CP - Cout))).astype(MATMUL_DTYPE)
        b2 = _pad_last(params["b2"].reshape(1, Cout), CP)

        out = _final_call(fp, mask_f, None, scale2, shift2, w2, b2, xds,
                          pre_act=False)
        Hv, Wv = H2, W2
    else:
        # residual add requires in_channels == out_channels in this branch
        Cout = params["w2"].shape[-1]
        CP = _round_up(Cout, 128)

        # BN2 statistics over a = ELU(BN1(x)) WITHOUT materializing a in HBM.
        s2, q2 = _channel_partial_stats(x, scale1, shift1, apply_act=True)
        scale2, shift2 = _fold_bn(s2, q2, B * H * W,
                                  params["gamma2"], params["beta2"])

        xp = jnp.pad(x, ((0, 0), (1, 1), (1, 1), (0, 0)))
        mask_f = _pad_mask(H, W)
        w2 = _pad_last(params["w2"].reshape(9, Cin, Cout), CP).astype(MATMUL_DTYPE)
        b2 = _pad_last(params["b2"].reshape(1, Cout), CP)
        res = _pad_last(x.reshape(B, H * W, Cin), CP)        # lane-dense residual

        out = _final_call(xp, mask_f, (scale1, shift1), scale2, shift2, w2, b2,
                          res, pre_act=True)
        Hv, Wv = H, W

    out = out[:, :, :Cout].reshape(B, Hv, Wv, Cout)
    return jnp.transpose(out, (0, 3, 1, 2))                  # NHWC -> NCHW


def init_params(key, in_channels, out_channels, downsample):
    """Deterministic synthetic parameters ((kh,kw,Cin,Cout) conv weights)."""
    ks = jax.random.split(key, 6)
    s = 0.1
    p = {
        # BatchNorm2d fresh init: gamma=1, beta=0 (running stats / momentum do not
        # affect the training-mode forward output).
        "gamma1": jnp.ones((in_channels,), jnp.float32),
        "beta1": jnp.zeros((in_channels,), jnp.float32),
    }
    if downsample:
        p.update({
            "w_down1": s * jax.random.normal(ks[0], (3, 3, in_channels, out_channels),
                                             jnp.float32),
            "b_down1": s * jax.random.normal(ks[1], (out_channels,), jnp.float32),
            "w_down2": s * jax.random.normal(ks[2], (in_channels, out_channels),
                                             jnp.float32),
            "b_down2": s * jax.random.normal(ks[3], (out_channels,), jnp.float32),
        })
        mid = out_channels
    else:
        mid = in_channels
    p.update({
        "gamma2": jnp.ones((mid,), jnp.float32),
        "beta2": jnp.zeros((mid,), jnp.float32),
        "w2": s * jax.random.normal(ks[4], (3, 3, mid, out_channels), jnp.float32),
        "b2": s * jax.random.normal(ks[5], (out_channels,), jnp.float32),
        # NOTE: the module also constructs self.conv1, but forward() never uses it.
    })
    return p


if __name__ == "__main__":
    key = jax.random.PRNGKey(0)
    kx1, kp1, kx2, kp2 = jax.random.split(key, 4)

    # downsample=True: in_channels=4 -> out_channels=32, 16x16 -> 8x8
    B, Cin, Cout, H, W = 2, 4, 32, 16, 16
    x = jax.random.normal(kx1, (B, Cin, H, W), jnp.float32)       # NCHW like PyTorch
    params = init_params(kp1, Cin, Cout, downsample=True)
    out = jax.block_until_ready(residual_block_forward(x, params, downsample=True))
    assert out.shape == (B, Cout, H // 2, W // 2)

    # downsample=False: residual add requires in_channels == out_channels
    C = 32
    x2 = jax.random.normal(kx2, (B, C, H, W), jnp.float32)
    params2 = init_params(kp2, C, C, downsample=False)
    out2 = jax.block_until_ready(residual_block_forward(x2, params2, downsample=False))
    assert out2.shape == (B, C, H, W)

    print("KERNEL_OK")
</pallas_src>

<mosaic_0001>
module attributes {stable_mosaic.version = 11 : i64} {
  func.func @_stats_kernel(%arg0: i32, %arg1: memref<1x16x64xf32, #tpu.memory_space<vmem>>, %arg2: memref<1x64xf32, #tpu.memory_space<vmem>>, %arg3: memref<1x64xf32, #tpu.memory_space<vmem>>, %arg4: memref<1x1x64xf32, #tpu.memory_space<vmem>>, %arg5: memref<1x1x64xf32, #tpu.memory_space<vmem>>) attributes {dimension_semantics = [#tpu.dimension_semantics<parallel>], iteration_bounds = array<i64: 2>, scalar_prefetch = 0 : i64, scratch_operands = 0 : i64, tpu.core_type = #tpu.core_type<tc>, window_params = [{transform_indices = @transform_0, window_bounds = array<i64: 1, 16, 64>}, {pipeline_mode = #tpu.pipeline_mode<synchronous>, transform_indices = @transform_1, window_bounds = array<i64: 1, 64>}, {pipeline_mode = #tpu.pipeline_mode<synchronous>, transform_indices = @transform_2, window_bounds = array<i64: 1, 64>}, {transform_indices = @transform_3, window_bounds = array<i64: 1, 1, 64>}, {transform_indices = @transform_4, window_bounds = array<i64: 1, 1, 64>}]} {
    %c0 = arith.constant 0 : index
    %c0_0 = arith.constant 0 : index
    %c0_1 = arith.constant 0 : index
    %0 = vector.load %arg1[%c0, %c0_0, %c0_1] : memref<1x16x64xf32, #tpu.memory_space<vmem>>, vector<1x16x64xf32>
    %1 = vector.shape_cast %0 : vector<1x16x64xf32> to vector<16x64xf32>
    %cst = arith.constant dense<0.000000e+00> : vector<64xf32>
    %2 = vector.multi_reduction <add>, %1, %cst [0] : vector<16x64xf32> to vector<64xf32>
    %3 = vector.shape_cast %2 : vector<64xf32> to vector<1x64xf32>
    %c0_2 = arith.constant 0 : index
    %c0_3 = arith.constant 0 : index
    %c0_4 = arith.constant 0 : index
    %4 = vector.load %arg4[%c0_2, %c0_3, %c0_4] : memref<1x1x64xf32, #tpu.memory_space<vmem>>, vector<1x1x64xf32>
    %5 = vector.shape_cast %4 : vector<1x1x64xf32> to vector<1x64xf32>
    %6 = vector.shape_cast %3 : vector<1x64xf32> to vector<1x1x64xf32>
    tpu.vector_store %arg4[%c0_2, %c0_3, %c0_4], %6 {strides = array<i32>} : memref<1x1x64xf32, #tpu.memory_space<vmem>>, vector<1x1x64xf32>,
    %7 = arith.mulf %1, %1 : vector<16x64xf32>
    %cst_5 = arith.constant dense<0.000000e+00> : vector<64xf32>
    %8 = vector.multi_reduction <add>, %7, %cst_5 [0] : vector<16x64xf32> to vector<64xf32>
    %9 = vector.shape_cast %8 : vector<64xf32> to vector<1x64xf32>
    %c0_6 = arith.constant 0 : index
    %c0_7 = arith.constant 0 : index
    %c0_8 = arith.constant 0 : index
    %10 = vector.load %arg5[%c0_6, %c0_7, %c0_8] : memref<1x1x64xf32, #tpu.memory_space<vmem>>, vector<1x1x64xf32>
    %11 = vector.shape_cast %10 : vector<1x1x64xf32> to vector<1x64xf32>
    %12 = vector.shape_cast %9 : vector<1x64xf32> to vector<1x1x64xf32>
    tpu.vector_store %arg5[%c0_6, %c0_7, %c0_8], %12 {strides = array<i32>} : memref<1x1x64xf32, #tpu.memory_space<vmem>>, vector<1x1x64xf32>,
    return
  }
  func.func @transform_0(%arg0: i32) -> (i32, i32, i32) {
    %c0_i32 = arith.constant 0 : i32
    %c0_i32_0 = arith.constant 0 : i32
    %c0_i32_1 = arith.constant 0 : i32
    return %arg0, %c0_i32, %c0_i32_0 : i32, i32, i32
  }
  func.func @transform_1(%arg0: i32) -> (i32, i32) {
    %c0_i32 = arith.constant 0 : i32
    %c0_i32_0 = arith.constant 0 : i32
    %c0_i32_1 = arith.constant 0 : i32
    return %c0_i32, %c0_i32_0 : i32, i32
  }
  func.func @transform_2(%arg0: i32) -> (i32, i32) {
    %c0_i32 = arith.constant 0 : i32
    %c0_i32_0 = arith.constant 0 : i32
    %c0_i32_1 = arith.constant 0 : i32
    return %c0_i32, %c0_i32_0 : i32, i32
  }
  func.func @transform_3(%arg0: i32) -> (i32, i32, i32) {
    %c0_i32 = arith.constant 0 : i32
    %c0_i32_0 = arith.constant 0 : i32
    %c0_i32_1 = arith.constant 0 : i32
    return %arg0, %c0_i32, %c0_i32_0 : i32, i32, i32
  }
  func.func @transform_4(%arg0: i32) -> (i32, i32, i32) {
    %c0_i32 = arith.constant 0 : i32
    %c0_i32_0 = arith.constant 0 : i32
    %c0_i32_1 = arith.constant 0 : i32
    return %arg0, %c0_i32, %c0_i32_0 : i32, i32, i32
  }
}

module attributes {stable_mosaic.version = 11 : i64} {
  func.func @_down_kernel(%arg0: i32, %arg1: memref<1x4x9x9x4xf32, #tpu.memory_space<vmem>>, %arg2: memref<4x9x9x1xf32, #tpu.memory_space<vmem>>, %arg3: memref<1x4xf32, #tpu.memory_space<vmem>>, %arg4: memref<1x4xf32, #tpu.memory_space<vmem>>, %arg5: memref<9x4x128xbf16, #tpu.memory_space<vmem>>, %arg6: memref<1x128xf32, #tpu.memory_space<vmem>>, %arg7: memref<4x128xbf16, #tpu.memory_space<vmem>>, %arg8: memref<1x128xf32, #tpu.memory_space<vmem>>, %arg9: memref<1x64x128xbf16, #tpu.memory_space<vmem>>, %arg10: memref<1x64x128xf32, #tpu.memory_space<vmem>>, %arg11: memref<1x1x128xf32, #tpu.memory_space<vmem>>, %arg12: memref<1x1x128xf32, #tpu.memory_space<vmem>>) attributes {dimension_semantics = [#tpu.dimension_semantics<parallel>], iteration_bounds = array<i64: 2>, scalar_prefetch = 0 : i64, scratch_operands = 0 : i64, tpu.core_type = #tpu.core_type<tc>, window_params = [{transform_indices = @transform_0, window_bounds = array<i64: 1, 4, 9, 9, 4>}, {pipeline_mode = #tpu.pipeline_mode<synchronous>, transform_indices = @transform_1, window_bounds = array<i64: 4, 9, 9, 1>}, {pipeline_mode = #tpu.pipeline_mode<synchronous>, transform_indices = @transform_2, window_bounds = array<i64: 1, 4>}, {pipeline_mode = #tpu.pipeline_mode<synchronous>, transform_indices = @transform_3, window_bounds = array<i64: 1, 4>}, {pipeline_mode = #tpu.pipeline_mode<synchronous>, transform_indices = @transform_4, window_bounds = array<i64: 9, 4, 128>}, {pipeline_mode = #tpu.pipeline_mode<synchronous>, transform_indices = @transform_5, window_bounds = array<i64: 1, 128>}, {pipeline_mode = #tpu.pipeline_mode<synchronous>, transform_indices = @transform_6, window_bounds = array<i64: 4, 128>}, {pipeline_mode = #tpu.pipeline_mode<synchronous>, transform_indices = @transform_7, window_bounds = array<i64: 1, 128>}, {transform_indices = @transform_8, window_bounds = array<i64: 1, 64, 128>}, {transform_indices = @transform_9, window_bounds = array<i64: 1, 64, 128>}, {transform_indices = @transform_10, window_bounds = array<i64: 1, 1, 128>}, {transform_indices = @transform_11, window_bounds = array<i64: 1, 1, 128>}]} {
    %c0 = arith.constant 0 : index
    %c0_0 = arith.constant 0 : index
    %c0_1 = arith.constant 0 : index
    %c0_2 = arith.constant 0 : index
    %c0_3 = arith.constant 0 : index
    %0 = vector.load %arg1[%c0, %c0_0, %c0_1, %c0_2, %c0_3] : memref<1x4x9x9x4xf32, #tpu.memory_space<vmem>>, vector<1x4x9x9x4xf32>
    %1 = vector.shape_cast %0 : vector<1x4x9x9x4xf32> to vector<4x9x9x4xf32>
    %c0_4 = arith.constant 0 : index
    %c0_5 = arith.constant 0 : index
    %2 = vector.load %arg3[%c0_4, %c0_5] : memref<1x4xf32, #tpu.memory_space<vmem>>, vector<1x4xf32>
    %3 = vector.shape_cast %2 : vector<1x4xf32> to vector<1x1x1x4xf32>
    %4 = vector.broadcast %3 : vector<1x1x1x4xf32> to vector<4x9x9x4xf32>
    %5 = arith.mulf %1, %4 : vector<4x9x9x4xf32>
    %c0_6 = arith.constant 0 : index
    %c0_7 = arith.constant 0 : index
    %6 = vector.load %arg4[%c0_6, %c0_7] : memref<1x4xf32, #tpu.memory_space<vmem>>, vector<1x4xf32>
    %7 = vector.shape_cast %6 : vector<1x4xf32> to vector<1x1x1x4xf32>
    %8 = vector.broadcast %7 : vector<1x1x1x4xf32> to vector<4x9x9x4xf32>
    %9 = arith.addf %5, %8 : vector<4x9x9x4xf32>
    %cst = arith.constant 0.000000e+00 : f32
    %10 = vector.broadcast %cst : f32 to vector<4x9x9x4xf32>
    %11 = arith.cmpf ogt, %9, %10 : vector<4x9x9x4xf32>
    %cst_8 = arith.constant 0.000000e+00 : f32
    %12 = vector.broadcast %cst_8 : f32 to vector<4x9x9x4xf32>
    %13 = arith.minimumf %9, %12 : vector<4x9x9x4xf32>
    %14 = math.exp %13 : vector<4x9x9x4xf32>
    %cst_9 = arith.constant 1.000000e+00 : f32
    %15 = vector.broadcast %cst_9 : f32 to vector<4x9x9x4xf32>
    %16 = arith.subf %14, %15 : vector<4x9x9x4xf32>
    %17 = arith.select %11, %9, %16 : vector<4x9x9x4xi1>, vector<4x9x9x4xf32>
    %c0_10 = arith.constant 0 : index
    %c0_11 = arith.constant 0 : index
    %c0_12 = arith.constant 0 : index
    %c0_13 = arith.constant 0 : index
    %18 = vector.load %arg2[%c0_10, %c0_11, %c0_12, %c0_13] : memref<4x9x9x1xf32, #tpu.memory_space<vmem>>, vector<4x9x9x1xf32>
    %19 = vector.broadcast %18 : vector<4x9x9x1xf32> to vector<4x9x9x4xf32>
    %20 = arith.mulf %17, %19 : vector<4x9x9x4xf32>
    %21 = arith.truncf %20 : vector<4x9x9x4xf32> to vector<4x9x9x4xbf16>
    %cst_14 = arith.constant 0.000000e+00 : f32
    %22 = vector.broadcast %cst_14 : f32 to vector<64x128xf32>
    %23 = vector.extract_strided_slice %21 {offsets = [0, 0, 0, 0], sizes = [1, 8, 8, 4], strides = [1, 1, 1, 1]} : vector<4x9x9x4xbf16> to vector<1x8x8x4xbf16>
    %24 = vector.shape_cast %23 : vector<1x8x8x4xbf16> to vector<8x8x4xbf16>
    %25 = vector.shape_cast %24 : vector<8x8x4xbf16> to vector<64x4xbf16>
    %c0_15 = arith.constant 0 : index
    %c0_16 = arith.constant 0 : index
    %c0_17 = arith.constant 0 : index
    %26 = vector.load %arg5[%c0_15, %c0_16, %c0_17] : memref<9x4x128xbf16, #tpu.memory_space<vmem>>, vector<1x4x128xbf16>
    %27 = vector.shape_cast %26 : vector<1x4x128xbf16> to vector<4x128xbf16>
    %cst_18 = arith.constant dense<0.000000e+00> : vector<64x128xf32>
    %28 = tpu.matmul %25, %27, %cst_18 {dimension_numbers = #tpu.dot_dimension_numbers<[1], [0], [0], [1], [0, 0, 1, 1], [], []>} : vector<64x4xbf16>, vector<4x128xbf16>, vector<64x128xf32> -> vector<64x128xf32>
    %29 = arith.addf %22, %28 : vector<64x128xf32>
    %30 = vector.extract_strided_slice %21 {offsets = [1, 0, 0, 0], sizes = [1, 8, 8, 4], strides = [1, 1, 1, 1]} : vector<4x9x9x4xbf16> to vector<1x8x8x4xbf16>
    %31 = vector.shape_cast %30 : vector<1x8x8x4xbf16> to vector<8x8x4xbf16>
    %32 = vector.shape_cast %31 : vector<8x8x4xbf16> to vector<64x4xbf16>
    %c1 = arith.constant 1 : index
    %c0_19 = arith.constant 0 : index
    %c0_20 = arith.constant 0 : index
    %33 = vector.load %arg5[%c1, %c0_19, %c0_20] : memref<9x4x128xbf16, #tpu.memory_space<vmem>>, vector<1x4x128xbf16>
    %34 = vector.shape_cast %33 : vector<1x4x128xbf16> to vector<4x128xbf16>
    %cst_21 = arith.constant dense<0.000000e+00> : vector<64x128xf32>
    %35 = tpu.matmul %32, %34, %cst_21 {dimension_numbers = #tpu.dot_dimension_numbers<[1], [0], [0], [1], [0, 0, 1, 1], [], []>} : vector<64x4xbf16>, vector<4x128xbf16>, vector<64x128xf32> -> vector<64x128xf32>
    %36 = arith.addf %29, %35 : vector<64x128xf32>
    %37 = vector.extract_strided_slice %21 {offsets = [0, 0, 1, 0], sizes = [1, 8, 8, 4], strides = [1, 1, 1, 1]} : vector<4x9x9x4xbf16> to vector<1x8x8x4xbf16>
    %38 = vector.shape_cast %37 : vector<1x8x8x4xbf16> to vector<8x8x4xbf16>
    %39 = vector.shape_cast %38 : vector<8x8x4xbf16> to vector<64x4xbf16>
    %c2 = arith.constant 2 : index
    %c0_22 = arith.constant 0 : index
    %c0_23 = arith.constant 0 : index
    %40 = vector.load %arg5[%c2, %c0_22, %c0_23] : memref<9x4x128xbf16, #tpu.memory_space<vmem>>, vector<1x4x128xbf16>
    %41 = vector.shape_cast %40 : vector<1x4x128xbf16> to vector<4x128xbf16>
    %cst_24 = arith.constant dense<0.000000e+00> : vector<64x128xf32>
    %42 = tpu.matmul %39, %41, %cst_24 {dimension_numbers = #tpu.dot_dimension_numbers<[1], [0], [0], [1], [0, 0, 1, 1], [], []>} : vector<64x4xbf16>, vector<4x128xbf16>, vector<64x128xf32> -> vector<64x128xf32>
    %43 = arith.addf %36, %42 : vector<64x128xf32>
    %44 = vector.extract_strided_slice %21 {offsets = [2, 0, 0, 0], sizes = [1, 8, 8, 4], strides = [1, 1, 1, 1]} : vector<4x9x9x4xbf16> to vector<1x8x8x4xbf16>
    %45 = vector.shape_cast %44 : vector<1x8x8x4xbf16> to vector<8x8x4xbf16>
    %46 = vector.shape_cast %45 : vector<8x8x4xbf16> to vector<64x4xbf16>
    %c3 = arith.constant 3 : index
    %c0_25 = arith.constant 0 : index
    %c0_26 = arith.constant 0 : index
    %47 = vector.load %arg5[%c3, %c0_25, %c0_26] : memref<9x4x128xbf16, #tpu.memory_space<vmem>>, vector<1x4x128xbf16>
    %48 = vector.shape_cast %47 : vector<1x4x128xbf16> to vector<4x128xbf16>
    %cst_27 = arith.constant dense<0.000000e+00> : vector<64x128xf32>
    %49 = tpu.matmul %46, %48, %cst_27 {dimension_numbers = #tpu.dot_dimension_numbers<[1], [0], [0], [1], [0, 0, 1, 1], [], []>} : vector<64x4xbf16>, vector<4x128xbf16>, vector<64x128xf32> -> vector<64x128xf32>
    %50 = arith.addf %43, %49 : vector<64x128xf32>
    %51 = vector.extract_strided_slice %21 {offsets = [3, 0, 0, 0], sizes = [1, 8, 8, 4], strides = [1, 1, 1, 1]} : vector<4x9x9x4xbf16> to vector<1x8x8x4xbf16>
    %52 = vector.shape_cast %51 : vector<1x8x8x4xbf16> to vector<8x8x4xbf16>
    %53 = vector.shape_cast %52 : vector<8x8x4xbf16> to vector<64x4xbf16>
    %c4 = arith.constant 4 : index
    %c0_28 = arith.constant 0 : index
    %c0_29 = arith.constant 0 : index
    %54 = vector.load %arg5[%c4, %c0_28, %c0_29] : memref<9x4x128xbf16, #tpu.memory_space<vmem>>, vector<1x4x128xbf16>
    %55 = vector.shape_cast %54 : vector<1x4x128xbf16> to vector<4x128xbf16>
    %cst_30 = arith.constant dense<0.000000e+00> : vector<64x128xf32>
    %56 = tpu.matmul %53, %55, %cst_30 {dimension_numbers = #tpu.dot_dimension_numbers<[1], [0], [0], [1], [0, 0, 1, 1], [], []>} : vector<64x4xbf16>, vector<4x128xbf16>, vector<64x128xf32> -> vector<64x128xf32>
    %57 = arith.addf %50, %56 : vector<64x128xf32>
    %58 = vector.extract_strided_slice %21 {offsets = [2, 0, 1, 0], sizes = [1, 8, 8, 4], strides = [1, 1, 1, 1]} : vector<4x9x9x4xbf16> to vector<1x8x8x4xbf16>
    %59 = vector.shape_cast %58 : vector<1x8x8x4xbf16> to vector<8x8x4xbf16>
    %60 = vector.shape_cast %59 : vector<8x8x4xbf16> to vector<64x4xbf16>
    %c5 = arith.constant 5 : index
    %c0_31 = arith.constant 0 : index
    %c0_32 = arith.constant 0 : index
    %61 = vector.load %arg5[%c5, %c0_31, %c0_32] : memref<9x4x128xbf16, #tpu.memory_space<vmem>>, vector<1x4x128xbf16>
    %62 = vector.shape_cast %61 : vector<1x4x128xbf16> to vector<4x128xbf16>
    %cst_33 = arith.constant dense<0.000000e+00> : vector<64x128xf32>
    %63 = tpu.matmul %60, %62, %cst_33 {dimension_numbers = #tpu.dot_dimension_numbers<[1], [0], [0], [1], [0, 0, 1, 1], [], []>} : vector<64x4xbf16>, vector<4x128xbf16>, vector<64x128xf32> -> vector<64x128xf32>
    %64 = arith.addf %57, %63 : vector<64x128xf32>
    %65 = vector.extract_strided_slice %21 {offsets = [0, 1, 0, 0], sizes = [1, 8, 8, 4], strides = [1, 1, 1, 1]} : vector<4x9x9x4xbf16> to vector<1x8x8x4xbf16>
    %66 = vector.shape_cast %65 : vector<1x8x8x4xbf16> to vector<8x8x4xbf16>
    %67 = vector.shape_cast %66 : vector<8x8x4xbf16> to vector<64x4xbf16>
    %c6 = arith.constant 6 : index
    %c0_34 = arith.constant 0 : index
    %c0_35 = arith.constant 0 : index
    %68 = vector.load %arg5[%c6, %c0_34, %c0_35] : memref<9x4x128xbf16, #tpu.memory_space<vmem>>, vector<1x4x128xbf16>
    %69 = vector.shape_cast %68 : vector<1x4x128xbf16> to vector<4x128xbf16>
    %cst_36 = arith.constant dense<0.000000e+00> : vector<64x128xf32>
    %70 = tpu.matmul %67, %69, %cst_36 {dimension_numbers = #tpu.dot_dimension_numbers<[1], [0], [0], [1], [0, 0, 1, 1], [], []>} : vector<64x4xbf16>, vector<4x128xbf16>, vector<64x128xf32> -> vector<64x128xf32>
    %71 = arith.addf %64, %70 : vector<64x128xf32>
    %72 = vector.extract_strided_slice %21 {offsets = [1, 1, 0, 0], sizes = [1, 8, 8, 4], strides = [1, 1, 1, 1]} : vector<4x9x9x4xbf16> to vector<1x8x8x4xbf16>
    %73 = vector.shape_cast %72 : vector<1x8x8x4xbf16> to vector<8x8x4xbf16>
    %74 = vector.shape_cast %73 : vector<8x8x4xbf16> to vector<64x4xbf16>
    %c7 = arith.constant 7 : index
    %c0_37 = arith.constant 0 : index
    %c0_38 = arith.constant 0 : index
    %75 = vector.load %arg5[%c7, %c0_37, %c0_38] : memref<9x4x128xbf16, #tpu.memory_space<vmem>>, vector<1x4x128xbf16>
    %76 = vector.shape_cast %75 : vector<1x4x128xbf16> to vector<4x128xbf16>
    %cst_39 = arith.constant dense<0.000000e+00> : vector<64x128xf32>
    %77 = tpu.matmul %74, %76, %cst_39 {dimension_numbers = #tpu.dot_dimension_numbers<[1], [0], [0], [1], [0, 0, 1, 1], [], []>} : vector<64x4xbf16>, vector<4x128xbf16>, vector<64x128xf32> -> vector<64x128xf32>
    %78 = arith.addf %71, %77 : vector<64x128xf32>
    %79 = vector.extract_strided_slice %21 {offsets = [0, 1, 1, 0], sizes = [1, 8, 8, 4], strides = [1, 1, 1, 1]} : vector<4x9x9x4xbf16> to vector<1x8x8x4xbf16>
    %80 = vector.shape_cast %79 : vector<1x8x8x4xbf16> to vector<8x8x4xbf16>
    %81 = vector.shape_cast %80 : vector<8x8x4xbf16> to vector<64x4xbf16>
    %c8 = arith.constant 8 : index
    %c0_40 = arith.constant 0 : index
    %c0_41 = arith.constant 0 : index
    %82 = vector.load %arg5[%c8, %c0_40, %c0_41] : memref<9x4x128xbf16, #tpu.memory_space<vmem>>, vector<1x4x128xbf16>
    %83 = vector.shape_cast %82 : vector<1x4x128xbf16> to vector<4x128xbf16>
    %cst_42 = arith.constant dense<0.000000e+00> : vector<64x128xf32>
    %84 = tpu.matmul %81, %83, %cst_42 {dimension_numbers = #tpu.dot_dimension_numbers<[1], [0], [0], [1], [0, 0, 1, 1], [], []>} : vector<64x4xbf16>, vector<4x128xbf16>, vector<64x128xf32> -> vector<64x128xf32>
    %85 = arith.addf %78, %84 : vector<64x128xf32>
    %cst_43 = arith.constant dense<0.000000e+00> : vector<128xf32>
    %86 = vector.multi_reduction <add>, %85, %cst_43 [0] : vector<64x128xf32> to vector<128xf32>
    %87 = vector.shape_cast %86 : vector<128xf32> to vector<1x128xf32>
    %c0_44 = arith.constant 0 : index
    %c0_45 = arith.constant 0 : index
    %c0_46 = arith.constant 0 : index
    %88 = vector.load %arg11[%c0_44, %c0_45, %c0_46] : memref<1x1x128xf32, #tpu.memory_space<vmem>>, vector<1x1x128xf32>
    %89 = vector.shape_cast %88 : vector<1x1x128xf32> to vector<1x128xf32>
    %90 = vector.shape_cast %87 : vector<1x128xf32> to vector<1x1x128xf32>
    tpu.vector_store %arg11[%c0_44, %c0_45, %c0_46], %90 {strides = array<i32>} : memref<1x1x128xf32, #tpu.memory_space<vmem>>, vector<1x1x128xf32>,
    %91 = arith.mulf %85, %85 : vector<64x128xf32>
    %cst_47 = arith.constant dense<0.000000e+00> : vector<128xf32>
    %92 = vector.multi_reduction <add>, %91, %cst_47 [0] : vector<64x128xf32> to vector<128xf32>
    %93 = vector.shape_cast %92 : vector<128xf32> to vector<1x128xf32>
    %c0_48 = arith.constant 0 : index
    %c0_49 = arith.constant 0 : index
    %c0_50 = arith.constant 0 : index
    %94 = vector.load %arg12[%c0_48, %c0_49, %c0_50] : memref<1x1x128xf32, #tpu.memory_space<vmem>>, vector<1x1x128xf32>
    %95 = vector.shape_cast %94 : vector<1x1x128xf32> to vector<1x128xf32>
    %96 = vector.shape_cast %93 : vector<1x128xf32> to vector<1x1x128xf32>
    tpu.vector_store %arg12[%c0_48, %c0_49, %c0_50], %96 {strides = array<i32>} : memref<1x1x128xf32, #tpu.memory_space<vmem>>, vector<1x1x128xf32>,
    %c0_51 = arith.constant 0 : index
    %c0_52 = arith.constant 0 : index
    %97 = vector.load %arg6[%c0_51, %c0_52] : memref<1x128xf32, #tpu.memory_space<vmem>>, vector<1x128xf32>
    %98 = vector.broadcast %97 : vector<1x128xf32> to vector<64x128xf32>
    %99 = arith.addf %85, %98 : vector<64x128xf32>
    %100 = arith.truncf %99 : vector<64x128xf32> to vector<64x128xbf16>
    %c0_53 = arith.constant 0 : index
    %c0_54 = arith.constant 0 : index
    %c0_55 = arith.constant 0 : index
    %101 = vector.load %arg9[%c0_53, %c0_54, %c0_55] : memref<1x64x128xbf16, #tpu.memory_space<vmem>>, vector<1x64x128xbf16>
    %102 = vector.shape_cast %101 : vector<1x64x128xbf16> to vector<64x128xbf16>
    %103 = vector.shape_cast %100 : vector<64x128xbf16> to vector<1x64x128xbf16>
    tpu.vector_store %arg9[%c0_53, %c0_54, %c0_55], %103 {strides = array<i32>} : memref<1x64x128xbf16, #tpu.memory_space<vmem>>, vector<1x64x128xbf16>,
    %104 = vector.extract_strided_slice %1 {offsets = [3, 0, 0, 0], sizes = [1, 8, 8, 4], strides = [1, 1, 1, 1]} : vector<4x9x9x4xf32> to vector<1x8x8x4xf32>
    %105 = vector.shape_cast %104 : vector<1x8x8x4xf32> to vector<8x8x4xf32>
    %106 = vector.shape_cast %105 : vector<8x8x4xf32> to vector<64x4xf32>
    %107 = arith.truncf %106 : vector<64x4xf32> to vector<64x4xbf16>
    %c0_56 = arith.constant 0 : index
    %c0_57 = arith.constant 0 : index
    %108 = vector.load %arg7[%c0_56, %c0_57] : memref<4x128xbf16, #tpu.memory_space<vmem>>, vector<4x128xbf16>
    %cst_58 = arith.constant dense<0.000000e+00> : vector<64x128xf32>
    %109 = tpu.matmul %107, %108, %cst_58 {dimension_numbers = #tpu.dot_dimension_numbers<[1], [0], [0], [1], [0, 0, 1, 1], [], []>} : vector<64x4xbf16>, vector<4x128xbf16>, vector<64x128xf32> -> vector<64x128xf32>
    %c0_59 = arith.constant 0 : index
    %c0_60 = arith.constant 0 : index
    %110 = vector.load %arg8[%c0_59, %c0_60] : memref<1x128xf32, #tpu.memory_space<vmem>>, vector<1x128xf32>
    %111 = vector.broadcast %110 : vector<1x128xf32> to vector<64x128xf32>
    %112 = arith.addf %109, %111 : vector<64x128xf32>
    %c0_61 = arith.constant 0 : index
    %c0_62 = arith.constant 0 : index
    %c0_63 = arith.constant 0 : index
    %113 = vector.load %arg10[%c0_61, %c0_62, %c0_63] : memref<1x64x128xf32, #tpu.memory_space<vmem>>, vector<1x64x128xf32>
    %114 = vector.shape_cast %113 : vector<1x64x128xf32> to vector<64x128xf32>
    %115 = vector.shape_cast %112 : vector<64x128xf32> to vector<1x64x128xf32>
    tpu.vector_store %arg10[%c0_61, %c0_62, %c0_63], %115 {strides = array<i32>} : memref<1x64x128xf32, #tpu.memory_space<vmem>>, vector<1x64x128xf32>,
    return
  }
  func.func @transform_0(%arg0: i32) -> (i32, i32, i32, i32, i32) {
    %c0_i32 = arith.constant 0 : i32
    %c0_i32_0 = arith.constant 0 : i32
    %c0_i32_1 = arith.constant 0 : i32
    %c0_i32_2 = arith.constant 0 : i32
    %c0_i32_3 = arith.constant 0 : i32
    return %arg0, %c0_i32, %c0_i32_0, %c0_i32_1, %c0_i32_2 : i32, i32, i32, i32, i32
  }
  func.func @transform_1(%arg0: i32) -> (i32, i32, i32, i32) {
    %c0_i32 = arith.constant 0 : i32
    %c0_i32_0 = arith.constant 0 : i32
    %c0_i32_1 = arith.constant 0 : i32
    %c0_i32_2 = arith.constant 0 : i32
    %c0_i32_3 = arith.constant 0 : i32
    return %c0_i32, %c0_i32_0, %c0_i32_1, %c0_i32_2 : i32, i32, i32, i32
  }
  func.func @transform_2(%arg0: i32) -> (i32, i32) {
    %c0_i32 = arith.constant 0 : i32
    %c0_i32_0 = arith.constant 0 : i32
    %c0_i32_1 = arith.constant 0 : i32
    return %c0_i32, %c0_i32_0 : i32, i32
  }
  func.func @transform_3(%arg0: i32) -> (i32, i32) {
    %c0_i32 = arith.constant 0 : i32
    %c0_i32_0 = arith.constant 0 : i32
    %c0_i32_1 = arith.constant 0 : i32
    return %c0_i32, %c0_i32_0 : i32, i32
  }
  func.func @transform_4(%arg0: i32) -> (i32, i32, i32) {
    %c0_i32 = arith.constant 0 : i32
    %c0_i32_0 = arith.constant 0 : i32
    %c0_i32_1 = arith.constant 0 : i32
    %c0_i32_2 = arith.constant 0 : i32
    return %c0_i32, %c0_i32_0, %c0_i32_1 : i32, i32, i32
  }
  func.func @transform_5(%arg0: i32) -> (i32, i32) {
    %c0_i32 = arith.constant 0 : i32
    %c0_i32_0 = arith.constant 0 : i32
    %c0_i32_1 = arith.constant 0 : i32
    return %c0_i32, %c0_i32_0 : i32, i32
  }
  func.func @transform_6(%arg0: i32) -> (i32, i32) {
    %c0_i32 = arith.constant 0 : i32
    %c0_i32_0 = arith.constant 0 : i32
    %c0_i32_1 = arith.constant 0 : i32
    return %c0_i32, %c0_i32_0 : i32, i32
  }
  func.func @transform_7(%arg0: i32) -> (i32, i32) {
    %c0_i32 = arith.constant 0 : i32
    %c0_i32_0 = arith.constant 0 : i32
    %c0_i32_1 = arith.constant 0 : i32
    return %c0_i32, %c0_i32_0 : i32, i32
  }
  func.func @transform_8(%arg0: i32) -> (i32, i32, i32) {
    %c0_i32 = arith.constant 0 : i32
    %c0_i32_0 = arith.constant 0 : i32
    %c0_i32_1 = arith.constant 0 : i32
    return %arg0, %c0_i32, %c0_i32_0 : i32, i32, i32
  }
  func.func @transform_9(%arg0: i32) -> (i32, i32, i32) {
    %c0_i32 = arith.constant 0 : i32
    %c0_i32_0 = arith.constant 0 : i32
    %c0_i32_1 = arith.constant 0 : i32
    return %arg0, %c0_i32, %c0_i32_0 : i32, i32, i32
  }
  func.func @transform_10(%arg0: i32) -> (i32, i32, i32) {
    %c0_i32 = arith.constant 0 : i32
    %c0_i32_0 = arith.constant 0 : i32
    %c0_i32_1 = arith.constant 0 : i32
    return %arg0, %c0_i32, %c0_i32_0 : i32, i32, i32
  }
  func.func @transform_11(%arg0: i32) -> (i32, i32, i32) {
    %c0_i32 = arith.constant 0 : i32
    %c0_i32_0 = arith.constant 0 : i32
    %c0_i32_1 = arith.constant 0 : i32
    return %arg0, %c0_i32, %c0_i32_0 : i32, i32, i32
  }
}

module attributes {stable_mosaic.version = 11 : i64} {
  func.func @_final_kernel(%arg0: i32, %arg1: memref<1x10x10x128xbf16, #tpu.memory_space<vmem>>, %arg2: memref<10x10x1xf32, #tpu.memory_space<vmem>>, %arg3: memref<1x128xf32, #tpu.memory_space<vmem>>, %arg4: memref<1x128xf32, #tpu.memory_space<vmem>>, %arg5: memref<9x128x128xbf16, #tpu.memory_space<vmem>>, %arg6: memref<1x128xf32, #tpu.memory_space<vmem>>, %arg7: memref<1x64x128xf32, #tpu.memory_space<vmem>>, %arg8: memref<1x64x128xf32, #tpu.memory_space<vmem>>) attributes {dimension_semantics = [#tpu.dimension_semantics<parallel>], iteration_bounds = array<i64: 2>, scalar_prefetch = 0 : i64, scratch_operands = 0 : i64, tpu.core_type = #tpu.core_type<tc>, window_params = [{transform_indices = @transform_0, window_bounds = array<i64: 1, 10, 10, 128>}, {pipeline_mode = #tpu.pipeline_mode<synchronous>, transform_indices = @transform_1, window_bounds = array<i64: 10, 10, 1>}, {pipeline_mode = #tpu.pipeline_mode<synchronous>, transform_indices = @transform_2, window_bounds = array<i64: 1, 128>}, {pipeline_mode = #tpu.pipeline_mode<synchronous>, transform_indices = @transform_3, window_bounds = array<i64: 1, 128>}, {pipeline_mode = #tpu.pipeline_mode<synchronous>, transform_indices = @transform_4, window_bounds = array<i64: 9, 128, 128>}, {pipeline_mode = #tpu.pipeline_mode<synchronous>, transform_indices = @transform_5, window_bounds = array<i64: 1, 128>}, {transform_indices = @transform_6, window_bounds = array<i64: 1, 64, 128>}, {transform_indices = @transform_7, window_bounds = array<i64: 1, 64, 128>}]} {
    %c0 = arith.constant 0 : index
    %c0_0 = arith.constant 0 : index
    %c0_1 = arith.constant 0 : index
    %c0_2 = arith.constant 0 : index
    %0 = vector.load %arg1[%c0, %c0_0, %c0_1, %c0_2] : memref<1x10x10x128xbf16, #tpu.memory_space<vmem>>, vector<1x10x10x128xbf16>
    %1 = vector.shape_cast %0 : vector<1x10x10x128xbf16> to vector<10x10x128xbf16>
    %2 = arith.extf %1 : vector<10x10x128xbf16> to vector<10x10x128xf32>
    %c0_3 = arith.constant 0 : index
    %c0_4 = arith.constant 0 : index
    %3 = vector.load %arg3[%c0_3, %c0_4] : memref<1x128xf32, #tpu.memory_space<vmem>>, vector<1x128xf32>
    %4 = vector.shape_cast %3 : vector<1x128xf32> to vector<1x1x128xf32>
    %5 = vector.broadcast %4 : vector<1x1x128xf32> to vector<10x10x128xf32>
    %6 = arith.mulf %2, %5 : vector<10x10x128xf32>
    %c0_5 = arith.constant 0 : index
    %c0_6 = arith.constant 0 : index
    %7 = vector.load %arg4[%c0_5, %c0_6] : memref<1x128xf32, #tpu.memory_space<vmem>>, vector<1x128xf32>
    %8 = vector.shape_cast %7 : vector<1x128xf32> to vector<1x1x128xf32>
    %9 = vector.broadcast %8 : vector<1x1x128xf32> to vector<10x10x128xf32>
    %10 = arith.addf %6, %9 : vector<10x10x128xf32>
    %c0_7 = arith.constant 0 : index
    %c0_8 = arith.constant 0 : index
    %c0_9 = arith.constant 0 : index
    %11 = vector.load %arg2[%c0_7, %c0_8, %c0_9] : memref<10x10x1xf32, #tpu.memory_space<vmem>>, vector<10x10x1xf32>
    %12 = vector.broadcast %11 : vector<10x10x1xf32> to vector<10x10x128xf32>
    %13 = arith.mulf %10, %12 : vector<10x10x128xf32>
    %14 = arith.truncf %13 : vector<10x10x128xf32> to vector<10x10x128xbf16>
    %cst = arith.constant 0.000000e+00 : f32
    %15 = vector.broadcast %cst : f32 to vector<64x128xf32>
    %16 = vector.extract_strided_slice %14 {offsets = [0, 0, 0], sizes = [8, 8, 128], strides = [1, 1, 1]} : vector<10x10x128xbf16> to vector<8x8x128xbf16>
    %17 = vector.shape_cast %16 : vector<8x8x128xbf16> to vector<64x128xbf16>
    %c0_10 = arith.constant 0 : index
    %c0_11 = arith.constant 0 : index
    %c0_12 = arith.constant 0 : index
    %18 = vector.load %arg5[%c0_10, %c0_11, %c0_12] : memref<9x128x128xbf16, #tpu.memory_space<vmem>>, vector<1x128x128xbf16>
    %19 = vector.shape_cast %18 : vector<1x128x128xbf16> to vector<128x128xbf16>
    %cst_13 = arith.constant dense<0.000000e+00> : vector<64x128xf32>
    %20 = tpu.matmul %17, %19, %cst_13 {dimension_numbers = #tpu.dot_dimension_numbers<[1], [0], [0], [1], [0, 0, 1, 1], [], []>} : vector<64x128xbf16>, vector<128x128xbf16>, vector<64x128xf32> -> vector<64x128xf32>
    %21 = arith.addf %15, %20 : vector<64x128xf32>
    %22 = vector.extract_strided_slice %14 {offsets = [0, 1, 0], sizes = [8, 8, 128], strides = [1, 1, 1]} : vector<10x10x128xbf16> to vector<8x8x128xbf16>
    %23 = vector.shape_cast %22 : vector<8x8x128xbf16> to vector<64x128xbf16>
    %c1 = arith.constant 1 : index
    %c0_14 = arith.constant 0 : index
    %c0_15 = arith.constant 0 : index
    %24 = vector.load %arg5[%c1, %c0_14, %c0_15] : memref<9x128x128xbf16, #tpu.memory_space<vmem>>, vector<1x128x128xbf16>
    %25 = vector.shape_cast %24 : vector<1x128x128xbf16> to vector<128x128xbf16>
    %cst_16 = arith.constant dense<0.000000e+00> : vector<64x128xf32>
    %26 = tpu.matmul %23, %25, %cst_16 {dimension_numbers = #tpu.dot_dimension_numbers<[1], [0], [0], [1], [0, 0, 1, 1], [], []>} : vector<64x128xbf16>, vector<128x128xbf16>, vector<64x128xf32> -> vector<64x128xf32>
    %27 = arith.addf %21, %26 : vector<64x128xf32>
    %28 = vector.extract_strided_slice %14 {offsets = [0, 2, 0], sizes = [8, 8, 128], strides = [1, 1, 1]} : vector<10x10x128xbf16> to vector<8x8x128xbf16>
    %29 = vector.shape_cast %28 : vector<8x8x128xbf16> to vector<64x128xbf16>
    %c2 = arith.constant 2 : index
    %c0_17 = arith.constant 0 : index
    %c0_18 = arith.constant 0 : index
    %30 = vector.load %arg5[%c2, %c0_17, %c0_18] : memref<9x128x128xbf16, #tpu.memory_space<vmem>>, vector<1x128x128xbf16>
    %31 = vector.shape_cast %30 : vector<1x128x128xbf16> to vector<128x128xbf16>
    %cst_19 = arith.constant dense<0.000000e+00> : vector<64x128xf32>
    %32 = tpu.matmul %29, %31, %cst_19 {dimension_numbers = #tpu.dot_dimension_numbers<[1], [0], [0], [1], [0, 0, 1, 1], [], []>} : vector<64x128xbf16>, vector<128x128xbf16>, vector<64x128xf32> -> vector<64x128xf32>
    %33 = arith.addf %27, %32 : vector<64x128xf32>
    %34 = vector.extract_strided_slice %14 {offsets = [1, 0, 0], sizes = [8, 8, 128], strides = [1, 1, 1]} : vector<10x10x128xbf16> to vector<8x8x128xbf16>
    %35 = vector.shape_cast %34 : vector<8x8x128xbf16> to vector<64x128xbf16>
    %c3 = arith.constant 3 : index
    %c0_20 = arith.constant 0 : index
    %c0_21 = arith.constant 0 : index
    %36 = vector.load %arg5[%c3, %c0_20, %c0_21] : memref<9x128x128xbf16, #tpu.memory_space<vmem>>, vector<1x128x128xbf16>
    %37 = vector.shape_cast %36 : vector<1x128x128xbf16> to vector<128x128xbf16>
    %cst_22 = arith.constant dense<0.000000e+00> : vector<64x128xf32>
    %38 = tpu.matmul %35, %37, %cst_22 {dimension_numbers = #tpu.dot_dimension_numbers<[1], [0], [0], [1], [0, 0, 1, 1], [], []>} : vector<64x128xbf16>, vector<128x128xbf16>, vector<64x128xf32> -> vector<64x128xf32>
    %39 = arith.addf %33, %38 : vector<64x128xf32>
    %40 = vector.extract_strided_slice %14 {offsets = [1, 1, 0], sizes = [8, 8, 128], strides = [1, 1, 1]} : vector<10x10x128xbf16> to vector<8x8x128xbf16>
    %41 = vector.shape_cast %40 : vector<8x8x128xbf16> to vector<64x128xbf16>
    %c4 = arith.constant 4 : index
    %c0_23 = arith.constant 0 : index
    %c0_24 = arith.constant 0 : index
    %42 = vector.load %arg5[%c4, %c0_23, %c0_24] : memref<9x128x128xbf16, #tpu.memory_space<vmem>>, vector<1x128x128xbf16>
    %43 = vector.shape_cast %42 : vector<1x128x128xbf16> to vector<128x128xbf16>
    %cst_25 = arith.constant dense<0.000000e+00> : vector<64x128xf32>
    %44 = tpu.matmul %41, %43, %cst_25 {dimension_numbers = #tpu.dot_dimension_numbers<[1], [0], [0], [1], [0, 0, 1, 1], [], []>} : vector<64x128xbf16>, vector<128x128xbf16>, vector<64x128xf32> -> vector<64x128xf32>
    %45 = arith.addf %39, %44 : vector<64x128xf32>
    %46 = vector.extract_strided_slice %14 {offsets = [1, 2, 0], sizes = [8, 8, 128], strides = [1, 1, 1]} : vector<10x10x128xbf16> to vector<8x8x128xbf16>
    %47 = vector.shape_cast %46 : vector<8x8x128xbf16> to vector<64x128xbf16>
    %c5 = arith.constant 5 : index
    %c0_26 = arith.constant 0 : index
    %c0_27 = arith.constant 0 : index
    %48 = vector.load %arg5[%c5, %c0_26, %c0_27] : memref<9x128x128xbf16, #tpu.memory_space<vmem>>, vector<1x128x128xbf16>
    %49 = vector.shape_cast %48 : vector<1x128x128xbf16> to vector<128x128xbf16>
    %cst_28 = arith.constant dense<0.000000e+00> : vector<64x128xf32>
    %50 = tpu.matmul %47, %49, %cst_28 {dimension_numbers = #tpu.dot_dimension_numbers<[1], [0], [0], [1], [0, 0, 1, 1], [], []>} : vector<64x128xbf16>, vector<128x128xbf16>, vector<64x128xf32> -> vector<64x128xf32>
    %51 = arith.addf %45, %50 : vector<64x128xf32>
    %52 = vector.extract_strided_slice %14 {offsets = [2, 0, 0], sizes = [8, 8, 128], strides = [1, 1, 1]} : vector<10x10x128xbf16> to vector<8x8x128xbf16>
    %53 = vector.shape_cast %52 : vector<8x8x128xbf16> to vector<64x128xbf16>
    %c6 = arith.constant 6 : index
    %c0_29 = arith.constant 0 : index
    %c0_30 = arith.constant 0 : index
    %54 = vector.load %arg5[%c6, %c0_29, %c0_30] : memref<9x128x128xbf16, #tpu.memory_space<vmem>>, vector<1x128x128xbf16>
    %55 = vector.shape_cast %54 : vector<1x128x128xbf16> to vector<128x128xbf16>
    %cst_31 = arith.constant dense<0.000000e+00> : vector<64x128xf32>
    %56 = tpu.matmul %53, %55, %cst_31 {dimension_numbers = #tpu.dot_dimension_numbers<[1], [0], [0], [1], [0, 0, 1, 1], [], []>} : vector<64x128xbf16>, vector<128x128xbf16>, vector<64x128xf32> -> vector<64x128xf32>
    %57 = arith.addf %51, %56 : vector<64x128xf32>
    %58 = vector.extract_strided_slice %14 {offsets = [2, 1, 0], sizes = [8, 8, 128], strides = [1, 1, 1]} : vector<10x10x128xbf16> to vector<8x8x128xbf16>
    %59 = vector.shape_cast %58 : vector<8x8x128xbf16> to vector<64x128xbf16>
    %c7 = arith.constant 7 : index
    %c0_32 = arith.constant 0 : index
    %c0_33 = arith.constant 0 : index
    %60 = vector.load %arg5[%c7, %c0_32, %c0_33] : memref<9x128x128xbf16, #tpu.memory_space<vmem>>, vector<1x128x128xbf16>
    %61 = vector.shape_cast %60 : vector<1x128x128xbf16> to vector<128x128xbf16>
    %cst_34 = arith.constant dense<0.000000e+00> : vector<64x128xf32>
    %62 = tpu.matmul %59, %61, %cst_34 {dimension_numbers = #tpu.dot_dimension_numbers<[1], [0], [0], [1], [0, 0, 1, 1], [], []>} : vector<64x128xbf16>, vector<128x128xbf16>, vector<64x128xf32> -> vector<64x128xf32>
    %63 = arith.addf %57, %62 : vector<64x128xf32>
    %64 = vector.extract_strided_slice %14 {offsets = [2, 2, 0], sizes = [8, 8, 128], strides = [1, 1, 1]} : vector<10x10x128xbf16> to vector<8x8x128xbf16>
    %65 = vector.shape_cast %64 : vector<8x8x128xbf16> to vector<64x128xbf16>
    %c8 = arith.constant 8 : index
    %c0_35 = arith.constant 0 : index
    %c0_36 = arith.constant 0 : index
    %66 = vector.load %arg5[%c8, %c0_35, %c0_36] : memref<9x128x128xbf16, #tpu.memory_space<vmem>>, vector<1x128x128xbf16>
    %67 = vector.shape_cast %66 : vector<1x128x128xbf16> to vector<128x128xbf16>
    %cst_37 = arith.constant dense<0.000000e+00> : vector<64x128xf32>
    %68 = tpu.matmul %65, %67, %cst_37 {dimension_numbers = #tpu.dot_dimension_numbers<[1], [0], [0], [1], [0, 0, 1, 1], [], []>} : vector<64x128xbf16>, vector<128x128xbf16>, vector<64x128xf32> -> vector<64x128xf32>
    %69 = arith.addf %63, %68 : vector<64x128xf32>
    %c0_38 = arith.constant 0 : index
    %c0_39 = arith.constant 0 : index
    %70 = vector.load %arg6[%c0_38, %c0_39] : memref<1x128xf32, #tpu.memory_space<vmem>>, vector<1x128xf32>
    %71 = vector.broadcast %70 : vector<1x128xf32> to vector<64x128xf32>
    %72 = arith.addf %69, %71 : vector<64x128xf32>
    %c0_40 = arith.constant 0 : index
    %c0_41 = arith.constant 0 : index
    %c0_42 = arith.constant 0 : index
    %73 = vector.load %arg7[%c0_40, %c0_41, %c0_42] : memref<1x64x128xf32, #tpu.memory_space<vmem>>, vector<1x64x128xf32>
    %74 = vector.shape_cast %73 : vector<1x64x128xf32> to vector<64x128xf32>
    %75 = arith.addf %72, %74 : vector<64x128xf32>
    %c0_43 = arith.constant 0 : index
    %c0_44 = arith.constant 0 : index
    %c0_45 = arith.constant 0 : index
    %76 = vector.load %arg8[%c0_43, %c0_44, %c0_45] : memref<1x64x128xf32, #tpu.memory_space<vmem>>, vector<1x64x128xf32>
    %77 = vector.shape_cast %76 : vector<1x64x128xf32> to vector<64x128xf32>
    %78 = vector.shape_cast %75 : vector<64x128xf32> to vector<1x64x128xf32>
    tpu.vector_store %arg8[%c0_43, %c0_44, %c0_45], %78 {strides = array<i32>} : memref<1x64x128xf32, #tpu.memory_space<vmem>>, vector<1x64x128xf32>,
    return
  }
  func.func @transform_0(%arg0: i32) -> (i32, i32, i32, i32) {
    %c0_i32 = arith.constant 0 : i32
    %c0_i32_0 = arith.constant 0 : i32
    %c0_i32_1 = arith.constant 0 : i32
    %c0_i32_2 = arith.constant 0 : i32
    return %arg0, %c0_i32, %c0_i32_0, %c0_i32_1 : i32, i32, i32, i32
  }
  func.func @transform_1(%arg0: i32) -> (i32, i32, i32) {
    %c0_i32 = arith.constant 0 : i32
    %c0_i32_0 = arith.constant 0 : i32
    %c0_i32_1 = arith.constant 0 : i32
    %c0_i32_2 = arith.constant 0 : i32
    return %c0_i32, %c0_i32_0, %c0_i32_1 : i32, i32, i32
  }
  func.func @transform_2(%arg0: i32) -> (i32, i32) {
    %c0_i32 = arith.constant 0 : i32
    %c0_i32_0 = arith.constant 0 : i32
    %c0_i32_1 = arith.constant 0 : i32
    return %c0_i32, %c0_i32_0 : i32, i32
  }
  func.func @transform_3(%arg0: i32) -> (i32, i32) {
    %c0_i32 = arith.constant 0 : i32
    %c0_i32_0 = arith.constant 0 : i32
    %c0_i32_1 = arith.constant 0 : i32
    return %c0_i32, %c0_i32_0 : i32, i32
  }
  func.func @transform_4(%arg0: i32) -> (i32, i32, i32) {
    %c0_i32 = arith.constant 0 : i32
    %c0_i32_0 = arith.constant 0 : i32
    %c0_i32_1 = arith.constant 0 : i32
    %c0_i32_2 = arith.constant 0 : i32
    return %c0_i32, %c0_i32_0, %c0_i32_1 : i32, i32, i32
  }
  func.func @transform_5(%arg0: i32) -> (i32, i32) {
    %c0_i32 = arith.constant 0 : i32
    %c0_i32_0 = arith.constant 0 : i32
    %c0_i32_1 = arith.constant 0 : i32
    return %c0_i32, %c0_i32_0 : i32, i32
  }
  func.func @transform_6(%arg0: i32) -> (i32, i32, i32) {
    %c0_i32 = arith.constant 0 : i32
    %c0_i32_0 = arith.constant 0 : i32
    %c0_i32_1 = arith.constant 0 : i32
    return %arg0, %c0_i32, %c0_i32_0 : i32, i32, i32
  }
  func.func @transform_7(%arg0: i32) -> (i32, i32, i32) {
    %c0_i32 = arith.constant 0 : i32
    %c0_i32_0 = arith.constant 0 : i32
    %c0_i32_1 = arith.constant 0 : i32
    return %arg0, %c0_i32, %c0_i32_0 : i32, i32, i32
  }
}

</mosaic_0001>

<bundles_post_ra>
// kernel: residual_block_forward.3
= control target key start
LH: loop header
LB: loop body
LE: loop exit
PB: predicated region body
PF: predicated region fallthrough
CT: control target
= control target key end

     0   :  { %s352_s15 = smov 0   ;;  %s377_s0 = inlined_call_operand.vmem [shape: f32[2,16,64], index: 0, kind: input, shape index: {}]   ;;  %s378_s1 = inlined_call_operand.vmem [shape: f32[1,64], index: 1, kind: input, shape index: {}]   ;;  %s379_s2 = inlined_call_operand.vmem [shape: f32[1,64], index: 2, kind: input, shape index: {}]   ;;  %s380_s3 = inlined_call_operand.vmem [shape: f32[2,1,64], index: 3, kind: output, shape index: {0}]   ;;  %s381_s4 = inlined_call_operand.vmem [shape: f32[2,1,64], index: 4, kind: output, shape index: {1}]  }
   0x1 LB: > { %s301_s1 = sadd.s32 4294967295, %s325_s15   ;;  %p305_p0 = scmp.ge.s32.totalorder %s325_s15, 1  ;;  %s325_s15 = sphi %s352_s15, %s15_s15  }
   0x2   : > { %p165_p1 = scmp.lt.s32.totalorder %s325_s15, 3 }
   0x4   : > { %p166_p2 = pnand %p305_p0, %p165_p1 }
   0x5   : > { %p192_p3 = scmp.lt.s32.totalorder (!%p166_p2), %s301_s1, 1 }
   0x6   : > { %169 = sbr.rel (%p166_p2) target bundleno = 33 (0x21), region = 32 }
   0xb   : > { %s383_s1 = smov (!%p192_p3, %s301_s1), 1  ;;  %vm205_vm0 = vcmask 523264   ;;  %vm215_vm1 = vcmask 516096  }
   0xc   : > { %s310_s2 = sshll.u32 %s383_s1, 4  ;;  %s199_s21 = scalar_lea.vmem %s380_s3, %s383_s1 }
   0xd   : > { %s196_s18 = scalar_lea.vmem %s377_s0, %s310_s2  ;;  %s202_s24 = scalar_lea.vmem %s381_s4, %s383_s1 }
   0xe   : > { %v203_v0 = vld [vmem:[%s196_s18] sm:$0xff]  ;;  %v204_v1 = vld [vmem:[%s196_s18 + $0x8] sm:$0xff] }
   0xf   : > { %v206_v2 = vsel %vm205_vm0, %v203_v0, 0.0  ;;  %v207_v3 = vsel %vm205_vm0, %v204_v1, 0.0  ;;  %v217_v4 = vmul.f32 %v203_v0, %v203_v0  ;;  %v218_v5 = vmul.f32 %v204_v1, %v204_v1 }
  0x10   : > { %v208_v6 = vadd.f32 %v207_v3, %v206_v2 }
  0x11   : > { %v219_v7 = vsel %vm205_vm0, %v217_v4, 0.0  ;;  %v220_v8 = vsel %vm205_vm0, %v218_v5, 0.0 }
  0x12   : > { %v209_v9 = vrot.slane %v208_v6, 4  ;;  %v221_v10 = vadd.f32 %v220_v8, %v219_v7 }
  0x14   : > { %v210_v11 = vadd.f32 %v209_v9, %v208_v6  ;;  %v222_v12 = vrot.slane %v221_v10, 4 }
  0x16   : > { %v211_v13 = vrot.slane %v210_v11, 2  ;;  %v223_v14 = vadd.f32 %v222_v12, %v221_v10 }
  0x18   : > { %v212_v15 = vadd.f32 %v211_v13, %v210_v11  ;;  %v224_v16 = vrot.slane %v223_v14, 2 }
  0x1a   : > { %v213_v17 = vrot.slane %v212_v15, 1  ;;  %v225_v18 = vadd.f32 %v224_v16, %v223_v14 }
  0x1c   : > { %v214_v19 = vadd.f32 %v213_v17, %v212_v15  ;;  %v226_v20 = vrot.slane %v225_v18, 1 }
  0x1e   : > { %216 = vst.msk [vmem:[%s199_s21] sm:$0x1] %vm215_vm1, %v214_v19  ;;  %v227_v21 = vadd.f32 %v226_v20, %v225_v18 }
  0x20   : > { %228 = vst.msk [vmem:[%s202_s24] sm:$0x1] %vm215_vm1, %v227_v21 }
  0x21 PF: > { %s15_s15 = sadd.s32 1, %s325_s15  }
  0x22   : > { %p12_p4 = scmp.ge.s32.totalorder %s15_s15, 4  }
  0x24   :  { %14 = sbr.rel (!%p12_p4) target bundleno = 1 (0x1), region = 74 }

// kernel: residual_block_forward.4
= control target key start
LH: loop header
LB: loop body
LE: loop exit
PB: predicated region body
PF: predicated region fallthrough
CT: control target
= control target key end

     0   :  { %s3736_s17 = smov 0   ;;  %s5018_s0 = inlined_call_operand.vmem [shape: f32[2,4,9,9,4], index: 0, kind: input, shape index: {}]   ;;  %s5019_s1 = inlined_call_operand.vmem [shape: f32[4,9,9,1], index: 1, kind: input, shape index: {}]   ;;  %s5020_s2 = inlined_call_operand.vmem [shape: f32[1,4], index: 2, kind: input, shape index: {}]   ;;  %s5021_s3 = inlined_call_operand.vmem [shape: f32[1,4], index: 3, kind: input, shape index: {}]   ;;  %s5022_s4 = inlined_call_operand.vmem [shape: bf16[9,4,128], index: 4, kind: input, shape index: {}]   ;;  %s5023_s5 = inlined_call_operand.vmem [shape: f32[1,128], index: 5, kind: input, shape index: {}]   ;;  %s5024_s6 = inlined_call_operand.vmem [shape: bf16[4,128], index: 6, kind: input, shape index: {}]   ;;  %s5025_s7 = inlined_call_operand.vmem [shape: f32[1,128], index: 7, kind: input, shape index: {}]   ;;  %s5026_s8 = inlined_call_operand.vmem [shape: bf16[2,64,128], index: 8, kind: output, shape index: {0}]   ;;  %s5027_s9 = inlined_call_operand.vmem [shape: f32[2,64,128], index: 9, kind: output, shape index: {1}]   ;;  %s5028_s10 = inlined_call_operand.vmem [shape: f32[2,1,128], index: 10, kind: output, shape index: {2}]   ;;  %s5029_s11 = inlined_call_operand.vmem [shape: f32[2,1,128], index: 11, kind: output, shape index: {3}]  }
   0x1 LB: > { %s3090_s18 = sadd.s32 4294967295, %s3673_s17   ;;  %p3094_p0 = scmp.ge.s32.totalorder %s3673_s17, 1  ;;  %s3673_s17 = sphi %s3736_s17, %s22_s17  }
   0x2   : > { %p344_p1 = scmp.lt.s32.totalorder %s3673_s17, 3 }
   0x4   : > { %p345_p2 = pnand %p3094_p0, %p344_p1 }
   0x6   : > { %348 = sbr.rel (%p345_p2) target bundleno = 482 (0x1e2), region = 52 }
   0xb   : > { %v1065_v0 = vld [vmem:[%s5019_s1 + $0xb0] sm:$0xff]  ;;  %v3675_v2 = vmov 0   ;;  %v1067_v3 = vld [vmem:[%s5019_s1 + $0xc0] sm:$0xff]  ;;  %vm1589_vm0 = vcmask 1041408   ;;  %v1046_v11 = vld [vmem:[%s5019_s1 + $0x18] sm:$0x1] }
   0xc   : > { %v1061_v1 = vld [vmem:[%s5019_s1 + $0x90] sm:$0xff]  ;;  %3562 = vset.pattern.permute.xlu1 %v3675_v2  ;;  %3561 = vset.pattern.permute.xlu0 %v3675_v2  ;;  %v1063_v4 = vld [vmem:[%s5019_s1 + $0xa0] sm:$0xff]  ;;  %v1044_v12 = vld [vmem:[%s5019_s1 + $0x8] sm:$0x1]  ;;  %p395_p3 = scmp.lt.s32.totalorder %s3090_s18, 1 }
   0xd   : > { %1223 = vperm.xlu1 %3562, %v1065_v0   ;;  %1203 = vperm.xlu0 %3561, %v1061_v1   ;;  %v1045_v5 = vld [vmem:[%s5019_s1 + $0x10] sm:$0xff]  ;;  %v1043_v6 = vld [vmem:[%s5019_s1] sm:$0xff]  ;;  %v1050_v18 = vld [vmem:[%s5019_s1 + $0x38] sm:$0x1] }
   0xe   : > { %v1049_v7 = vld [vmem:[%s5019_s1 + $0x30] sm:$0xff]  ;;  %v1047_v8 = vld [vmem:[%s5019_s1 + $0x20] sm:$0xff]  ;;  %v1048_v19 = vld [vmem:[%s5019_s1 + $0x28] sm:$0x1]  ;;  %s5147_s18 = smov (!%p395_p3, %s3090_s18), 1 }
   0xf   : > { %v1071_v9 = vld [vmem:[%s5019_s1 + $0xe0] sm:$0xff]  ;;  %v1069_v10 = vld [vmem:[%s5019_s1 + $0xd0] sm:$0xff]  ;;  %v1054_v26 = vld [vmem:[%s5019_s1 + $0x58] sm:$0x1]  ;;  %s3551_s16 = smul.u32 576, %s5147_s18  ;;  %s3300_s22 = sshll.u32 %s5147_s18, 5 }
  0x10   : > { %v3170_v13 = vld [vmem:[%s5022_s4 + $0x2] sm:$0x3]  ;;  %v1553_v15 = vld [vmem:[%s5022_s4] sm:$0x3]  ;;  %v1073_v17 = vld [vmem:[%s5019_s1 + $0xf0] sm:$0xff]  ;;  %s4979_s26 = scalar_lea.vmem %s5026_s8, %s3300_s22  ;;  %s3301_s27 = sshll.u32 %s5147_s18, 6 }
  0x11   : > { %1233 = vperm.xlu1 %3562, %v1067_v3   ;;  %1213 = vperm.xlu0 %3561, %v1063_v4   ;;  %v1591_v14 = vsel %vm1589_vm0, %v3170_v13, 0  ;;  %v1075_v16 = vld [vmem:[%s5019_s1 + $0x100] sm:$0xff]  ;;  %v1691_v20 = vsel %vm1589_vm0, %v1553_v15, 0  ;;  %v1053_v21 = vld [vmem:[%s5019_s1 + $0x50] sm:$0xff]  ;;  %v1052_v27 = vld [vmem:[%s5019_s1 + $0x48] sm:$0x1]  ;;  %s3843_s25 = scalar_lea.vmem %s5018_s0, %s3551_s16  ;;  %s4993_s13 = scalar_lea.vmem %s5027_s9, %s3301_s27 }
  0x12   : > { %3541 = vmatprep.subr.msk.bf16.mxu0 %vm1589_vm0, %v3170_v13  ;;  %3542 = vmatprep.subr.msk.bf16.mxu1 %vm1589_vm0, %v1553_v15  ;;  %v1051_v22 = vld [vmem:[%s5019_s1 + $0x40] sm:$0xff]  ;;  %v1057_v24 = vld [vmem:[%s5019_s1 + $0x70] sm:$0xff]  ;;  %v1058_v28 = vld [vmem:[%s5019_s1 + $0x78] sm:$0x1]  ;;  %s412_s15 = scalar_lea.vmem %s5028_s10, %s5147_s18  ;;  %s415_s20 = scalar_lea.vmem %s5029_s11, %s5147_s18 }
  0x13   : > { %3442 = vmatpush3.bf16.msra.mxu0 %v1591_v14  ;;  %3452 = vmatpush3.bf16.msra.mxu1 %v1691_v20  ;;  %v3811_v23 = vld [vmem:[%s5022_s4 + $0x4] sm:$0x3]  ;;  %v1056_v29 = vld [vmem:[%s5019_s1 + $0x68] sm:$0x1]  ;;  %v1081_v30 = vld [vmem:[%s5019_s1 + $0x130] sm:$0xff] }
  0x14   : > { %v1055_v25 = vld [vmem:[%s5019_s1 + $0x60] sm:$0xff]  ;;  %3543 = vmatprep.subr.msk.bf16.mxu0 %vm1589_vm0, %v3811_v23  ;;  %v439_v32 = vld [vmem:[%s3843_s25 + $0xb0] sm:$0xff]  ;;  %v418_v14 = vld [vmem:[%s3843_s25 + $0x8] sm:$0x1] }
  0x15   : > { %1123 = vperm.xlu1 %3562, %v1045_v5   ;;  %1113 = vperm.xlu0 %3561, %v1043_v6   ;;  %v1079_v31 = vld [vmem:[%s5019_s1 + $0x120] sm:$0xff]  ;;  %v1085_v34 = vld [vmem:[%s5019_s1 + $0x150] sm:$0xff]  ;;  %v1082_v6 = vld [vmem:[%s5019_s1 + $0x138] sm:$0x1] }
  0x16   : > { %v3855_v33 = vld [vmem:[%s5020_s2] ss:$0 sm:$0xff]  ;;  %v435_v36 = vld [vmem:[%s3843_s25 + $0x90] sm:$0xff]  ;;  %v3875_v41 = vld [vmem:[%s5022_s4 + $0x6] sm:$0x3] }
  0x17   : > { %v1083_v35 = vld [vmem:[%s5019_s1 + $0x140] sm:$0xff]  ;;  %v514_v37 = vmul.f32 %v3855_v33, %v439_v32  ;;  %v510_v40 = vmul.f32 %v3855_v33, %v435_v36  ;;  %v1095_v43 = vld [vmem:[%s5019_s1 + $0x1b0] sm:$0xff]  ;;  %3544 = vmatprep.subr.msk.bf16.mxu1 %vm1589_vm0, %v3875_v41  ;;  %v1084_v36 = vld [vmem:[%s5019_s1 + $0x148] sm:$0x1] }
  0x18   : > { %v3868_v38 = vld [vmem:[%s5021_s3] ss:$0 sm:$0xff]  ;;  %v419_v48 = vld [vmem:[%s3843_s25 + $0x10] sm:$0xff] }
  0x19   : > { %1143 = vperm.xlu1 %3562, %v1049_v7   ;;  %1133 = vperm.xlu0 %3561, %v1047_v8   ;;  %v441_v39 = vld [vmem:[%s3843_s25 + $0xc0] sm:$0xff]  ;;  %v3886_v44 = vadd.f32 %v3868_v38, %v514_v37  ;;  %v3891_v47 = vadd.f32 %v3868_v38, %v510_v40  ;;  %v1099_v50 = vld [vmem:[%s5019_s1 + $0x1d0] sm:$0xff]  ;;  %v494_v55 = vmul.f32 %v3855_v33, %v419_v48  ;;  %v1080_v7 = vld [vmem:[%s5019_s1 + $0x128] sm:$0x1] }
  0x1a   : > { %v1097_v42 = vld [vmem:[%s5019_s1 + $0x1c0] sm:$0xff]  ;;  %v516_v45 = vmul.f32 %v3855_v33, %v441_v39  ;;  %v1089_v57 = vld [vmem:[%s5019_s1 + $0x170] sm:$0xff]  ;;  %v424_v40 = vld [vmem:[%s3843_s25 + $0x38] sm:$0x1] }
  0x1b   : > { %v437_v46 = vld [vmem:[%s3843_s25 + $0xa0] sm:$0xff]  ;;  %v725_v51 = vmin.f32 %v3886_v44, 0.0  ;;  %v721_v56 = vmin.f32 %v3891_v47, 0.0  ;;  %v423_v60 = vld [vmem:[%s3843_s25 + $0x30] sm:$0xff]  ;;  %v3922_v1 = vadd.f32 %v3868_v38, %v494_v55  ;;  %v499_v55 = vmul.f32 %v3855_v33, %v424_v40  ;;  %v1088_v40 = vld [vmem:[%s5019_s1 + $0x168] sm:$0x1] }
  0x1c   : > { %v1101_v49 = vld [vmem:[%s5019_s1 + $0x1e0] sm:$0xff]  ;;  %v3902_v52 = vadd.f32 %v3868_v38, %v516_v45  ;;  %v512_v53 = vmul.f32 %v3855_v33, %v437_v46  ;;  %v498_v4 = vmul.f32 %v3855_v33, %v423_v60  ;;  %v443_v5 = vld [vmem:[%s3843_s25 + $0xd0] sm:$0xff]  ;;  %v422_v45 = vld [vmem:[%s3843_s25 + $0x28] sm:$0x1]  ;;  %vm657_vm1 = vcmp.gt.f32.partialorder %v3886_v44, 0.0 }
  0x1d   : > { %1253 = vperm.xlu1 %3562, %v1071_v9   ;;  %1243 = vperm.xlu0 %3561, %v1069_v10   ;;  %v417_v54 = vld [vmem:[%s3843_s25] sm:$0xff]  ;;  %v815_v61 = vmul.f32 1.442695, %v725_v51  ;;  %v807_v3 = vmul.f32 1.442695, %v721_v56  ;;  %v705_v15 = vmin.f32 %v3922_v1, 0.0 }
  0x1e   : > { %v1087_v58 = vld [vmem:[%s5019_s1 + $0x160] sm:$0xff]  ;;  %v492_v59 = vmul.f32 %v3855_v33, %v417_v54  ;;  %v727_v62 = vmin.f32 %v3902_v52, 0.0  ;;  %v3918_v63 = vadd.f32 %v3868_v38, %v512_v53  ;;  %v420_v10 = vld [vmem:[%s3843_s25 + $0x18] sm:$0x1]  ;;  %v1093_v20 = vld [vmem:[%s5019_s1 + $0x190] sm:$0xff]  ;;  %vm653_vm2 = vcmp.gt.f32.partialorder %v3891_v47, 0.0 }
  0x1f   : > { %v421_v0 = vld [vmem:[%s3843_s25 + $0x20] sm:$0xff]  ;;  %3563 = vpow2.f32 %v815_v61  ;;  %v3993_v51 = vld [vmem:[%s3843_s25 + $0x1d0] sm:$0xff]  ;;  %v497_v61 = vmul.f32 %v3855_v33, %v422_v45  ;;  %vm659_vm3 = vcmp.gt.f32.partialorder %v3902_v52, 0.0  ;;  %vm637_vm5 = vcmp.gt.f32.partialorder %v3922_v1, 0.0 }
  0x20   : > { %v445_v2 = vld [vmem:[%s3843_s25 + $0xe0] sm:$0xff]  ;;  %v3934_v8 = vadd.f32 %v3868_v38, %v492_v59  ;;  %v496_v9 = vmul.f32 %v3855_v33, %v421_v0  ;;  %3565 = vpow2.f32 %v807_v3  ;;  %5062 = vst [vmem:[#allocation3_spill] sm:$0xff] %v3993_v51  ;;  %v427_v0 = vld [vmem:[%s3843_s25 + $0x50] sm:$0xff]  ;;  %vm655_vm4 = vcmp.gt.f32.partialorder %v3918_v63, 0.0 }
  0x21   : > { %1128 = vperm.xlu1 %3562, %v1046_v11   ;;  %1118 = vperm.xlu0 %3561, %v1044_v12   ;;  %v819_v11 = vmul.f32 1.442695, %v727_v62  ;;  %v723_v12 = vmin.f32 %v3918_v63, 0.0  ;;  %v520_v13 = vmul.f32 %v3855_v33, %v445_v2 }
  0x22   : > { %vm635_vm6 = vcmp.gt.f32.partialorder %v3934_v8, 0.0 }
  0x23   : > { %3567 = vpow2.f32 %v819_v11 }
  0x25   : > { %1273 = vperm.xlu1 %3562, %v1075_v16   ;;  %1263 = vperm.xlu0 %3561, %v1073_v17   ;;  %v518_v16 = vmul.f32 %v3855_v33, %v443_v5  ;;  %v3944_v17 = vadd.f32 %v3868_v38, %v498_v4 }
  0x27   : > { %v709_v32 = vmin.f32 %v3944_v17, 0.0  ;;  %vm641_vm7 = vcmp.gt.f32.partialorder %v3944_v17, 0.0 }
  0x29   : > { %1148 = vperm.xlu1 %3562, %v1050_v18   ;;  %1138 = vperm.xlu0 %3561, %v1048_v19   ;;  %v495_v18 = vmul.f32 %v3855_v33, %v420_v10  ;;  %v449_v19 = vld [vmem:[%s3843_s25 + $0x100] sm:$0xff]  ;;  %v783_v53 = vmul.f32 1.442695, %v709_v32  ;;  %v431_v10 = vld [vmem:[%s3843_s25 + $0x70] sm:$0xff] }
  0x2c   : > { %v3564_v2 = vpop.eup %3563 }
  0x2d   : > { %1163 = vperm.xlu1 %3562, %v1053_v21   ;;  %1153 = vperm.xlu0 %3561, %v1051_v22   ;;  %v1091_v21 = vld [vmem:[%s5019_s1 + $0x180] sm:$0xff]  ;;  %v3955_v22 = vadd.f32 %v3868_v38, %v496_v9  ;;  %v4016_v9 = vadd.f32 %v3868_v38, %v499_v55  ;;  %v3566_v11 = vpop.eup %3565 }
  0x2e   : > { %v3120_v32 = vadd.f32 -1.0, %v3566_v11 }
  0x2f   : > { %v707_v37 = vmin.f32 %v3955_v22, 0.0  ;;  %vm639_vm8 = vcmp.gt.f32.partialorder %v3955_v22, 0.0  ;;  %vm642_vm15 = vcmp.gt.f32.partialorder %v4016_v9, 0.0 }
  0x31   : > { %1183 = vperm.xlu1 %3562, %v1057_v24   ;;  %1173 = vperm.xlu0 %3561, %v1055_v25   ;;  %v493_v24 = vmul.f32 %v3855_v33, %v418_v14  ;;  %v811_v25 = vmul.f32 1.442695, %v723_v12  ;;  %v779_v59 = vmul.f32 1.442695, %v707_v37  ;;  %v1109_v12 = vld [vmem:[%s5019_s1 + $0x220] sm:$0xff] }
  0x32   : > { %v432_v37 = vld [vmem:[%s3843_s25 + $0x78] sm:$0x1] }
  0x33   : > { %v3979_v39 = vadd.f32 %v3868_v38, %v493_v24  ;;  %3569 = vpow2.f32 %v811_v25  ;;  %v3568_v24 = vpop.eup %3567 }
  0x35   : > { %1168 = vperm.xlu1 %3562, %v1054_v26   ;;  %1158 = vperm.xlu0 %3561, %v1052_v27   ;;  %v703_v26 = vmin.f32 %v3934_v8, 0.0  ;;  %v3960_v27 = vadd.f32 %v3868_v38, %v520_v13  ;;  %v704_v60 = vmin.f32 %v3979_v39, 0.0  ;;  %v1107_v13 = vld [vmem:[%s5019_s1 + $0x210] sm:$0xff]  ;;  %vm636_vm12 = vcmp.gt.f32.partialorder %v3979_v39, 0.0 }
  0x37   : > { %v773_v14 = vmul.f32 1.442695, %v704_v60  ;;  %vm663_vm9 = vcmp.gt.f32.partialorder %v3960_v27, 0.0 }
  0x39   : > { %1188 = vperm.xlu1 %3562, %v1058_v28   ;;  %1178 = vperm.xlu0 %3561, %v1056_v29   ;;  %v775_v28 = vmul.f32 1.442695, %v705_v15  ;;  %v3963_v29 = vadd.f32 %v3868_v38, %v518_v16  ;;  %v4026_v15 = vadd.f32 %v3868_v38, %v497_v61  ;;  %v502_v16 = vmul.f32 %v3855_v33, %v427_v0 }
  0x3a   : > { %v507_v61 = vmul.f32 %v3855_v33, %v432_v37 }
  0x3b   : > { %3571 = vpow2.f32 %v775_v28  ;;  %v729_v46 = vmin.f32 %v3963_v29, 0.0  ;;  %v506_v28 = vmul.f32 %v3855_v33, %v431_v10  ;;  %vm661_vm10 = vcmp.gt.f32.partialorder %v3963_v29, 0.0 }
  0x3d   : > { %1303 = vperm.xlu1 %3562, %v1081_v30   ;;  %1293 = vperm.xlu0 %3561, %v1079_v31   ;;  %v524_v30 = vmul.f32 %v3855_v33, %v449_v19  ;;  %v1086_v31 = vld [vmem:[%s5019_s1 + $0x158] sm:$0x1]  ;;  %v823_v3 = vmul.f32 1.442695, %v729_v46  ;;  %v3124_v19 = vadd.f32 -1.0, %v3564_v2  ;;  %v4064_v60 = vadd.f32 %v3868_v38, %v506_v28 }
  0x3e   : > { %v430_v46 = vld [vmem:[%s3843_s25 + $0x68] sm:$0x1]  ;;  %v4074_v2 = vsel %vm653_vm2, %v3891_v47, %v3120_v32 }
  0x3f   : > { %v3986_v48 = vadd.f32 %v3868_v38, %v524_v30  ;;  %v426_v30 = vld [vmem:[%s3843_s25 + $0x48] sm:$0x1] }
  0x40   : > { %v501_v55 = vmul.f32 %v3855_v33, %v426_v30  ;;  %v1060_v32 = vld [vmem:[%s5019_s1 + $0x88] sm:$0x1] }
  0x41   : > { %1323 = vperm.xlu1 %3562, %v1085_v34   ;;  %1313 = vperm.xlu0 %3561, %v1083_v35   ;;  %v3971_v34 = vadd.f32 %v3868_v38, %v495_v18  ;;  %v447_v35 = vld [vmem:[%s3843_s25 + $0xf0] sm:$0xff]  ;;  %v735_v4 = vmin.f32 %v3986_v48, 0.0  ;;  %v429_v18 = vld [vmem:[%s3843_s25 + $0x60] sm:$0xff]  ;;  %vm667_vm13 = vcmp.gt.f32.partialorder %v3986_v48, 0.0 }
  0x43   : > { %v706_v54 = vmin.f32 %v3971_v34, 0.0  ;;  %v835_v25 = vmul.f32 1.442695, %v735_v4  ;;  %vm638_vm11 = vcmp.gt.f32.partialorder %v3971_v34, 0.0 }
  0x45   : > { %1383 = vperm.xlu1 %3562, %v1097_v42   ;;  %1373 = vperm.xlu0 %3561, %v1095_v43   ;;  %v771_v42 = vmul.f32 1.442695, %v703_v26  ;;  %v731_v43 = vmin.f32 %v3960_v27, 0.0 }
  0x47   : > { %v827_v62 = vmul.f32 1.442695, %v731_v43  ;;  %3573 = vpow2.f32 %v771_v42  ;;  %v708_v42 = vmin.f32 %v4026_v15, 0.0  ;;  %v4049_v43 = vadd.f32 %v3868_v38, %v502_v16 }
  0x48   : > { %3575 = vpow2.f32 %v783_v53  ;;  %v3126_v53 = vadd.f32 -1.0, %v3568_v24  ;;  %v4091_v16 = vadd.f32 %v3868_v38, %v501_v55  ;;  %v459_v24 = vld [vmem:[%s3843_s25 + $0x150] sm:$0xff] }
  0x49   : > { %1403 = vperm.xlu1 %3562, %v1101_v49   ;;  %1393 = vperm.xlu0 %3561, %v1099_v50   ;;  %v522_v49 = vmul.f32 %v3855_v33, %v447_v35  ;;  %v3990_v50 = vld [vmem:[%s3843_s25 + $0x1e0] sm:$0xff]  ;;  %3577 = vpow2.f32 %v779_v59  ;;  %v710_v35 = vmin.f32 %v4016_v9, 0.0  ;;  %v781_v10 = vmul.f32 1.442695, %v708_v42 }
  0x4a   : > { %5061 = vst [vmem:[#allocation2_spill] sm:$0xff] %v3990_v50  ;;  %3579 = vpow2.f32 %v827_v62  ;;  %v453_v62 = vld [vmem:[%s3843_s25 + $0x120] sm:$0xff]  ;;  %v713_v11 = vmin.f32 %v4049_v43, 0.0  ;;  %v534_v55 = vmul.f32 %v3855_v33, %v459_v24  ;;  %vm645_vm2 = vcmp.gt.f32.partialorder %v4049_v43, 0.0 }
  0x4b   : > { %v4011_v5 = vadd.f32 %v3868_v38, %v522_v49  ;;  %3581 = vpow2.f32 %v823_v3  ;;  %v4056_v49 = vsel %vm657_vm1, %v3886_v44, %v3124_v19  ;;  %v1094_v44 = vld [vmem:[%s5019_s1 + $0x198] sm:$0x1]  ;;  %v785_v3 = vmul.f32 1.442695, %v710_v35  ;;  %v1059_v35 = vld [vmem:[%s5019_s1 + $0x80] sm:$0xff] }
  0x4c   : > { %v4097_v19 = vsel %vm659_vm3, %v3902_v52, %v3126_v53  ;;  %v457_v52 = vld [vmem:[%s3843_s25 + $0x140] sm:$0xff]  ;;  %vm640_vm1 = vcmp.gt.f32.partialorder %v4026_v15, 0.0 }
  0x4d   : > { %1343 = vperm.xlu1 %3562, %v1089_v57   ;;  %1333 = vperm.xlu0 %3561, %v1087_v58   ;;  %v1105_v57 = vld [vmem:[%s5019_s1 + $0x200] sm:$0xff]  ;;  %v1103_v58 = vld [vmem:[%s5019_s1 + $0x1f0] sm:$0xff]  ;;  %v733_v26 = vmin.f32 %v4011_v5, 0.0  ;;  %vm665_vm14 = vcmp.gt.f32.partialorder %v4011_v5, 0.0 }
  0x4f   : > { %v831_v59 = vmul.f32 1.442695, %v733_v26 }
  0x51   : > { %1308 = vperm.xlu1 %3562, %v1082_v6   ;;  %1298 = vperm.xlu0 %3561, %v1080_v7   ;;  %v425_v6 = vld [vmem:[%s3843_s25 + $0x40] sm:$0xff]  ;;  %v777_v7 = vmul.f32 1.442695, %v706_v54 }
  0x53   : > { %3583 = vpow2.f32 %v777_v7  ;;  %v1092_v7 = vld [vmem:[%s5019_s1 + $0x188] sm:$0x1] }
  0x54   : > { %3585 = vpow2.f32 %v773_v14 }
  0x55   : > { %1363 = vperm.xlu1 %3562, %v1093_v20   ;;  %1353 = vperm.xlu0 %3561, %v1091_v21   ;;  %v500_v20 = vmul.f32 %v3855_v33, %v425_v6  ;;  %v428_v21 = vld [vmem:[%s3843_s25 + $0x58] sm:$0x1]  ;;  %3587 = vpow2.f32 %v835_v25  ;;  %v505_v6 = vmul.f32 %v3855_v33, %v430_v46  ;;  %v712_v46 = vmin.f32 %v4091_v16, 0.0 }
  0x56   : > { %v503_v45 = vmul.f32 %v3855_v33, %v428_v21  ;;  %3589 = vpow2.f32 %v831_v59  ;;  %v4101_v21 = vadd.f32 %v3868_v38, %v507_v61 }
  0x57   : > { %v4059_v54 = vadd.f32 %v3868_v38, %v500_v20  ;;  %v717_v20 = vmin.f32 %v4064_v60, 0.0  ;;  %3591 = vpow2.f32 %v785_v3  ;;  %v4106_v30 = vadd.f32 %v3868_v38, %v505_v6 }
  0x58   : > { %3593 = vpow2.f32 %v781_v10  ;;  %v4144_v10 = vld [vmem:[%s3843_s25 + $0x1b0] sm:$0xff] }
  0x59   : > { %1328 = vperm.xlu1 %3562, %v1086_v31   ;;  %1318 = vperm.xlu0 %3561, %v1084_v36   ;;  %v1090_v31 = vld [vmem:[%s5019_s1 + $0x178] sm:$0x1]  ;;  %v504_v36 = vmul.f32 %v3855_v33, %v429_v18  ;;  %v711_v14 = vmin.f32 %v4059_v54, 0.0  ;;  %v528_v18 = vmul.f32 %v3855_v33, %v453_v62  ;;  %v799_v61 = vmul.f32 1.442695, %v717_v20  ;;  %5064 = vst [vmem:[#allocation5_spill] sm:$0xff] %v4144_v10 }
  0x5a   : > { %v718_v62 = vmin.f32 %v4101_v21, 0.0  ;;  %v789_v20 = vmul.f32 1.442695, %v712_v46  ;;  %vm643_vm3 = vcmp.gt.f32.partialorder %v4059_v54, 0.0 }
  0x5b   : > { %v4077_v4 = vadd.f32 %v3868_v38, %v504_v36  ;;  %v791_v36 = vmul.f32 1.442695, %v713_v11  ;;  %v4123_v53 = vadd.f32 %v3868_v38, %v528_v18 }
  0x5d   : > { %1423 = vperm.xlu1 %3562, %v1105_v57   ;;  %1413 = vperm.xlu0 %3561, %v1103_v58   ;;  %v455_v57 = vld [vmem:[%s3843_s25 + $0x130] sm:$0xff]  ;;  %v3570_v58 = vpop.eup %3569  ;;  %v715_v28 = vmin.f32 %v4077_v4, 0.0  ;;  %3595 = vpow2.f32 %v791_v36  ;;  %v739_v24 = vmin.f32 %v4123_v53, 0.0 }
  0x5e   : > { %v3572_v0 = vpop.eup %3571  ;;  %v530_v47 = vmul.f32 %v3855_v33, %v455_v57  ;;  %v4127_v57 = vld [vmem:[%s3843_s25 + $0x1c0] sm:$0xff] }
  0x5f   : > { %v3574_v25 = vpop.eup %3573  ;;  %v3104_v26 = vadd.f32 -1.0, %v3572_v0  ;;  %5063 = vst [vmem:[#allocation4_spill] sm:$0xff] %v4127_v57  ;;  %v532_v0 = vmul.f32 %v3855_v33, %v457_v52  ;;  %v544_v52 = vmul.f32 %v3855_v33, %v4144_v10 }
  0x60   : > { %v3102_v6 = vadd.f32 -1.0, %v3574_v25  ;;  %v4155_v25 = vadd.f32 %v3868_v38, %v534_v55 }
  0x61   : > { %1443 = vperm.xlu1 %3562, %v1109_v12   ;;  %1433 = vperm.xlu0 %3561, %v1107_v13   ;;  %v4086_v12 = vadd.f32 %v3868_v38, %v503_v45  ;;  %v3122_v13 = vadd.f32 -1.0, %v3570_v58  ;;  %v787_v45 = vmul.f32 1.442695, %v711_v14  ;;  %v4140_v3 = vsel %vm637_vm5, %v3922_v1, %v3104_v26 }
  0x62   : > { %v546_v1 = vmul.f32 %v3855_v33, %v4127_v57  ;;  %v801_v26 = vmul.f32 1.442695, %v718_v62  ;;  %v4179_v62 = vadd.f32 %v3868_v38, %v544_v52  ;;  %vm647_vm5 = vcmp.gt.f32.partialorder %v4077_v4, 0.0 }
  0x63   : > { %v714_v37 = vmin.f32 %v4086_v12, 0.0  ;;  %v4132_v59 = vsel %vm655_vm4, %v3918_v63, %v3122_v13  ;;  %v716_v63 = vmin.f32 %v4106_v30, 0.0  ;;  %3597 = vpow2.f32 %v787_v45 }
  0x64   : > { %3599 = vpow2.f32 %v799_v61  ;;  %v4173_v55 = vadd.f32 %v3868_v38, %v546_v1  ;;  %v755_v52 = vmin.f32 %v4179_v62, 0.0  ;;  %vm649_vm4 = vcmp.gt.f32.partialorder %v4064_v60, 0.0 }
  0x65   : > { %1348 = vperm.xlu1 %3562, %v1090_v31   ;;  %1338 = vperm.xlu0 %3561, %v1088_v40   ;;  %v3576_v31 = vpop.eup %3575  ;;  %v4118_v40 = vadd.f32 %v3868_v38, %v530_v47  ;;  %v1077_v47 = vld [vmem:[%s5019_s1 + $0x110] sm:$0xff]  ;;  %v793_v13 = vmul.f32 1.442695, %v714_v37  ;;  %v797_v37 = vmul.f32 1.442695, %v716_v63  ;;  %v4190_v63 = vsel %vm1589_vm0, %v3811_v23, 0 }
  0x66   : > { %v3578_v42 = vpop.eup %3577  ;;  %v3108_v36 = vadd.f32 -1.0, %v3576_v31  ;;  %v745_v31 = vmin.f32 %v4155_v25, 0.0 }
  0x67   : > { %v3580_v58 = vpop.eup %3579  ;;  %v741_v14 = vmin.f32 %v4118_v40, 0.0  ;;  %v3106_v45 = vadd.f32 -1.0, %v3578_v42 }
  0x68   : > { %v3130_v61 = vadd.f32 -1.0, %v3580_v58  ;;  %v4186_v58 = vsel %vm641_vm7, %v3944_v17, %v3108_v36  ;;  %v548_v17 = vmul.f32 %v3855_v33, %v3993_v51  ;;  %vm644_vm7 = vcmp.gt.f32.partialorder %v4091_v16, 0.0 }
  0x69   : > { %1368 = vperm.xlu1 %3562, %v1094_v44   ;;  %1358 = vperm.xlu0 %3561, %v1092_v7   ;;  %v3582_v44 = vpop.eup %3581  ;;  %v795_v7 = vmul.f32 1.442695, %v715_v28  ;;  %v4159_v28 = vadd.f32 %v3868_v38, %v532_v0  ;;  %v847_v46 = vmul.f32 1.442695, %v741_v14  ;;  %v550_v0 = vmul.f32 %v3855_v33, %v3990_v50 }
  0x6a   : > { %v3584_v11 = vpop.eup %3583  ;;  %v757_v14 = vmin.f32 %v4173_v55, 0.0  ;;  %v4203_v23 = vsel %vm663_vm9, %v3960_v27, %v3130_v61  ;;  %v4221_v61 = vadd.f32 %v3868_v38, %v548_v17  ;;  %vm648_vm9 = vcmp.gt.f32.partialorder %v4106_v30, 0.0 }
  0x6b   : > { %v3586_v18 = vpop.eup %3585  ;;  %3601 = vpow2.f32 %v795_v7  ;;  %v743_v42 = vmin.f32 %v4159_v28, 0.0  ;;  %v3128_v7 = vadd.f32 -1.0, %v3582_v44  ;;  %v3105_v44 = vadd.f32 -1.0, %v3584_v11 }
  0x6c   : > { %3603 = vpow2.f32 %v793_v13  ;;  %v4195_v13 = vsel %vm639_vm8, %v3955_v22, %v3106_v45  ;;  %v463_v22 = vld [vmem:[%s3843_s25 + $0x170] sm:$0xff]  ;;  %v4210_v36 = vadd.f32 %v3868_v38, %v550_v0  ;;  %vm650_vm8 = vcmp.gt.f32.partialorder %v4101_v21, 0.0 }
  0x6d   : > { %1198 = vperm.xlu1 %3562, %v1060_v32   ;;  %1193 = vperm.xlu0 %3561, %v1059_v35   ;;  %v3588_v32 = vpop.eup %3587  ;;  %v4166_v35 = vsel %vm635_vm6, %v3934_v8, %v3102_v6  ;;  %3605 = vpow2.f32 %v789_v20  ;;  %v843_v8 = vmul.f32 1.442695, %v739_v24  ;;  %v855_v20 = vmul.f32 1.442695, %v745_v31 }
  0x6e   : > { %3607 = vpow2.f32 %v801_v26  ;;  %v3590_v6 = vpop.eup %3589  ;;  %v3103_v24 = vadd.f32 -1.0, %v3586_v18  ;;  %v851_v26 = vmul.f32 1.442695, %v743_v42  ;;  %v4216_v27 = vsel %vm661_vm10, %v3963_v29, %v3128_v7 }
  0x6f   : > { %3609 = vpow2.f32 %v797_v37  ;;  %v461_v37 = vld [vmem:[%s3843_s25 + $0x160] sm:$0xff]  ;;  %v3134_v11 = vadd.f32 -1.0, %v3588_v32  ;;  %v3132_v45 = vadd.f32 -1.0, %v3590_v6  ;;  %v879_v18 = vmul.f32 1.442695, %v757_v14 }
  0x70   : > { %3611 = vpow2.f32 %v847_v46  ;;  %v4227_v29 = vsel %vm638_vm11, %v3971_v34, %v3105_v44  ;;  %v536_v42 = vmul.f32 %v3855_v33, %v461_v37  ;;  %v4233_v6 = vsel %vm636_vm12, %v3979_v39, %v3103_v24  ;;  %v456_v14 = vld [vmem:[%s3843_s25 + $0x138] sm:$0x1]  ;;  %v454_v44 = vld [vmem:[%s3843_s25 + $0x128] sm:$0x1] }
  0x71   : > { %1283 = vperm.xlu0 %3561, %v1077_v47   ;;  %v3592_v47 = vpop.eup %3591  ;;  %3613 = vpow2.f32 %v843_v8  ;;  %v538_v8 = vmul.f32 %v3855_v33, %v463_v22  ;;  %v875_v7 = vmul.f32 1.442695, %v755_v52  ;;  %v4240_v34 = vsel %vm667_vm13, %v3986_v48, %v3134_v11  ;;  %v467_v11 = vld [vmem:[%s3843_s25 + $0x190] sm:$0xff] }
  0x72   : > { %v3594_v1 = vpop.eup %3593  ;;  %v3109_v46 = vadd.f32 -1.0, %v3592_v47  ;;  %3615 = vpow2.f32 %v855_v20  ;;  %v761_v47 = vmin.f32 %v4210_v36, 0.0  ;;  %vm646_vm6 = vcmp.gt.f32.partialorder %v4086_v12, 0.0 }
  0x73   : > { %v3596_v31 = vpop.eup %3595  ;;  %v3107_v32 = vadd.f32 -1.0, %v3594_v1  ;;  %3617 = vpow2.f32 %v851_v26  ;;  %v4245_v1 = vsel %vm665_vm14, %v4011_v5, %v3132_v45  ;;  %v759_v48 = vmin.f32 %v4221_v61, 0.0 }
  0x74   : > { %v3598_v0 = vpop.eup %3597  ;;  %v4250_v39 = vsel %vm642_vm15, %v4016_v9, %v3109_v46  ;;  %v3112_v22 = vadd.f32 -1.0, %v3596_v31  ;;  %3619 = vpow2.f32 %v879_v18  ;;  %v4258_v5 = vadd.f32 %v3868_v38, %v538_v8 }
  0x75   : > { %v3600_v17 = vpop.eup %3599  ;;  %v4263_v9 = vsel %vm640_vm1, %v4026_v15, %v3107_v32  ;;  %v3110_v26 = vadd.f32 -1.0, %v3598_v0  ;;  %vm673_vm10 = vcmp.gt.f32.partialorder %v4118_v40, 0.0  ;;  %v4268_v52 = vadd.f32 %v3868_v38, %v536_v42  ;;  %v465_v0 = vld [vmem:[%s3843_s25 + $0x180] sm:$0xff] }
  0x76   : > { %v531_v37 = vmul.f32 %v3855_v33, %v456_v14  ;;  %v3116_v46 = vadd.f32 -1.0, %v3600_v17  ;;  %3621 = vpow2.f32 %v875_v7  ;;  %v887_v18 = vmul.f32 1.442695, %v761_v47 }
  0x77   : > { %v529_v8 = vmul.f32 %v3855_v33, %v454_v44  ;;  %vm671_vm11 = vcmp.gt.f32.partialorder %v4123_v53, 0.0  ;;  %v4276_v32 = vsel %vm1589_vm0, %v3875_v41, 0  ;;  %v4284_v7 = vsel %vm645_vm2, %v4049_v43, %v3112_v22 }
  0x78   : > { %v3602_v20 = vpop.eup %3601  ;;  %v883_v47 = vmul.f32 1.442695, %v759_v48  ;;  %v749_v17 = vmin.f32 %v4258_v5, 0.0  ;;  %v542_v44 = vmul.f32 %v3855_v33, %v467_v11  ;;  %v4291_v41 = vsel %vm643_vm3, %v4059_v54, %v3110_v26 }
  0x79   : > { %v3604_v24 = vpop.eup %3603  ;;  %v3114_v31 = vadd.f32 -1.0, %v3602_v20  ;;  %v747_v42 = vmin.f32 %v4268_v52, 0.0  ;;  %v4295_v51 = vadd.f32 %v3868_v38, %v531_v37  ;;  %v4300_v22 = vsel %vm649_vm4, %v4064_v60, %v3116_v46  ;;  %v460_v60 = vld [vmem:[%s3843_s25 + $0x158] sm:$0x1] }
  0x7a   : > { %v3606_v45 = vpop.eup %3605  ;;  %v3113_v56 = vadd.f32 -1.0, %v3604_v24  ;;  %vm677_vm12 = vcmp.gt.f32.partialorder %v4155_v25, 0.0  ;;  %3623 = vpow2.f32 %v887_v18  ;;  %v4304_v48 = vadd.f32 %v3868_v38, %v529_v8  ;;  %v4317_v18 = vld [vmem:[%s5022_s4 + $0x8] sm:$0x3] }
  0x7b   : > { %v3608_v15 = vpop.eup %3607  ;;  %5065 = vst [vmem:[#allocation6_spill] sm:$0xff] %v4295_v51  ;;  %v540_v54 = vmul.f32 %v3855_v33, %v465_v0  ;;  %v4310_v24 = vsel %vm647_vm5, %v4077_v4, %v3114_v31  ;;  %v3111_v26 = vadd.f32 -1.0, %v3606_v45  ;;  %vm1576_vm13 = vcmask 31744  }
  0x7c   : > { %v3610_v14 = vpop.eup %3609  ;;  %5066 = vst [vmem:[#allocation7_spill] sm:$0xff] %v4304_v48  ;;  %v3117_v37 = vadd.f32 -1.0, %v3608_v15  ;;  %vm675_vm14 = vcmp.gt.f32.partialorder %v4159_v28, 0.0  ;;  %3625 = vpow2.f32 %v883_v47  ;;  %v863_v8 = vmul.f32 1.442695, %v749_v17  ;;  %v4333_v47 = vld [vmem:[%s3843_s25 + $0x1f0] sm:$0xff] }
  0x7d   : > { %v3612_v20 = vpop.eup %3611  ;;  %v3115_v11 = vadd.f32 -1.0, %v3610_v14  ;;  %v4320_v4 = vadd.f32 %v3868_v38, %v542_v44  ;;  %v4325_v45 = vsel %vm646_vm6, %v4086_v12, %v3113_v56  ;;  %vm689_vm15 = vcmp.gt.f32.partialorder %v4173_v55, 0.0  ;;  %v4330_v14 = vld [vmem:[%s3843_s25 + $0x200] sm:$0xff]  ;;  %5069 = vst [vmem:[#allocation10_spill] sm:$0xff] %v4333_v47 }
  0x7e   : > { %v3614_v43 = vpop.eup %3613  ;;  %v3140_v46 = vadd.f32 -1.0, %v3612_v20  ;;  %5067 = vst [vmem:[#allocation8_spill] sm:$0xff] %v4325_v45  ;;  %v859_v31 = vmul.f32 1.442695, %v747_v42  ;;  %v742_v0 = vmin.f32 %v4295_v51, 0.0  ;;  %5068 = vst [vmem:[#allocation9_spill] sm:$0xff] %v4330_v14  ;;  %v4337_v10 = vadd.f32 %v3868_v38, %v540_v54 }
  0x7f   : > { %v3138_v15 = vadd.f32 -1.0, %v3614_v43  ;;  %v3616_v17 = vpop.eup %3615  ;;  %v740_v44 = vmin.f32 %v4304_v48, 0.0  ;;  %v535_v56 = vmul.f32 %v3855_v33, %v460_v60  ;;  %v4341_v12 = vld [vmem:[%s3843_s25 + $0x220] sm:$0xff]  ;;  %v4344_v43 = vld [vmem:[%s3843_s25 + $0x210] sm:$0xff]  ;;  %v4351_v51 = vsel %vm644_vm7, %v4091_v16, %v3111_v26 }
  0x80   : > { %5070 = vst [vmem:[#allocation11_spill] sm:$0xff] %v4341_v12  ;;  %5071 = vst [vmem:[#allocation12_spill] sm:$0xff] %v4344_v43  ;;  %v3618_v57 = vpop.eup %3617  ;;  %v4356_v54 = vsel %vm650_vm8, %v4101_v21, %v3117_v37  ;;  %vm687_vm1 = vcmp.gt.f32.partialorder %v4179_v62, 0.0  ;;  %v4361_v60 = vsel %vm1589_vm0, %v4317_v18, 0  ;;  %v4368_v48 = vsel %vm648_vm9, %v4106_v30, %v3115_v11 }
  0x81   : > { %5072 = vst [vmem:[#allocation13_spill] sm:$0xff] %v4351_v51  ;;  %5073 = vst [vmem:[#allocation14_spill] sm:$0xff] %v4356_v54  ;;  %v4373_v16 = vsel %vm673_vm10, %v4118_v40, %v3140_v46  ;;  %3627 = vpow2.f32 %v863_v8  ;;  %v753_v21 = vmin.f32 %v4320_v4, 0.0  ;;  %v3620_v26 = vpop.eup %3619  ;;  %v4379_v37 = vsel %vm671_vm11, %v4123_v53, %v3138_v15  ;;  %v458_v51 = vld [vmem:[%s3843_s25 + $0x148] sm:$0x1] }
  0x82   : > { %5074 = vst [vmem:[#allocation15_spill] sm:$0xff] %v4368_v48  ;;  %5075 = vst [vmem:[#allocation16_spill] sm:$0xff] %v4373_v16  ;;  %v3144_v42 = vadd.f32 -1.0, %v3616_v17  ;;  %3629 = vpow2.f32 %v859_v31  ;;  %v849_v54 = vmul.f32 1.442695, %v742_v0  ;;  %v3142_v48 = vadd.f32 -1.0, %v3618_v57 }
  0x83   : > { %v845_v45 = vmul.f32 1.442695, %v740_v44  ;;  %v751_v40 = vmin.f32 %v4337_v10, 0.0  ;;  %v4384_v46 = vadd.f32 %v3868_v38, %v535_v56  ;;  %v3622_v8 = vpop.eup %3621  ;;  %v3156_v0 = vadd.f32 -1.0, %v3620_v26 }
  0x84   : > { %vm693_vm2 = vcmp.gt.f32.partialorder %v4210_v36, 0.0  ;;  %v871_v57 = vmul.f32 1.442695, %v753_v21  ;;  %v533_v17 = vmul.f32 %v3855_v33, %v458_v51  ;;  %v554_v44 = vmul.f32 %v3855_v33, %v4330_v14 }
  0x85   : > { %vm691_vm3 = vcmp.gt.f32.partialorder %v4221_v61, 0.0  ;;  %3631 = vpow2.f32 %v849_v54  ;;  %v867_v56 = vmul.f32 1.442695, %v751_v40  ;;  %v746_v21 = vmin.f32 %v4384_v46, 0.0 }
  0x86   : > { %3633 = vpow2.f32 %v845_v45  ;;  %vm1782_vm4 = vsmask.f32 3328  ;;  %vm1783_vm5 = vsmask.f32 7440  ;;  %vm681_vm6 = vcmp.gt.f32.partialorder %v4258_v5, 0.0 }
  0x87   : > { %v3624_v26 = vpop.eup %3623  ;;  %3635 = vpow2.f32 %v871_v57  ;;  %v857_v57 = vmul.f32 1.442695, %v746_v21  ;;  %v3246_v21 = vld [vmem:[%s5022_s4 + $0xa] sm:$0x3]  ;;  %vm679_vm7 = vcmp.gt.f32.partialorder %v4268_v52, 0.0  ;;  %vm4548_vm8 = vmor %vm1782_vm4, %vm1783_vm5  ;;  %vm685_vm11 = vcmp.gt.f32.partialorder %v4320_v4, 0.0 }
  0x88   : > { %v1224_v20 = vpop.permute.xlu1 %1223  ;;  %v1204_v50 = vpop.permute.xlu0 %1203  ;;  %3637 = vpow2.f32 %v867_v56 }
  0x89   : > { %v4387_v16 = vmul.f32 %v1224_v20, %v4056_v49  ;;  %v1469_v53 = vmul.f32 %v1204_v50, %v4074_v2  ;;  %v3154_v20 = vadd.f32 -1.0, %v3622_v8  ;;  %v3626_v54 = vpop.eup %3625  ;;  %3639 = vpow2.f32 %v857_v57 }
  0x8b   : > { %5076 = vst [vmem:[#allocation17_spill] sm:$0xff] %v4387_v16 }
  0x8c   : > { %v1234_v30 = vpop.permute.xlu1 %1233  ;;  %v1214_v11 = vpop.permute.xlu0 %1213 }
  0x8d   : > { %v4391_v15 = vmul.f32 %v1234_v30, %v4097_v19  ;;  %v4394_v31 = vmul.f32 %v1214_v11, %v4132_v59  ;;  %v4408_v19 = vsel %vm677_vm12, %v4155_v25, %v3144_v42  ;;  %v4420_v25 = vsel %vm675_vm14, %v4159_v28, %v3142_v48 }
  0x8e   : > { %v4426_v42 = vsel %vm689_vm15, %v4173_v55, %v3156_v0  ;;  %v552_v55 = vmul.f32 %v3855_v33, %v4333_v47  ;;  %v3160_v0 = vadd.f32 -1.0, %v3624_v26  ;;  %vm683_vm12 = vcmp.gt.f32.partialorder %v4337_v10, 0.0 }
  0x8f   : > { %5077 = vst [vmem:[#allocation18_spill] sm:$0xff] %v4391_v15  ;;  %5078 = vst [vmem:[#allocation19_spill] sm:$0xff] %v4394_v31  ;;  %v3303_v49 = vpack.c.bf16 %v4391_v15, %v4387_v16  ;;  %v3302_v2 = vpack.c.bf16 %v4394_v31, %v1469_v53  ;;  %v4443_v53 = vsel %vm687_vm1, %v4179_v62, %v3154_v20  ;;  %v3158_v62 = vadd.f32 -1.0, %v3626_v54  ;;  %v4455_v20 = vpop.eup %3627 }
  0x90   : > { %v1124_v59 = vpop.permute.xlu1 %1123  ;;  %v1114_v51 = vpop.permute.xlu0 %1113  ;;  %vm678_vm14 = vcmp.gt.f32.partialorder %v4384_v46, 0.0 }
  0x91   : > { %v4413_v30 = vmul.f32 %v1124_v59, %v4140_v3  ;;  %v1451_v11 = vmul.f32 %v1114_v51, %v4166_v35  ;;  %3443 = vmatprep.mubr.msk.bf16.mxu0 %vm1576_vm13, %v3302_v2  ;;  %v4429_v3 = vadd.f32 %v3868_v38, %v533_v17  ;;  %v4432_v35 = vadd.f32 %v3868_v38, %v554_v44 }
  0x92   : > { %3444 = vmatmul.mubr.msk.bf16.vlgmr.msra.gmra.mxu0 %vm1576_vm13, %v3303_v49 }
  0x93   : > { %5079 = vst [vmem:[#allocation20_spill] sm:$0xff] %v4413_v30  ;;  %v3312_v28 = vpack.c.bf16 %v4413_v30, %v4413_v30  ;;  %v3310_v48 = vpack.c.bf16 %v1451_v11, %v1451_v11  ;;  %v3306_v45 = vpack.c.bf16 %v4413_v30, %v1451_v11  ;;  %3462 = vmatpush3.bf16.msra.mxu0 %v4190_v63  ;;  %v744_v51 = vmin.f32 %v4429_v3, 0.0 }
  0x94   : > { %v1144_v40 = vpop.permute.xlu1 %1143  ;;  %v1134_v8 = vpop.permute.xlu0 %1133  ;;  %3545 = vmatprep.subr.msk.bf16.mxu0 %vm1589_vm0, %v4317_v18  ;;  %v765_v26 = vmin.f32 %v4432_v35, 0.0  ;;  %vm676_vm15 = vcmp.gt.f32.partialorder %v4429_v3, 0.0  ;;  %vm697_vm1 = vcmp.gt.f32.partialorder %v4432_v35, 0.0 }
  0x95   : > { %v1800_v17 = vshrl.u32 %v3312_v28, 16  ;;  %v1803_v44 = vshll.u32 %v3312_v28, 16  ;;  %v1786_v49 = vshrl.u32 %v3310_v48, 16  ;;  %v1789_v63 = vshll.u32 %v3310_v48, 16  ;;  %3453 = vmatprep.mubr.msk.bf16.mxu1 %vm1576_vm13, %v3306_v45  ;;  %v464_v48 = vld [vmem:[%s3843_s25 + $0x178] sm:$0x1] }
  0x96   : > { %v4449_v2 = vmul.f32 %v1144_v40, %v4186_v58  ;;  %v4452_v59 = vmul.f32 %v1134_v8, %v4195_v13  ;;  %v4462_v58 = vadd.f32 %v3868_v38, %v552_v55  ;;  %v4464_v13 = vpop.eup %3629  ;;  %v4479_v38 = vsel %vm693_vm2, %v4210_v36, %v3160_v0  ;;  %v4484_v55 = vld [vmem:[%s5022_s4 + $0xc] sm:$0x3] }
  0x97   : > { %v1802_v18 = vrot.slane %v1800_v17, 4  ;;  %v1805_v56 = vrot.slane %v1803_v44, 5  ;;  %v1788_v11 = vrot.slane %v1786_v49, 4  ;;  %v1791_v54 = vrot.slane %v1789_v63, 5  ;;  %v4511_v57 = vpop.eup %3631 }
  0x98   : > { %5080 = vst [vmem:[#allocation21_spill] sm:$0xff] %v4449_v2  ;;  %5081 = vst [vmem:[#allocation22_spill] sm:$0xff] %v4452_v59  ;;  %v3307_v28 = vpack.c.bf16 %v4449_v2, %v4452_v59  ;;  %v1254_v45 = vpop.permute.xlu1 %1253  ;;  %v1244_v40 = vpop.permute.xlu0 %1243  ;;  %v3316_v44 = vpack.c.bf16 %v4449_v2, %v4449_v2  ;;  %v4494_v36 = vsel %vm691_vm3, %v4221_v61, %v3158_v62  ;;  %v853_v49 = vmul.f32 1.442695, %v744_v51 }
  0x99   : > { %v4471_v8 = vmul.f32 %v1254_v45, %v4203_v23  ;;  %v4474_v17 = vmul.f32 %v1244_v40, %v4216_v27  ;;  %v3314_v23 = vpack.c.bf16 %v4452_v59, %v4452_v59  ;;  %v4497_v27 = vsel %vm1589_vm0, %v3246_v21, 0 }
  0x9a   : > { %3454 = vmatmul.mubr.msk.bf16.vlgmr.msra.gmra.mxu1 %vm1576_vm13, %v3307_v28  ;;  %v895_v63 = vmul.f32 1.442695, %v765_v26  ;;  %v1806_v28 = vor.u32 %v1805_v56, %v1802_v18  ;;  %v1792_v45 = vor.u32 %v1791_v54, %v1788_v11  ;;  %v763_v62 = vmin.f32 %v4462_v58, 0.0  ;;  %v468_v26 = vld [vmem:[%s3843_s25 + $0x198] sm:$0x1]  ;;  %v4523_v11 = vpop.eup %3633 }
  0x9b   : > { %5082 = vst [vmem:[#allocation23_spill] sm:$0xff] %v4471_v8  ;;  %5083 = vst [vmem:[#allocation24_spill] sm:$0xff] %v4474_v17  ;;  %v3304_v0 = vpack.c.bf16 %v4471_v8, %v4474_v17  ;;  %3472 = vmatpush3.bf16.msra.mxu1 %v4276_v32  ;;  %v4508_v50 = vsel %vm1589_vm0, %v4484_v55, 0  ;;  %v558_v18 = vmul.f32 %v3855_v33, %v4341_v12  ;;  %v1828_v54 = vshrl.u32 %v3316_v44, 16 }
  0x9c   : > { %v1129_v40 = vpop.permute.xlu1 %1128  ;;  %v1119_v61 = vpop.permute.xlu0 %1118  ;;  %3546 = vmatprep.subr.msk.bf16.mxu1 %vm1589_vm0, %v3246_v21  ;;  %5084 = vst [vmem:[#allocation25_spill] sm:$0xff] %v4508_v50  ;;  %v556_v56 = vmul.f32 %v3855_v33, %v4344_v43  ;;  %v462_v21 = vld [vmem:[%s3843_s25 + $0x168] sm:$0x1]  ;;  %v1831_v47 = vshll.u32 %v3316_v44, 16  ;;  %v1814_v14 = vshrl.u32 %v3314_v23, 16  ;;  %3641 = vpow2.f32 %v853_v49 }
  0x9d   : > { %v1454_v32 = vmul.f32 %v1129_v40, %v4227_v29  ;;  %v1452_v51 = vmul.f32 %v1119_v61, %v4233_v6  ;;  %3447 = vmatprep.mubr.msk.bf16.mxu0 %vm1576_vm13, %v3304_v0  ;;  %v1817_v29 = vshll.u32 %v3314_v23, 16  ;;  %v4525_v40 = vpop.eup %3635  ;;  %v4531_v61 = vld [vmem:[%s5020_s2] ss:$0 sm:$0xff]  ;;  %v1807_v43 = vrot.slane %v1806_v28, 4 }
  0x9e   : > { %v539_v33 = vmul.f32 %v4531_v61, %v464_v48  ;;  %v1793_v12 = vrot.slane %v1792_v45, 4  ;;  %v537_v23 = vmul.f32 %v4531_v61, %v462_v21  ;;  %v4536_v17 = vmul.f32 %v4531_v61, %v468_v26  ;;  %v5136_v21 = vld [vmem:[#allocation9_spill] sm:$0xff] }
  0x9f   : > { %v3313_v6 = vpack.c.bf16 %v1454_v32, %v1454_v32  ;;  %v3311_v0 = vpack.c.bf16 %v1452_v51, %v1452_v51  ;;  %v4538_v32 = vpop.eup %3637  ;;  %v1830_v48 = vrot.slane %v1828_v54, 4  ;;  %v1833_v28 = vrot.slane %v1831_v47, 5  ;;  %v4560_v54 = vld [vmem:[%s5021_s3] ss:$0 sm:$0xff] }
  0xa0   : > { %v1274_v15 = vpop.permute.xlu1 %1273  ;;  %v1264_v44 = vpop.permute.xlu0 %1263  ;;  %v1816_v45 = vrot.slane %v1814_v14, 4  ;;  %v1819_v2 = vrot.slane %v1817_v29, 5  ;;  %v3148_v47 = vadd.f32 -1.0, %v4455_v20  ;;  %3643 = vpow2.f32 %v895_v63 }
  0xa1   : > { %v1809_v51 = vshll.u32 %v3313_v6, 16  ;;  %v1795_v49 = vshll.u32 %v3311_v0, 16  ;;  %v4541_v31 = vmul.f32 %v1274_v15, %v4240_v34  ;;  %v4544_v16 = vmul.f32 %v1264_v44, %v4245_v1  ;;  %v4574_v63 = vpop.eup %3639 }
  0xa2   : > { %v891_v14 = vmul.f32 1.442695, %v763_v62  ;;  %v4563_v29 = vadd.f32 %v4560_v54, %v558_v18  ;;  %v1834_v62 = vor.u32 %v1833_v28, %v1830_v48  ;;  %v3146_v34 = vadd.f32 -1.0, %v4464_v13 }
  0xa3   : > { %5085 = vst [vmem:[#allocation26_spill] sm:$0xff] %v4541_v31  ;;  %5086 = vst [vmem:[#allocation27_spill] sm:$0xff] %v4544_v16  ;;  %v1811_v26 = vrot.slane %v1809_v51, 5  ;;  %v1797_v30 = vrot.slane %v1795_v49, 5  ;;  %v3305_v6 = vpack.c.bf16 %v4541_v31, %v4544_v16  ;;  %v1820_v49 = vor.u32 %v1819_v2, %v1816_v45 }
  0xa4   : > { %v1149_v1 = vpop.permute.xlu1 %1148  ;;  %v1139_v15 = vpop.permute.xlu0 %1138  ;;  %v4591_v2 = vadd.f32 -1.0, %v4511_v57  ;;  %3645 = vpow2.f32 %v891_v14  ;;  %v4594_v13 = vadd.f32 %v4560_v54, %v537_v23  ;;  %v1835_v45 = vrot.slane %v1834_v62, 4 }
  0xa5   : > { %v4567_v0 = vsel %vm4548_vm8, %v1807_v43, %v1811_v26  ;;  %v1798_v44 = vsel %vm4548_vm8, %v1793_v12, %v1797_v30  ;;  %v1458_v51 = vmul.f32 %v1149_v1, %v4250_v39  ;;  %v1456_v20 = vmul.f32 %v1139_v15, %v4263_v9  ;;  %3448 = vmatmul.mubr.msk.bf16.gmra.mxu0 %vm1576_vm13, %v3305_v6 }
  0xa6   : > { %5089 = vst [vmem:[#allocation28_spill] sm:$0xff] %v4567_v0  ;;  %v3204_v18 = vcombine.low %v1798_v44, %v4567_v0  ;;  %v4579_v26 = vadd.f32 %v4560_v54, %v556_v56  ;;  %v4582_v12 = vadd.f32 %v4560_v54, %v539_v33  ;;  %v4588_v30 = vsel %vm681_vm6, %v4258_v5, %v3148_v47 }
  0xa7   : > { %v3317_v31 = vpack.c.bf16 %v1458_v51, %v1458_v51  ;;  %v3315_v43 = vpack.c.bf16 %v1456_v20, %v1456_v20  ;;  %5090 = vst [vmem:[#allocation29_spill] sm:$0xff] %v4594_v13  ;;  %v1821_v6 = vrot.slane %v1820_v49, 4  ;;  %v4605_v5 = vsel %vm679_vm7, %v4268_v52, %v3146_v34 }
  0xa8   : > { %v1164_v39 = vpop.permute.xlu1 %1163  ;;  %v1154_v9 = vpop.permute.xlu0 %1153  ;;  %3463 = vmatprep.mubr.msk.bf16.mxu0 %vm1576_vm13, %v3204_v18  ;;  %5093 = vst [vmem:[#allocation32_spill] sm:$0xff] %v4605_v5  ;;  %v769_v57 = vmin.f32 %v4563_v29, 0.0  ;;  %v4617_v52 = vadd.f32 -1.0, %v4523_v11  ;;  %v767_v34 = vmin.f32 %v4579_v26, 0.0  ;;  %v750_v44 = vmin.f32 %v4582_v12, 0.0 }
  0xa9   : > { %v1837_v56 = vshll.u32 %v3317_v31, 16  ;;  %v1823_v48 = vshll.u32 %v3315_v43, 16  ;;  %v4597_v33 = vmul.f32 %v1164_v39, %v4284_v7  ;;  %v4600_v28 = vmul.f32 %v1154_v9, %v4291_v41  ;;  %v4612_v15 = vpop.eup %3641 }
  0xaa   : > { %vm695_vm2 = vcmp.gt.f32.partialorder %v4462_v58, 0.0  ;;  %vm701_vm3 = vcmp.gt.f32.partialorder %v4563_v29, 0.0  ;;  %vm699_vm4 = vcmp.gt.f32.partialorder %v4579_v26, 0.0  ;;  %vm682_vm5 = vcmp.gt.f32.partialorder %v4582_v12, 0.0 }
  0xab   : > { %5091 = vst [vmem:[#allocation30_spill] sm:$0xff] %v4597_v33  ;;  %5092 = vst [vmem:[#allocation31_spill] sm:$0xff] %v4600_v28  ;;  %v1839_v1 = vrot.slane %v1837_v56, 5  ;;  %v1825_v23 = vrot.slane %v1823_v48, 5  ;;  %v3320_v31 = vpack.c.bf16 %v4597_v33, %v4597_v33  ;;  %v3308_v7 = vpack.c.bf16 %v4597_v33, %v4600_v28  ;;  %v5100_v33 = vld [vmem:[#allocation14_spill] sm:$0xff] }
  0xac   : > { %v3318_v41 = vpack.c.bf16 %v4600_v28, %v4600_v28  ;;  %v1184_v47 = vpop.permute.xlu1 %1183  ;;  %v1174_v14 = vpop.permute.xlu0 %1173  ;;  %v903_v48 = vmul.f32 1.442695, %v769_v57 }
  0xad   : > { %v4623_v51 = vsel %vm4548_vm8, %v1835_v45, %v1839_v1  ;;  %v4627_v20 = vsel %vm4548_vm8, %v1821_v6, %v1825_v23  ;;  %v1856_v62 = vshrl.u32 %v3320_v31, 16  ;;  %v1859_v49 = vshll.u32 %v3320_v31, 16  ;;  %3457 = vmatprep.mubr.msk.bf16.mxu1 %vm1576_vm13, %v3308_v7 }
  0xae   : > { %5094 = vst [vmem:[#allocation33_spill] sm:$0xff] %v4623_v51  ;;  %5095 = vst [vmem:[#allocation34_spill] sm:$0xff] %v4627_v20  ;;  %v3205_v11 = vcombine.low %v4627_v20, %v4623_v51  ;;  %v1842_v18 = vshrl.u32 %v3318_v41, 16  ;;  %v1845_v43 = vshll.u32 %v3318_v41, 16  ;;  %v4633_v39 = vmul.f32 %v1184_v47, %v4300_v22  ;;  %v4643_v22 = vpop.eup %3643  ;;  %v5099_v51 = vld [vmem:[#allocation13_spill] sm:$0xff] }
  0xaf   : > { %v1858_v9 = vrot.slane %v1856_v62, 4  ;;  %v4636_v56 = vmul.f32 %v1174_v14, %v4310_v24  ;;  %v1861_v6 = vrot.slane %v1859_v49, 5  ;;  %v899_v47 = vmul.f32 1.442695, %v767_v34  ;;  %v466_v62 = vld [vmem:[%s3843_s25 + $0x188] sm:$0x1] }
  0xb0   : > { %5096 = vst [vmem:[#allocation35_spill] sm:$0xff] %v4633_v39  ;;  %v1844_v1 = vrot.slane %v1842_v18, 4  ;;  %v1847_v23 = vrot.slane %v1845_v43, 5  ;;  %v3324_v31 = vpack.c.bf16 %v4633_v39, %v4633_v39  ;;  %v1169_v7 = vpop.permute.xlu1 %1168  ;;  %v1159_v41 = vpop.permute.xlu0 %1158  ;;  %3464 = vmatmul.mubr.msk.bf16.vlgmr.msra.gmra.mxu0 %vm1576_vm13, %v3205_v11  ;;  %v748_v14 = vmin.f32 %v4594_v13, 0.0  ;;  %v5098_v43 = vld [vmem:[#allocation8_spill] sm:$0xff] }
  0xb1   : > { %5097 = vst [vmem:[#allocation36_spill] sm:$0xff] %v4636_v56  ;;  %v3309_v24 = vpack.c.bf16 %v4633_v39, %v4636_v56  ;;  %v3322_v57 = vpack.c.bf16 %v4636_v56, %v4636_v56  ;;  %3482 = vmatpush3.bf16.msra.mxu0 %v4361_v60  ;;  %v1462_v45 = vmul.f32 %v1169_v7, %v5098_v43  ;;  %v865_v11 = vmul.f32 1.442695, %v750_v44 }
  0xb2   : > { %v1884_v49 = vshrl.u32 %v3324_v31, 16  ;;  %v1887_v18 = vshll.u32 %v3324_v31, 16  ;;  %3547 = vmatprep.subr.msk.bf16.mxu0 %vm1589_vm0, %v4484_v55  ;;  %v1460_v20 = vmul.f32 %v1159_v41, %v5099_v51  ;;  %v4659_v60 = vadd.f32 %v4560_v54, %v4536_v17  ;;  %v4662_v55 = vpop.eup %3645  ;;  %v434_v41 = vld [vmem:[%s3843_s25 + $0x88] sm:$0x1] }
  0xb3   : > { %v1870_v8 = vshrl.u32 %v3322_v57, 16  ;;  %v1873_v16 = vshll.u32 %v3322_v57, 16  ;;  %3458 = vmatmul.mubr.msk.bf16.gmra.mxu1 %vm1576_vm13, %v3309_v24  ;;  %v1862_v34 = vor.u32 %v1861_v6, %v1858_v9  ;;  %v1848_v0 = vor.u32 %v1847_v23, %v1844_v1  ;;  %v5101_v17 = vld [vmem:[#allocation15_spill] sm:$0xff]  ;;  %v5102_v6 = vld [vmem:[#allocation6_spill] sm:$0xff] }
  0xb4   : > { %v3321_v31 = vpack.c.bf16 %v1462_v45, %v1462_v45  ;;  %v1189_v39 = vpop.permute.xlu1 %1188  ;;  %v1179_v7 = vpop.permute.xlu0 %1178  ;;  %v541_v43 = vmul.f32 %v4531_v61, %v466_v62  ;;  %v1886_v44 = vrot.slane %v1884_v49, 4  ;;  %v1889_v56 = vrot.slane %v1887_v18, 5  ;;  %v5103_v23 = vld [vmem:[#allocation7_spill] sm:$0xff]  ;;  %v433_v18 = vld [vmem:[%s3843_s25 + $0x80] sm:$0xff] }
  0xb5   : > { %v3319_v57 = vpack.c.bf16 %v1460_v20, %v1460_v20  ;;  %v1466_v51 = vmul.f32 %v1189_v39, %v5100_v33  ;;  %v1872_v24 = vrot.slane %v1870_v8, 4  ;;  %v1875_v28 = vrot.slane %v1873_v16, 5 }
  0xb6   : > { %v1865_v59 = vshll.u32 %v3321_v31, 16  ;;  %v1464_v9 = vmul.f32 %v1179_v7, %v5101_v17  ;;  %vm674_vm9 = vcmp.gt.f32.partialorder %v5102_v6, 0.0  ;;  %vm672_vm10 = vcmp.gt.f32.partialorder %v5103_v23, 0.0 }
  0xb7   : > { %v1851_v45 = vshll.u32 %v3319_v57, 16  ;;  %v3325_v1 = vpack.c.bf16 %v1466_v51, %v1466_v51  ;;  %3647 = vpow2.f32 %v903_v48  ;;  %v861_v62 = vmul.f32 1.442695, %v748_v14  ;;  %v5104_v51 = vld [vmem:[#allocation16_spill] sm:$0xff] }
  0xb8   : > { %v1863_v20 = vrot.slane %v1862_v34, 4  ;;  %v1867_v49 = vrot.slane %v1865_v59, 5  ;;  %v3323_v33 = vpack.c.bf16 %v1464_v9, %v1464_v9  ;;  %v1304_v39 = vpop.permute.xlu1 %1303  ;;  %v1294_v8 = vpop.permute.xlu0 %1293  ;;  %v509_v16 = vmul.f32 %v4531_v61, %v434_v41 }
  0xb9   : > { %v1849_v31 = vrot.slane %v1848_v0, 4  ;;  %v1853_v7 = vrot.slane %v1851_v45, 5  ;;  %v1893_v57 = vshll.u32 %v3325_v1, 16  ;;  %v1489_v17 = vmul.f32 %v1304_v39, %v5104_v51 }
  0xba   : > { %v1890_v50 = vor.u32 %v1889_v56, %v1886_v44  ;;  %v1876_v13 = vor.u32 %v1875_v28, %v1872_v24  ;;  %v1879_v5 = vshll.u32 %v3323_v33, 16  ;;  %v1487_v48 = vmul.f32 %v1294_v8, %v4379_v37 }
  0xbb   : > { %v4678_v59 = vsel %vm4548_vm8, %v1863_v20, %v1867_v49  ;;  %3649 = vpow2.f32 %v899_v47  ;;  %v4681_v14 = vadd.f32 %v4560_v54, %v541_v43  ;;  %v508_v0 = vmul.f32 %v4531_v61, %v433_v18  ;;  %v451_v18 = vld [vmem:[%s3843_s25 + $0x110] sm:$0xff] }
  0xbc   : > { %v4686_v34 = vsel %vm4548_vm8, %v1849_v31, %v1853_v7  ;;  %v1895_v28 = vrot.slane %v1893_v57, 5  ;;  %v1881_v56 = vrot.slane %v1879_v5, 5  ;;  %v3326_v44 = vpack.c.bf16 %v1489_v17, %v1487_v48  ;;  %v1324_v37 = vpop.permute.xlu1 %1323  ;;  %v1314_v41 = vpop.permute.xlu0 %1313 }
  0xbd   : > { %v4689_v24 = vmul.f32 %v1324_v37, %v4408_v19  ;;  %v3152_v9 = vadd.f32 -1.0, %v4525_v40  ;;  %3651 = vpow2.f32 %v865_v11  ;;  %v754_v47 = vmin.f32 %v4659_v60, 0.0 }
  0xbe   : > { %v1891_v43 = vrot.slane %v1890_v50, 4  ;;  %v1877_v45 = vrot.slane %v1876_v13, 4  ;;  %v4694_v1 = vmul.f32 %v1314_v41, %v4420_v25  ;;  %3473 = vmatprep.mubr.msk.bf16.mxu1 %vm1576_vm13, %v3326_v44  ;;  %v4698_v5 = vadd.f32 %v4560_v54, %v509_v16  ;;  %v3264_v16 = vld [vmem:[%s5022_s4 + $0xe] sm:$0x3] }
  0xbf   : > { %v3206_v20 = vcombine.low %v4686_v34, %v4678_v59  ;;  %v3150_v19 = vadd.f32 -1.0, %v4538_v32  ;;  %3653 = vpow2.f32 %v861_v62  ;;  %v752_v50 = vmin.f32 %v4681_v14, 0.0 }
  0xc0   : > { %v4708_v25 = vsel %vm4548_vm8, %v1891_v43, %v1895_v28  ;;  %v4712_v40 = vsel %vm4548_vm8, %v1877_v45, %v1881_v56  ;;  %v3327_v13 = vpack.c.bf16 %v4689_v24, %v4694_v1  ;;  %v1384_v32 = vpop.permute.xlu1 %1383  ;;  %v1374_v11 = vpop.permute.xlu0 %1373  ;;  %v4717_v49 = vadd.f32 %v4560_v54, %v508_v0 }
  0xc1   : > { %3467 = vmatprep.mubr.msk.bf16.mxu0 %vm1576_vm13, %v3206_v20  ;;  %v1505_v62 = vmul.f32 %v1384_v32, %v4426_v42  ;;  %v4725_v33 = vsel %vm674_vm9, %v5102_v6, %v4591_v2  ;;  %v3145_v39 = vadd.f32 -1.0, %v4574_v63  ;;  %v873_v8 = vmul.f32 1.442695, %v754_v47 }
  0xc2   : > { %v1503_v31 = vmul.f32 %v1374_v11, %v4443_v53  ;;  %3474 = vmatmul.mubr.msk.bf16.vlgmr.msra.gmra.mxu1 %vm1576_vm13, %v3327_v13  ;;  %v4739_v42 = vsel %vm672_vm10, %v5103_v23, %v4617_v52  ;;  %v4744_v63 = vsel %vm685_vm11, %v4320_v4, %v3152_v9  ;;  %v720_v2 = vmin.f32 %v4698_v5, 0.0  ;;  %v5105_v13 = vld [vmem:[#allocation32_spill] sm:$0xff] }
  0xc3   : > { %v3336_v6 = vpack.c.bf16 %v1489_v17, %v1489_v17  ;;  %v3207_v7 = vcombine.low %v4712_v40, %v4708_v25  ;;  %v4752_v53 = vsel %vm683_vm12, %v4337_v10, %v3150_v19  ;;  %3492 = vmatpush3.bf16.msra.mxu1 %v4497_v27  ;;  %v869_v52 = vmul.f32 1.442695, %v752_v50 }
  0xc4   : > { %v3648_v23 = vpop.eup %3647  ;;  %v3334_v57 = vpack.c.bf16 %v1487_v48, %v1487_v48  ;;  %v3330_v51 = vpack.c.bf16 %v1505_v62, %v1503_v31  ;;  %v1404_v0 = vpop.permute.xlu1 %1403  ;;  %3548 = vmatprep.subr.msk.bf16.mxu1 %vm1589_vm0, %v3264_v16  ;;  %v719_v17 = vmin.f32 %v4717_v49, 0.0  ;;  %v526_v28 = vmul.f32 %v4531_v61, %v451_v18 }
  0xc5   : > { %v1394_v4 = vpop.permute.xlu0 %1393  ;;  %3468 = vmatmul.mubr.msk.bf16.gmra.mxu0 %vm1576_vm13, %v3207_v7  ;;  %v1509_v10 = vmul.f32 %v1404_v0, %v4479_v38  ;;  %v4766_v48 = vsel %vm678_vm14, %v4384_v46, %v3145_v39  ;;  %3655 = vpow2.f32 %v873_v8  ;;  %v3143_v56 = vadd.f32 -1.0, %v4612_v15 }
  0xc6   : > { %v1507_v27 = vmul.f32 %v1394_v4, %v4494_v36  ;;  %3483 = vmatprep.mubr.msk.bf16.mxu0 %vm1576_vm13, %v3330_v51  ;;  %v3164_v44 = vadd.f32 -1.0, %v4643_v22  ;;  %v805_v37 = vmul.f32 1.442695, %v720_v2  ;;  %v4772_v61 = vsel %vm1589_vm0, %v3264_v16, 0 }
  0xc7   : > { %v2258_v41 = vshrl.u32 %v3336_v6, 16  ;;  %v2261_v38 = vshll.u32 %v3336_v6, 16  ;;  %v3162_v36 = vadd.f32 -1.0, %v4662_v55  ;;  %3657 = vpow2.f32 %v869_v52 }
  0xc8   : > { %v3650_v9 = vpop.eup %3649  ;;  %v2244_v47 = vshrl.u32 %v3334_v57, 16  ;;  %v2247_v46 = vshll.u32 %v3334_v57, 16  ;;  %v1344_v43 = vpop.permute.xlu1 %1343  ;;  %v803_v20 = vmul.f32 1.442695, %v719_v17  ;;  %v4777_v15 = vadd.f32 %v4560_v54, %v526_v28  ;;  %v5107_v17 = vld [vmem:[#allocation25_spill] sm:$0xff] }
  0xc9   : > { %v1334_v45 = vpop.permute.xlu0 %1333  ;;  %v3340_v22 = vpack.c.bf16 %v4689_v24, %v4689_v24  ;;  %v3331_v19 = vpack.c.bf16 %v1509_v10, %v1507_v27  ;;  %v1497_v50 = vmul.f32 %v1344_v43, %v4588_v30  ;;  %v3338_v11 = vpack.c.bf16 %v4694_v1, %v4694_v1  ;;  %v5106_v24 = vld [vmem:[#allocation29_spill] sm:$0xff] }
  0xca   : > { %v1495_v55 = vmul.f32 %v1334_v45, %v5105_v13  ;;  %v3652_v32 = vpop.eup %3651  ;;  %v1016_v62 = vsel %vm676_vm15, %v4429_v3, %v3143_v56  ;;  %v4791_v54 = vsel %vm697_vm1, %v4432_v35, %v3164_v44  ;;  %v3168_v39 = vadd.f32 -1.0, %v3648_v23  ;;  %v4802_v35 = vld [vmem:[%s5022_s4 + $0x10] sm:$0x3] }
  0xcb   : > { %vm680_vm6 = vcmp.gt.f32.partialorder %v5106_v24, 0.0  ;;  %v2260_v8 = vrot.slane %v2258_v41, 4  ;;  %v2263_v30 = vrot.slane %v2261_v38, 5  ;;  %v3166_v18 = vadd.f32 -1.0, %v3650_v9 }
  0xcc   : > { %v3328_v16 = vpack.c.bf16 %v1497_v50, %v1495_v55  ;;  %v3654_v31 = vpop.eup %3653  ;;  %v2246_v2 = vrot.slane %v2244_v47, 4  ;;  %v2249_v6 = vrot.slane %v2247_v46, 5  ;;  %v1309_v1 = vpop.permute.xlu1 %1308  ;;  %v4797_v3 = vsel %vm695_vm2, %v4462_v58, %v3162_v36 }
  0xcd   : > { %v1299_v7 = vpop.permute.xlu0 %1298  ;;  %3659 = vpow2.f32 %v805_v37  ;;  %v2286_v52 = vshrl.u32 %v3340_v22, 16  ;;  %v2289_v23 = vshll.u32 %v3340_v22, 16  ;;  %3484 = vmatmul.mubr.msk.bf16.vlgmr.msra.gmra.mxu0 %vm1576_vm13, %v3331_v19  ;;  %v737_v57 = vmin.f32 %v4777_v15, 0.0 }
  0xce   : > { %3477 = vmatprep.mubr.msk.bf16.mxu1 %vm1576_vm13, %v3328_v16  ;;  %3661 = vpow2.f32 %v803_v20  ;;  %v2272_v51 = vshrl.u32 %v3338_v11, 16  ;;  %v2275_v0 = vshll.u32 %v3338_v11, 16  ;;  %v1490_v58 = vmul.f32 %v1309_v1, %v4725_v33  ;;  %3502 = vmatpush3.bf16.msra.mxu0 %v5107_v17 }
  0xcf   : > { %v1488_v4 = vmul.f32 %v1299_v7, %v4739_v42  ;;  %v2264_v28 = vor.u32 %v2263_v30, %v2260_v8  ;;  %v4813_v10 = vsel %vm701_vm3, %v4563_v29, %v3168_v39  ;;  %v4818_v27 = vsel %vm699_vm4, %v4579_v26, %v3166_v18  ;;  %3549 = vmatprep.subr.msk.bf16.mxu0 %vm1589_vm0, %v4802_v35 }
  0xd0   : > { %v3149_v56 = vadd.f32 -1.0, %v3652_v32  ;;  %v2250_v33 = vor.u32 %v2249_v6, %v2246_v2  ;;  %v3337_v44 = vpack.c.bf16 %v1490_v58, %v1490_v58  ;;  %v1364_v37 = vpop.permute.xlu1 %1363  ;;  %v3147_v38 = vadd.f32 -1.0, %v3654_v31 }
  0xd1   : > { %v3335_v42 = vpack.c.bf16 %v1488_v4, %v1488_v4  ;;  %v1354_v41 = vpop.permute.xlu0 %1353  ;;  %v2288_v36 = vrot.slane %v2286_v52, 4  ;;  %v2291_v9 = vrot.slane %v2289_v23, 5  ;;  %v1501_v29 = vmul.f32 %v1364_v37, %v4744_v63 }
  0xd2   : > { %v1499_v47 = vmul.f32 %v1354_v41, %v4752_v53  ;;  %v3656_v46 = vpop.eup %3655  ;;  %v2274_v43 = vrot.slane %v2272_v51, 4  ;;  %v2277_v26 = vrot.slane %v2275_v0, 5  ;;  %v2267_v45 = vshll.u32 %v3337_v44, 16 }
  0xd3   : > { %v2253_v20 = vshll.u32 %v3335_v42, 16  ;;  %v2265_v22 = vrot.slane %v2264_v28, 4  ;;  %v3344_v19 = vpack.c.bf16 %v1497_v50, %v1497_v50  ;;  %v4827_v32 = vsel %vm682_vm5, %v4582_v12, %v3149_v56 }
  0xd4   : > { %v3329_v13 = vpack.c.bf16 %v1501_v29, %v1499_v47  ;;  %v3658_v11 = vpop.eup %3657  ;;  %v2251_v39 = vrot.slane %v2250_v33, 4  ;;  %v3342_v8 = vpack.c.bf16 %v1495_v55, %v1495_v55  ;;  %v2269_v30 = vrot.slane %v2267_v45, 5  ;;  %v1329_v16 = vpop.permute.xlu1 %1328 }
  0xd5   : > { %v2255_v63 = vrot.slane %v2253_v20, 5  ;;  %v1319_v53 = vpop.permute.xlu0 %1318  ;;  %v1494_v18 = vmul.f32 %v1329_v16, %v4766_v48  ;;  %v1020_v50 = vsel %vm680_vm6, %v5106_v24, %v3147_v38  ;;  %vm686_vm7 = vcmp.gt.f32.partialorder %v4659_v60, 0.0 }
  0xd6   : > { %v1492_v31 = vmul.f32 %v1319_v53, %v1016_v62  ;;  %3478 = vmatmul.mubr.msk.bf16.gmra.mxu1 %vm1576_vm13, %v3329_v13  ;;  %v3153_v12 = vadd.f32 -1.0, %v3656_v46  ;;  %vm684_vm9 = vcmp.gt.f32.partialorder %v4681_v14, 0.0  ;;  %v2292_v2 = vor.u32 %v2291_v9, %v2288_v36 }
  0xd7   : > { %v2278_v55 = vor.u32 %v2277_v26, %v2274_v43  ;;  %v2270_v6 = vsel %vm4548_vm8, %v2265_v22, %v2269_v30  ;;  %v2256_v48 = vsel %vm4548_vm8, %v2251_v39, %v2255_v63  ;;  %v2314_v62 = vshrl.u32 %v3344_v19, 16 }
  0xd8   : > { %v2317_v1 = vshll.u32 %v3344_v19, 16  ;;  %v3341_v7 = vpack.c.bf16 %v1494_v18, %v1494_v18  ;;  %v3339_v52 = vpack.c.bf16 %v1492_v31, %v1492_v31  ;;  %v2300_v23 = vshrl.u32 %v3342_v8, 16  ;;  %v1424_v0 = vpop.permute.xlu1 %1423  ;;  %v4855_v18 = vld [vmem:[%s5024_s6] sm:$0x3] }
  0xd9   : > { %v2303_v51 = vshll.u32 %v3342_v8, 16  ;;  %v3348_v24 = vpack.c.bf16 %v1501_v29, %v1501_v29  ;;  %v1414_v58 = vpop.permute.xlu0 %1413  ;;  %v3247_v4 = vcombine.low %v2256_v48, %v2270_v6  ;;  %v1513_v33 = vmul.f32 %v1424_v0, %v4791_v54 }
  0xda   : > { %v3660_v17 = vpop.eup %3659  ;;  %v2295_v28 = vshll.u32 %v3341_v7, 16  ;;  %v2281_v56 = vshll.u32 %v3339_v52, 16  ;;  %v3151_v44 = vadd.f32 -1.0, %v3658_v11  ;;  %v2293_v37 = vrot.slane %v2292_v2, 4 }
  0xdb   : > { %v3662_v42 = vpop.eup %3661  ;;  %v2279_v41 = vrot.slane %v2278_v55, 4  ;;  %v3346_v38 = vpack.c.bf16 %v1499_v47, %v1499_v47  ;;  %v1511_v36 = vmul.f32 %v1414_v58, %v4797_v3  ;;  %3493 = vmatprep.mubr.msk.bf16.mxu1 %vm1576_vm13, %v3247_v4  ;;  %v2316_v9 = vrot.slane %v2314_v62, 4 }
  0xdc   : > { %v2319_v46 = vrot.slane %v2317_v1, 5  ;;  %v2297_v29 = vrot.slane %v2295_v28, 5  ;;  %v2283_v43 = vrot.slane %v2281_v56, 5  ;;  %v2302_v26 = vrot.slane %v2300_v23, 4  ;;  %v1444_v19 = vpop.permute.xlu1 %1443 }
  0xdd   : > { %v2305_v45 = vrot.slane %v2303_v51, 5  ;;  %v2342_v20 = vshrl.u32 %v3348_v24, 16  ;;  %v3332_v22 = vpack.c.bf16 %v1513_v33, %v1511_v36  ;;  %v1434_v13 = vpop.permute.xlu0 %1433  ;;  %v1517_v3 = vmul.f32 %v1444_v19, %v4813_v10 }
  0xde   : > { %v2298_v54 = vsel %vm4548_vm8, %v2293_v37, %v2297_v29  ;;  %v2284_v47 = vsel %vm4548_vm8, %v2279_v41, %v2283_v43  ;;  %v1515_v11 = vmul.f32 %v1434_v13, %v4818_v27  ;;  %v2345_v39 = vshll.u32 %v3348_v24, 16  ;;  %v5112_v24 = vld [vmem:[#allocation31_spill] sm:$0xff] }
  0xdf   : > { %v2328_v8 = vshrl.u32 %v3346_v38, 16  ;;  %v2331_v30 = vshll.u32 %v3346_v38, 16  ;;  %v3248_v63 = vcombine.low %v2284_v47, %v2298_v54  ;;  %3487 = vmatprep.mubr.msk.bf16.mxu0 %vm1576_vm13, %v3332_v22  ;;  %v839_v53 = vmul.f32 1.442695, %v737_v57 }
  0xe0   : > { %v3333_v16 = vpack.c.bf16 %v1517_v3, %v1515_v11  ;;  %v2320_v31 = vor.u32 %v2319_v46, %v2316_v9  ;;  %v1349_v2 = vpop.permute.xlu1 %1348  ;;  %v1026_v27 = vsel %vm686_vm7, %v4659_v60, %v3153_v12  ;;  %v1024_v55 = vsel %vm684_vm9, %v4681_v14, %v3151_v44  ;;  %v5108_v60 = vld [vmem:[#allocation22_spill] sm:$0xff]  ;;  %v5109_v12 = vld [vmem:[#allocation20_spill] sm:$0xff] }
  0xe1   : > { %v1339_v10 = vpop.permute.xlu0 %1338  ;;  %3494 = vmatmul.mubr.msk.bf16.vlgmr.msra.gmra.mxu1 %vm1576_vm13, %v3248_v63  ;;  %v3118_v6 = vadd.f32 -1.0, %v3662_v42  ;;  %v2306_v57 = vor.u32 %v2305_v45, %v2302_v26  ;;  %v1498_v48 = vmul.f32 %v1349_v2, %v4827_v32  ;;  %vm651_vm10 = vcmp.gt.f32.partialorder %v4717_v49, 0.0  ;;  %v5114_v45 = vld [vmem:[#allocation36_spill] sm:$0xff] }
  0xe2   : > { %v1496_v62 = vmul.f32 %v1339_v10, %v1020_v50  ;;  %3488 = vmatmul.mubr.msk.bf16.gmra.mxu0 %vm1576_vm13, %v3333_v16  ;;  %3512 = vmatpush3.bf16.msra.mxu1 %v4772_v61  ;;  %v2344_v1 = vrot.slane %v2342_v20, 4  ;;  %v2347_v7 = vrot.slane %v2345_v39, 5  ;;  %v2330_v52 = vrot.slane %v2328_v8, 4  ;;  %v5111_v50 = vld [vmem:[#allocation21_spill] sm:$0xff] }
  0xe3   : > { %v2333_v23 = vrot.slane %v2331_v30, 5  ;;  %v5110_v51 = vpack.c.bf16 %v5108_v60, %v5109_v12  ;;  %3550 = vmatprep.subr.msk.bf16.mxu1 %vm1589_vm0, %v4855_v18  ;;  %v3345_v14 = vpack.c.bf16 %v1498_v48, %v1498_v48  ;;  %vm652_vm11 = vcmp.gt.f32.partialorder %v4698_v5, 0.0  ;;  %v5119_v60 = vld [vmem:[#allocation28_spill] sm:$0xff]  ;;  %v5120_v12 = vld [vmem:[#allocation34_spill] sm:$0xff] }
  0xe4   : > { %v3343_v32 = vpack.c.bf16 %v1496_v62, %v1496_v62  ;;  %3663 = vpow2.f32 %v839_v53  ;;  %v3351_v61 = vpack.c.bf16 %v5112_v24, %v5111_v50  ;;  %v1369_v0 = vpop.permute.xlu1 %1368  ;;  %v3119_v4 = vadd.f32 -1.0, %v3660_v17  ;;  %v5113_v17 = vld [vmem:[#allocation30_spill] sm:$0xff]  ;;  %v5122_v24 = vld [vmem:[#allocation33_spill] sm:$0xff] }
  0xe5   : > { %3503 = vmatprep.mubr.msk.bf16.mxu0 %vm1576_vm13, %v5110_v51  ;;  %v1359_v58 = vpop.permute.xlu0 %1358  ;;  %v991_v28 = vsel %vm651_vm10, %v4717_v49, %v3118_v6  ;;  %v2686_v56 = vsel %vm1589_vm0, %v4802_v35, 0  ;;  %v2323_v33 = vshll.u32 %v3345_v14, 16  ;;  %v1502_v42 = vmul.f32 %v1369_v0, %v1026_v27 }
  0xe6   : > { %v2309_v44 = vshll.u32 %v3343_v32, 16  ;;  %v1500_v37 = vmul.f32 %v1359_v58, %v1024_v55  ;;  %v2321_v41 = vrot.slane %v2320_v31, 4  ;;  %v2307_v38 = vrot.slane %v2306_v57, 4  ;;  %v5115_v55 = vld [vmem:[#allocation35_spill] sm:$0xff] }
  0xe7   : > { %v2348_v36 = vor.u32 %v2347_v7, %v2344_v1  ;;  %v2334_v9 = vor.u32 %v2333_v23, %v2330_v52  ;;  %v2325_v46 = vrot.slane %v2323_v33, 5  ;;  %v3349_v43 = vpack.c.bf16 %v1502_v42, %v1502_v42  ;;  %v5116_v1 = vld [vmem:[#allocation17_spill] sm:$0xff]  ;;  %v5117_v7 = vld [vmem:[#allocation19_spill] sm:$0xff]  ;;  %v5124_v33 = vld [vmem:[#allocation18_spill] sm:$0xff] }
  0xe8   : > { %v2311_v29 = vrot.slane %v2309_v44, 5  ;;  %v3347_v26 = vpack.c.bf16 %v1500_v37, %v1500_v37  ;;  %v3352_v20 = vpack.c.bf16 %v5114_v45, %v5113_v17  ;;  %v992_v54 = vsel %vm652_vm11, %v4698_v5, %v3119_v4  ;;  %v1199_v63 = vpop.permute.xlu1 %1198  ;;  %v5126_v37 = vld [vmem:[#allocation27_spill] sm:$0xff]  ;;  %v5137_v45 = vld [vmem:[#allocation10_spill] sm:$0xff] }
  0xe9   : > { %v1194_v22 = vpop.permute.xlu0 %1193  ;;  %v2326_v49 = vsel %vm4548_vm8, %v2321_v41, %v2325_v46  ;;  %v2351_v19 = vshll.u32 %v3349_v43, 16  ;;  %v2349_v11 = vrot.slane %v2348_v36, 4  ;;  %v2335_v39 = vrot.slane %v2334_v9, 4  ;;  %v5127_v41 = vld [vmem:[#allocation23_spill] sm:$0xff]  ;;  %v5129_v36 = vld [vmem:[#allocation26_spill] sm:$0xff] }
  0xea   : > { %v2312_v35 = vsel %vm4548_vm8, %v2307_v38, %v2311_v29  ;;  %v2337_v13 = vshll.u32 %v3347_v26, 16  ;;  %3504 = vmatmul.mubr.msk.bf16.vlgmr.msra.gmra.mxu0 %vm1576_vm13, %v3351_v61  ;;  %v1467_v47 = vmul.f32 %v1194_v22, %v991_v28  ;;  %v1468_v5 = vmul.f32 %v1199_v63, %v992_v54  ;;  %v5133_v43 = vld [vmem:[#allocation2_spill] sm:$0xff]  ;;  %v5134_v26 = vld [vmem:[#allocation3_spill] sm:$0xff]  ;;  %v5140_v22 = vld [vmem:[#allocation12_spill] sm:$0xff] }
  0xeb   : > { %3507 = vmatprep.mubr.msk.bf16.mxu0 %vm1576_vm13, %v3352_v20  ;;  %3522 = vmatpush3.bf16.msra.mxu0 %v2686_v56  ;;  %v3249_v3 = vcombine.low %v2312_v35, %v2326_v49  ;;  %v2353_v8 = vrot.slane %v2351_v19, 5  ;;  %v5118_v52 = vpack.c.bf16 %v5116_v1, %v5117_v7  ;;  %v5121_v51 = vcombine.low %v5119_v60, %v5120_v12  ;;  %v5123_v56 = vld [vmem:[#allocation24_spill] sm:$0xff] }
  0xec   : > { %v2339_v30 = vrot.slane %v2337_v13, 5  ;;  %v3358_v16 = vpack.c.bf16 %v1467_v47, %v1467_v47  ;;  %v3353_v6 = vpack.c.bf16 %v1467_v47, %v5115_v55  ;;  %v3359_v23 = vpack.c.bf16 %v1468_v5, %v1468_v5 }
  0xed   : > { %3497 = vmatprep.mubr.msk.bf16.mxu1 %vm1576_vm13, %v3249_v3  ;;  %v2354_v53 = vsel %vm4548_vm8, %v2349_v11, %v2353_v8  ;;  %vm669_vm12 = vcmp.gt.f32.partialorder %v4777_v15, 0.0  ;;  %v3277_v61 = vcombine.low %v5122_v24, %v4686_v34  ;;  %v1284_v0 = vpop.permute.xlu0 %1283  ;;  %v2877_v4 = vsel %vm1589_vm0, %v4855_v18, 0 }
  0xee   : > { %v2340_v31 = vsel %vm4548_vm8, %v2335_v39, %v2339_v30  ;;  %v2653_v2 = vshrl.u32 %v3358_v16, 16  ;;  %v2656_v10 = vshll.u32 %v3358_v16, 16  ;;  %v2662_v50 = vshll.u32 %v3359_v23, 16 }
  0xef   : > { %v3250_v27 = vcombine.low %v2340_v31, %v2354_v53  ;;  %v5125_v44 = vpack.c.bf16 %v5123_v56, %v5124_v33  ;;  %v3278_v42 = vcombine.low %v4678_v59, %v4712_v40  ;;  %v5128_v38 = vpack.c.bf16 %v5126_v37, %v5127_v41  ;;  %v5130_v59 = vld [vmem:[#allocation4_spill] sm:$0xff]  ;;  %v5131_v40 = vld [vmem:[#allocation5_spill] sm:$0xff] }
  0xf0   : > { %v2655_v48 = vrot.slane %v2653_v2, 4  ;;  %v2658_v62 = vrot.slane %v2656_v10, 5  ;;  %v2664_v34 = vrot.slane %v2662_v50, 5  ;;  %v5132_v29 = vpack.c.bf16 %v5130_v59, %v5131_v40 }
  0xf1   : > { %v3664_v57 = vpop.eup %3663  ;;  %3498 = vmatmul.mubr.msk.bf16.gmra.mxu1 %vm1576_vm13, %v3250_v27  ;;  %v5135_v17 = vpack.c.bf16 %v5133_v43, %v5134_v26  ;;  %v5138_v20 = vpack.c.bf16 %v5136_v21, %v5137_v45 }
  0xf2   : > { %3508 = vmatmul.mubr.msk.bf16.gmra.mxu0 %vm1576_vm13, %v3353_v6  ;;  %3513 = vmatprep.mubr.msk.bf16.mxu1 %vm1576_vm13, %v5118_v52  ;;  %v3136_v14 = vadd.f32 -1.0, %v3664_v57  ;;  %v2659_v32 = vor.u32 %v2658_v62, %v2655_v48 }
  0xf3   : > { %3523 = vmatprep.mubr.msk.bf16.mxu0 %vm1576_vm13, %v5121_v51 }
  0xf4   : > { %v1009_v58 = vsel %vm669_vm12, %v4777_v15, %v3136_v14  ;;  %v2660_v28 = vrot.slane %v2659_v32, 4 }
  0xf5   : > { %v1485_v15 = vmul.f32 %v1284_v0, %v1009_v58 }
  0xf6   : > { %v2665_v18 = vsel %vm4548_vm8, %v2660_v28, %v2664_v34 }
  0xf7   : > { %v3357_v9 = vpack.c.bf16 %v1485_v15, %v5129_v36  ;;  %v3279_v46 = vcombine.low %v4708_v25, %v2665_v18  ;;  %v5139_v25 = vld [vmem:[#allocation11_spill] sm:$0xff] }
  0xf8   : > { %v5141_v49 = vpack.c.bf16 %v5139_v25, %v5140_v22 }
  0xf9   : > { %3514 = vmatmul.mubr.msk.bf16.vlgmr.msra.gmra.mxu1 %vm1576_vm13, %v5125_v44 }
  0xfa   : > { %3517 = vmatprep.mubr.msk.bf16.mxu1 %vm1576_vm13, %v5128_v38  ;;  %3524 = vmatmul.mubr.msk.bf16.vlgmr.msra.gmra.mxu0 %vm1576_vm13, %v3277_v61 }
  0xfb   : > { %3527 = vmatprep.mubr.msk.bf16.mxu0 %vm1576_vm13, %v3278_v42  ;;  %3532 = vmatpush3.bf16.msra.mxu1 %v2877_v4 }
 0x101   : > { %3518 = vmatmul.mubr.msk.bf16.gmra.mxu1 %vm1576_vm13, %v3357_v9 }
 0x102   : > { %3528 = vmatmul.mubr.msk.bf16.gmra.mxu0 %vm1576_vm13, %v3279_v46  ;;  %3533 = vmatprep.mubr.msk.bf16.mxu1 %vm1576_vm13, %v5132_v29 }
 0x109   : > { %3534 = vmatmul.mubr.msk.bf16.vlgmr.msra.gmra.mxu1 %vm1576_vm13, %v5135_v17 }
 0x10a   : > { %3537 = vmatprep.mubr.msk.bf16.mxu1 %vm1576_vm13, %v5138_v20 }
 0x111   : > { %3538 = vmatmul.mubr.msk.bf16.gmra.mxu1 %vm1576_vm13, %v5141_v49 }
 0x152   : > { %v3445_v35 = vpop.f32.mrf.mxu0 }
 0x154   : > { %v1627_v19 = vpop.f32.mrf.mxu0 }
 0x156   : > { %v3446_v13 = vpop.f32.mrf.mxu0 }
 0x158   : > { %v1630_v54 = vpop.f32.mrf.mxu0 }
 0x15a   : > { %v3455_v3 = vpop.f32.mrf.mxu1 }
 0x15b   : > { %v1736_v38 = vadd.f32 %v3455_v3, %v3445_v35 }
 0x15c   : > { %v1727_v39 = vpop.f32.mrf.mxu1 }
 0x15d   : > { %v1728_v18 = vadd.f32 %v1727_v39, %v1627_v19 }
 0x15e   : > { %v3456_v30 = vpop.f32.mrf.mxu1 }
 0x15f   : > { %v1739_v59 = vadd.f32 %v3456_v30, %v3446_v13 }
 0x160   : > { %v1730_v16 = vpop.f32.mrf.mxu1 }
 0x161   : > { %v1731_v26 = vadd.f32 %v1730_v16, %v1630_v54 }
 0x165   : > { %v3449_v47 = vpop.f32.mrf.mxu0 }
 0x167   : > { %v4949_v11 = vpop.f32.mrf.mxu0 }
 0x169   : > { %v4951_v8 = vpop.f32.mrf.mxu0 }
 0x16b   : > { %v4953_v63 = vpop.f32.mrf.mxu0 }
 0x170   : > { %v3465_v53 = vpop.f32.mrf.mxu0 }
 0x171   : > { %v1993_v36 = vadd.f32 %v3465_v53, %v1736_v38 }
 0x172   : > { %v1960_v5 = vpop.f32.mrf.mxu0 }
 0x173   : > { %v3459_v31 = vpop.f32.mrf.mxu1  ;;  %v1991_v40 = vadd.f32 %v1960_v5, %v1728_v18 }
 0x174   : > { %v3466_v10 = vpop.f32.mrf.mxu0  ;;  %v1752_v21 = vadd.f32 %v3459_v31, %v3449_v47 }
 0x175   : > { %v1743_v2 = vpop.f32.mrf.mxu1  ;;  %v1994_v45 = vadd.f32 %v3466_v10, %v1739_v59 }
 0x176   : > { %v1963_v55 = vpop.f32.mrf.mxu0  ;;  %v1744_v53 = vadd.f32 %v1743_v2, %v4949_v11 }
 0x177   : > { %v3460_v27 = vpop.f32.mrf.mxu1  ;;  %v1992_v49 = vadd.f32 %v1963_v55, %v1731_v26 }
 0x178   : > { %v1755_v13 = vadd.f32 %v3460_v27, %v4951_v8 }
 0x179   : > { %v1746_v6 = vpop.f32.mrf.mxu1 }
 0x182   : > { %v3475_v48 = vpop.f32.mrf.mxu1 }
 0x183   : > { %v2103_v29 = vadd.f32 %v3475_v48, %v1993_v36  ;;  %v1747_v48 = vadd.f32 %v1746_v6, %v4953_v63 }
 0x184   : > { %v2070_v1 = vpop.f32.mrf.mxu1 }
 0x185   : > { %v3469_v57 = vpop.f32.mrf.mxu0  ;;  %v2101_v20 = vadd.f32 %v2070_v1, %v1991_v40 }
 0x186   : > { %v3476_v52 = vpop.f32.mrf.mxu1  ;;  %v1997_v35 = vadd.f32 %v3469_v57, %v1752_v21 }
 0x187   : > { %v1976_v62 = vpop.f32.mrf.mxu0  ;;  %v2104_v3 = vadd.f32 %v3476_v52, %v1994_v45 }
 0x188   : > { %v2073_v60 = vpop.f32.mrf.mxu1  ;;  %v1995_v55 = vadd.f32 %v1976_v62, %v1744_v53 }
 0x189   : > { %v3470_v7 = vpop.f32.mrf.mxu0  ;;  %v2102_v30 = vadd.f32 %v2073_v60, %v1992_v49 }
 0x18a   : > { %v1998_v1 = vadd.f32 %v3470_v7, %v1755_v13 }
 0x18b   : > { %v4955_v23 = vpop.f32.mrf.mxu0 }
 0x18c   : > { %v1996_v8 = vadd.f32 %v4955_v23, %v1747_v48 }
 0x18d   : > { %v3485_v12 = vpop.f32.mrf.mxu0 }
 0x18e   : > { %v2213_v25 = vadd.f32 %v3485_v12, %v2103_v29 }
 0x18f   : > { %v2180_v14 = vpop.f32.mrf.mxu0 }
 0x191   : > { %v3486_v50 = vpop.f32.mrf.mxu0 }
 0x192   : > { %v2214_v54 = vadd.f32 %v3486_v50, %v2104_v3 }
 0x193   : > { %v2183_v61 = vpop.f32.mrf.mxu0 }
 0x194   : > { %v2212_v57 = vadd.f32 %v2183_v61, %v2102_v30 }
 0x196   : > { %v3479_v51 = vpop.f32.mrf.mxu1 }
 0x197   : > { %v2107_v16 = vadd.f32 %v3479_v51, %v1997_v35 }
 0x198   : > { %v2086_v32 = vpop.f32.mrf.mxu1 }
 0x199   : > { %v2105_v2 = vadd.f32 %v2086_v32, %v1995_v55 }
 0x19a   : > { %v3480_v24 = vpop.f32.mrf.mxu1 }
 0x19b   : > { %v2108_v27 = vadd.f32 %v3480_v24, %v1998_v1 }
 0x19c   : > { %v4957_v0 = vpop.f32.mrf.mxu1 }
 0x19d   : > { %5142 = vst [vmem:[#allocation8_spill] sm:$0xff] %v4957_v0  ;;  %v2211_v0 = vadd.f32 %v2180_v14, %v2101_v20 }
 0x1a1   : > { %v3495_v4 = vpop.f32.mrf.mxu1 }
 0x1a2   : > { %v3489_v58 = vpop.f32.mrf.mxu0  ;;  %v2451_v19 = vadd.f32 %v3495_v4, %v2213_v25 }
 0x1a3   : > { %v2418_v33 = vpop.f32.mrf.mxu1  ;;  %v2217_v12 = vadd.f32 %v3489_v58, %v2107_v16 }
 0x1a4   : > { %v2196_v28 = vpop.f32.mrf.mxu0  ;;  %v2449_v47 = vadd.f32 %v2418_v33, %v2211_v0  ;;  %v5144_v63 = vld [vmem:[#allocation8_spill] sm:$0xff] }
 0x1a5   : > { %v3496_v37 = vpop.f32.mrf.mxu1  ;;  %v2106_v6 = vadd.f32 %v5144_v63, %v1996_v8  ;;  %v2215_v62 = vadd.f32 %v2196_v28, %v2105_v2  ;;  %v3293_v8 = vld [vmem:[%s5025_s7] ss:$0 sm:$0xff] }
 0x1a6   : > { %v3490_v56 = vpop.f32.mrf.mxu0  ;;  %v2452_v14 = vadd.f32 %v3496_v37, %v2214_v54 }
 0x1a7   : > { %v2421_v15 = vpop.f32.mrf.mxu1  ;;  %v2218_v7 = vadd.f32 %v3490_v56, %v2108_v27 }
 0x1a8   : > { %v4959_v44 = vpop.f32.mrf.mxu0  ;;  %v2450_v51 = vadd.f32 %v2421_v15, %v2212_v57 }
 0x1a9   : > { %5143 = vst [vmem:[#allocation13_spill] sm:$0xff] %v4959_v44 }
 0x1aa   : > { %v3505_v42 = vpop.f32.mrf.mxu0 }
 0x1ab   : > { %v2547_v31 = vadd.f32 %v3505_v42, %v2451_v19 }
 0x1ac   : > { %v2514_v41 = vpop.f32.mrf.mxu0 }
 0x1ad   : > { %v2545_v4 = vadd.f32 %v2514_v41, %v2449_v47 }
 0x1ae   : > { %v3506_v34 = vpop.f32.mrf.mxu0 }
 0x1af   : > { %v2548_v50 = vadd.f32 %v3506_v34, %v2452_v14  ;;  %v4970_v34 = vld [vmem:[%s5023_s5] ss:$0 sm:$0xff] }
 0x1b0   : > { %v2517_v9 = vpop.f32.mrf.mxu0  ;;  %v5145_v36 = vld [vmem:[#allocation13_spill] sm:$0xff] }
 0x1b1   : > { %v3499_v46 = vpop.f32.mrf.mxu1  ;;  %v2546_v58 = vadd.f32 %v2517_v9, %v2450_v51  ;;  %v2216_v23 = vadd.f32 %v5145_v36, %v2106_v6 }
 0x1b2   : > { %v3509_v43 = vpop.f32.mrf.mxu0  ;;  %v2455_v0 = vadd.f32 %v3499_v46, %v2217_v12 }
 0x1b3   : > { %v2434_v17 = vpop.f32.mrf.mxu1 }
 0x1b4   : > { %v2530_v22 = vpop.f32.mrf.mxu0  ;;  %v2453_v32 = vadd.f32 %v2434_v17, %v2215_v62  ;;  %v2551_v59 = vadd.f32 %v3509_v43, %v2455_v0 }
 0x1b5   : > { %v3500_v44 = vpop.f32.mrf.mxu1 }
 0x1b6   : > { %v3510_v39 = vpop.f32.mrf.mxu0  ;;  %v2456_v24 = vadd.f32 %v3500_v44, %v2218_v7  ;;  %v2549_v20 = vadd.f32 %v2530_v22, %v2453_v32 }
 0x1b7   : > { %v2437_v5 = vpop.f32.mrf.mxu1 }
 0x1b8   : > { %v2533_v10 = vpop.f32.mrf.mxu0  ;;  %v2454_v9 = vadd.f32 %v2437_v5, %v2216_v23  ;;  %v2552_v25 = vadd.f32 %v3510_v39, %v2456_v24 }
 0x1b9   : > { %v3515_v52 = vpop.f32.mrf.mxu1 }
 0x1ba   : > { %v2643_v38 = vadd.f32 %v3515_v52, %v2547_v31  ;;  %v3525_v11 = vpop.f32.mrf.mxu0  ;;  %v2550_v5 = vadd.f32 %v2533_v10, %v2454_v9 }
 0x1bb   : > { %v2610_v60 = vpop.f32.mrf.mxu1 }
 0x1bc   : > { %v2641_v33 = vadd.f32 %v2610_v60, %v2545_v4  ;;  %v2722_v42 = vpop.f32.mrf.mxu0  ;;  %v2755_v37 = vadd.f32 %v3525_v11, %v2643_v38 }
 0x1bd   : > { %v3516_v61 = vpop.f32.mrf.mxu1 }
 0x1be   : > { %v2644_v41 = vadd.f32 %v3516_v61, %v2548_v50  ;;  %v3526_v18 = vpop.f32.mrf.mxu0  ;;  %v2753_v15 = vadd.f32 %v2722_v42, %v2641_v33  ;;  %v2806_v26 = vadd.f32 %v4970_v34, %v2755_v37  ;;  %v2777_v22 = vmul.f32 %v2755_v37, %v2755_v37 }
 0x1bf   : > { %v2613_v46 = vpop.f32.mrf.mxu1 }
 0x1c0   : > { %v2756_v28 = vadd.f32 %v3526_v18, %v2644_v41  ;;  %v2642_v56 = vadd.f32 %v2613_v46, %v2546_v58  ;;  %v2725_v40 = vpop.f32.mrf.mxu0  ;;  %v2775_v49 = vmul.f32 %v2753_v15, %v2753_v15  ;;  %v2804_v35 = vadd.f32 %v4970_v34, %v2753_v15 }
 0x1c1   : > { %v3519_v29 = vpop.f32.mrf.mxu1 }
 0x1c2   : > { %v2807_v21 = vadd.f32 %v4970_v34, %v2756_v28  ;;  %v2754_v17 = vadd.f32 %v2725_v40, %v2642_v56  ;;  %v2647_v44 = vadd.f32 %v3519_v29, %v2551_v59  ;;  %v3529_v45 = vpop.f32.mrf.mxu0  ;;  %v2778_v57 = vmul.f32 %v2756_v28, %v2756_v28 }
 0x1c3   : > { %v2626_v43 = vpop.f32.mrf.mxu1 }
 0x1c4   : > { %v3376_v3 = vpack.c.bf16 %v2807_v21, %v2806_v26  ;;  %v2761_v19 = vadd.f32 %v2754_v17, %v2753_v15  ;;  %v2776_v53 = vmul.f32 %v2754_v17, %v2754_v17  ;;  %v2805_v13 = vadd.f32 %v4970_v34, %v2754_v17  ;;  %v2738_v30 = vpop.f32.mrf.mxu0 }
 0x1c5   : > { %v2759_v39 = vadd.f32 %v3529_v45, %v2647_v44  ;;  %v2645_v54 = vadd.f32 %v2626_v43, %v2549_v20  ;;  %v3520_v16 = vpop.f32.mrf.mxu1 }
 0x1c6   : > { %3388 = vst [vmem:[%s4979_s26 + $0x8] sm:$0xff] %v3376_v3   ;;  %v2762_v47 = vadd.f32 %v2761_v19, %v2755_v37  ;;  %v2783_v31 = vadd.f32 %v2776_v53, %v2775_v49  ;;  %v3371_v48 = vpack.c.bf16 %v2805_v13, %v2804_v35  ;;  %v2648_v55 = vadd.f32 %v3520_v16, %v2552_v25  ;;  %v3530_v1 = vpop.f32.mrf.mxu0 }
 0x1c7   : > { %v2757_v52 = vadd.f32 %v2738_v30, %v2645_v54  ;;  %v2629_v12 = vpop.f32.mrf.mxu1  ;;  %v2810_v2 = vadd.f32 %v4970_v34, %v2759_v39  ;;  %v2781_v23 = vmul.f32 %v2759_v39, %v2759_v39 }
 0x1c8   : > { %v2784_v14 = vadd.f32 %v2783_v31, %v2777_v22  ;;  %3372 = vst [vmem:[%s4979_s26] sm:$0xff] %v3371_v48   ;;  %v2763_v4 = vadd.f32 %v2762_v47, %v2756_v28  ;;  %v2760_v38 = vadd.f32 %v3530_v1, %v2648_v55  ;;  %v2646_v10 = vadd.f32 %v2629_v12, %v2550_v5  ;;  %v2741_v11 = vpop.f32.mrf.mxu0 }
 0x1c9   : > { %v3535_v27 = vpop.f32.mrf.mxu1  ;;  %v2779_v51 = vmul.f32 %v2757_v52, %v2757_v52  ;;  %v2808_v61 = vadd.f32 %v4970_v34, %v2757_v52 }
 0x1ca   : > { %v2764_v60 = vadd.f32 %v2763_v4, %v2757_v52  ;;  %v2785_v50 = vadd.f32 %v2784_v14, %v2778_v57  ;;  %v2811_v0 = vadd.f32 %v4970_v34, %v2760_v38  ;;  %v2758_v33 = vadd.f32 %v2741_v11, %v2646_v10 }
 0x1cb   : > { %v2922_v42 = vadd.f32 %v3535_v27, %v3293_v8  ;;  %v2913_v63 = vpop.f32.mrf.mxu1  ;;  %v2782_v28 = vmul.f32 %v2760_v38, %v2760_v38 }
 0x1cc   : > { %v2786_v6 = vadd.f32 %v2785_v50, %v2779_v51  ;;  %v3386_v62 = vpack.c.bf16 %v2811_v0, %v2810_v2  ;;  %v2914_v7 = vadd.f32 %v3293_v8, %v2913_v63  ;;  %v2765_v58 = vadd.f32 %v2764_v60, %v2758_v33 }
 0x1cd   : > { %v2780_v37 = vmul.f32 %v2758_v33, %v2758_v33  ;;  %v2809_v41 = vadd.f32 %v4970_v34, %v2758_v33  ;;  %2946 = vst [vmem:[%s4993_s13 + $0x10] sm:$0xff] %v2922_v42  ;;  %v3536_v18 = vpop.f32.mrf.mxu1 }
 0x1ce   : > { %3390 = vst [vmem:[%s4979_s26 + $0x18] sm:$0xff] %v3386_v62   ;;  %2944 = vst [vmem:[%s4993_s13] sm:$0xff] %v2914_v7  ;;  %v2925_v36 = vadd.f32 %v3536_v18, %v3293_v8  ;;  %v2766_v32 = vadd.f32 %v2765_v58, %v2759_v39 }
 0x1cf   : > { %v2787_v24 = vadd.f32 %v2786_v6, %v2780_v37  ;;  %v3381_v15 = vpack.c.bf16 %v2809_v41, %v2808_v61  ;;  %v2916_v46 = vpop.f32.mrf.mxu1 }
 0x1d0   : > { %2947 = vst [vmem:[%s4993_s13 + $0x18] sm:$0xff] %v2925_v36  ;;  %v2917_v59 = vadd.f32 %v3293_v8, %v2916_v46  ;;  %v2767_v56 = vadd.f32 %v2766_v32, %v2760_v38 }
 0x1d1   : > { %v2788_v40 = vadd.f32 %v2787_v24, %v2781_v23  ;;  %3389 = vst [vmem:[%s4979_s26 + $0x10] sm:$0xff] %v3381_v15   ;;  %v3539_v34 = vpop.f32.mrf.mxu1 }
 0x1d2   : > { %2945 = vst [vmem:[%s4993_s13 + $0x8] sm:$0xff] %v2917_v59  ;;  %v2938_v9 = vadd.f32 %v3539_v34, %v3293_v8  ;;  %v2768_v29 = vrot.slane %v2767_v56, 4 }
 0x1d3   : > { %v2789_v26 = vadd.f32 %v2788_v40, %v2782_v28  ;;  %v2929_v21 = vpop.f32.mrf.mxu1 }
 0x1d4   : > { %2950 = vst [vmem:[%s4993_s13 + $0x30] sm:$0xff] %v2938_v9  ;;  %v2930_v17 = vadd.f32 %v3293_v8, %v2929_v21  ;;  %v2769_v44 = vadd.f32 %v2768_v29, %v2767_v56 }
 0x1d5   : > { %v2790_v45 = vrot.slane %v2789_v26, 4  ;;  %v3540_v20 = vpop.f32.mrf.mxu1 }
 0x1d6   : > { %2948 = vst [vmem:[%s4993_s13 + $0x20] sm:$0xff] %v2930_v17  ;;  %v2941_v25 = vadd.f32 %v3540_v20, %v3293_v8  ;;  %v2770_v49 = vrot.slane %v2769_v44, 2 }
 0x1d7   : > { %v2791_v35 = vadd.f32 %v2790_v45, %v2789_v26  ;;  %v2932_v43 = vpop.f32.mrf.mxu1 }
 0x1d8   : > { %2951 = vst [vmem:[%s4993_s13 + $0x38] sm:$0xff] %v2941_v25  ;;  %v2933_v3 = vadd.f32 %v3293_v8, %v2932_v43  ;;  %v2771_v19 = vadd.f32 %v2770_v49, %v2769_v44 }
 0x1d9   : > { %v2792_v53 = vrot.slane %v2791_v35, 2 }
 0x1da   : > { %2949 = vst [vmem:[%s4993_s13 + $0x28] sm:$0xff] %v2933_v3  ;;  %v2772_v13 = vrot.slane %v2771_v19, 1 }
 0x1db   : > { %v2793_v30 = vadd.f32 %v2792_v53, %v2791_v35 }
 0x1dc   : > { %v2773_v5 = vadd.f32 %v2772_v13, %v2771_v19 }
 0x1dd   : > { %v2794_v22 = vrot.slane %v2793_v30, 1 }
 0x1de   : > { %2774 = vst [vmem:[%s412_s15] sm:$0x1] %v2773_v5 }
 0x1df   : > { %v2795_v39 = vadd.f32 %v2794_v22, %v2793_v30 }
 0x1e1   : > { %2796 = vst [vmem:[%s415_s20] sm:$0x1] %v2795_v39 }
 0x1e2 PF: > { %s22_s17 = sadd.s32 1, %s3673_s17  }
 0x1e3   : > { %p19_p4 = scmp.ge.s32.totalorder %s22_s17, 4  }
 0x1e5   :  { %21 = sbr.rel (!%p19_p4) target bundleno = 1 (0x1), region = 126 }

// kernel: residual_block_forward.5
= control target key start
LH: loop header
LB: loop body
LE: loop exit
PB: predicated region body
PF: predicated region fallthrough
CT: control target
= control target key end

     0   :  { %s2961_s24 = smov 0   ;;  %s3777_s0 = inlined_call_operand.vmem [shape: bf16[2,10,10,128], index: 0, kind: input, shape index: {}]   ;;  %s3778_s1 = inlined_call_operand.vmem [shape: f32[10,10,1], index: 1, kind: input, shape index: {}]   ;;  %s3779_s2 = inlined_call_operand.vmem [shape: f32[1,128], index: 2, kind: input, shape index: {}]   ;;  %s3780_s3 = inlined_call_operand.vmem [shape: f32[1,128], index: 3, kind: input, shape index: {}]   ;;  %s3781_s4 = inlined_call_operand.vmem [shape: bf16[9,128,128], index: 4, kind: input, shape index: {}]   ;;  %s3782_s5 = inlined_call_operand.vmem [shape: f32[1,128], index: 5, kind: input, shape index: {}]   ;;  %s3783_s6 = inlined_call_operand.vmem [shape: f32[2,64,128], index: 6, kind: input, shape index: {}]   ;;  %s3784_s7 = inlined_call_operand.vmem [shape: f32[2,64,128], index: 7, kind: output, shape index: {}]  }
   0x1 LB: > { %s2185_s25 = sadd.s32 4294967295, %s2918_s24   ;;  %p2189_p0 = scmp.ge.s32.totalorder %s2918_s24, 1  ;;  %s2918_s24 = sphi %s2961_s24, %s17_s24  }
   0x2   : > { %p247_p1 = scmp.lt.s32.totalorder %s2918_s24, 3 }
   0x4   : > { %p248_p2 = pnand %p2189_p0, %p247_p1 }
   0x6   : > { %251 = sbr.rel (%p248_p2) target bundleno = 496 (0x1f0), region = 48 }
   0xb   : > { %v398_v0 = vld [vmem:[%s3778_s1 + $0x20] sm:$0xff]  ;;  %v2920_v2 = vmov 0   ;;  %v400_v3 = vld [vmem:[%s3778_s1 + $0x30] sm:$0xff]  ;;  %v397_v5 = vld [vmem:[%s3778_s1 + $0x18] sm:$0x3]  ;;  %p284_p3 = scmp.lt.s32.totalorder %s2185_s25, 1 }
   0xc   : > { %v394_v1 = vld [vmem:[%s3778_s1] sm:$0xff]  ;;  %2839 = vset.pattern.permute.xlu1 %v2920_v2  ;;  %2838 = vset.pattern.permute.xlu0 %v2920_v2  ;;  %v396_v4 = vld [vmem:[%s3778_s1 + $0x10] sm:$0xff]  ;;  %v395_v6 = vld [vmem:[%s3778_s1 + $0x8] sm:$0x3]  ;;  %vm600_vm0 = vsmask.f32 3328 }
   0xd   : > { %436 = vperm.xlu1 %2839, %v398_v0   ;;  %416 = vperm.xlu0 %2838, %v394_v1   ;;  %v2840_v7 = vld [vmem:[%s3781_s4 + $0x38] sm:$0xff]   ;;  %v2841_v8 = vld [vmem:[%s3781_s4 + $0x30] sm:$0xff]   ;;  %v399_v10 = vld [vmem:[%s3778_s1 + $0x28] sm:$0x3]  ;;  %s3794_s25 = smov (!%p284_p3, %s2185_s25), 1  ;;  %vm982_vm3 = vcmask 1042432  }
   0xe   : > { %v401_v9 = vld [vmem:[%s3778_s1 + $0x38] sm:$0x3]  ;;  %2620 = vmatprep.subr.bf16.mxu1 %v2840_v7  ;;  %v2842_v12 = vld [vmem:[%s3781_s4 + $0x28] sm:$0xff]   ;;  %v2846_v13 = vld [vmem:[%s3781_s4 + $0x70] sm:$0xff]   ;;  %s2828_s23 = smul.u32 80, %s3794_s25  ;;  %vm983_vm4 = vcmask 1046532  }
   0xf   : > { %2621 = vmatpush3.bf16.msra.mxu1 %v2840_v7  ;;  %v2844_v11 = vld [vmem:[%s3781_s4 + $0x78] sm:$0xff]   ;;  %v404_v14 = vld [vmem:[%s3778_s1 + $0x50] sm:$0xff]  ;;  %v402_v15 = vld [vmem:[%s3778_s1 + $0x40] sm:$0xff]  ;;  %vm601_vm1 = vsmask.f32 7440  ;;  %s2457_s29 = sshll.u32 %s3794_s25, 6 }
  0x10   : > { %2622 = vmatprep.subr.bf16.mxu1 %v2841_v8  ;;  %2596 = vmatprep.subr.bf16.mxu0 %v2844_v11  ;;  %v2843_v16 = vld [vmem:[%s3781_s4 + $0x20] sm:$0xff]   ;;  %v2848_v17 = vld [vmem:[%s3781_s4 + $0x68] sm:$0xff]   ;;  %v408_v18 = vld [vmem:[%s3778_s1 + $0x70] sm:$0xff]  ;;  %s3089_s15 = scalar_lea.vmem %s3777_s0, %s2828_s23  ;;  %s3708_s9 = scalar_lea.vmem %s3783_s6, %s2457_s29 }
  0x11   : > { %446 = vperm.xlu1 %2839, %v400_v3   ;;  %426 = vperm.xlu0 %2838, %v396_v4   ;;  %v406_v19 = vld [vmem:[%s3778_s1 + $0x60] sm:$0xff]  ;;  %v2845_v20 = vld [vmem:[%s3781_s4 + $0x18] sm:$0xff]   ;;  %v403_v23 = vld [vmem:[%s3778_s1 + $0x48] sm:$0x3]  ;;  %s3730_s13 = scalar_lea.vmem %s3784_s7, %s2457_s29 }
  0x12   : > { %2597 = vmatpush3.bf16.msra.mxu0 %v2844_v11  ;;  %v2850_v21 = vld [vmem:[%s3781_s4 + $0x60] sm:$0xff]   ;;  %v405_v22 = vld [vmem:[%s3778_s1 + $0x58] sm:$0x3]  ;;  %v2847_v24 = vld [vmem:[%s3781_s4 + $0x10] sm:$0xff]  }
  0x13   : > { %2623 = vmatpush3.bf16.msra.mxu1 %v2841_v8  ;;  %2598 = vmatprep.subr.bf16.mxu0 %v2846_v13  ;;  %v2852_v25 = vld [vmem:[%s3781_s4 + $0x58] sm:$0xff]   ;;  %v407_v27 = vld [vmem:[%s3778_s1 + $0x68] sm:$0x3]  ;;  %v2854_v29 = vld [vmem:[%s3781_s4 + $0x50] sm:$0xff]  }
  0x14   : > { %2624 = vmatprep.subr.bf16.mxu1 %v2842_v12  ;;  %v409_v26 = vld [vmem:[%s3778_s1 + $0x78] sm:$0x3]  ;;  %v2849_v28 = vld [vmem:[%s3781_s4 + $0x8] sm:$0xff]   ;;  %v410_v31 = vld [vmem:[%s3778_s1 + $0x80] sm:$0xff] }
  0x15   : > { %431 = vperm.xlu1 %2839, %v397_v5   ;;  %421 = vperm.xlu0 %2838, %v395_v6   ;;  %v411_v30 = vld [vmem:[%s3778_s1 + $0x88] sm:$0x3]  ;;  %v2851_v32 = vld [vmem:[%s3781_s4] sm:$0xff]   ;;  %v413_v34 = vld [vmem:[%s3778_s1 + $0x98] sm:$0x3] }
  0x16   : > { %2599 = vmatpush3.bf16.msra.mxu0 %v2846_v13  ;;  %v2856_v33 = vld [vmem:[%s3781_s4 + $0x48] sm:$0xff]   ;;  %v412_v35 = vld [vmem:[%s3778_s1 + $0x90] sm:$0xff]  ;;  %v3084_v36 = vld [vmem:[%s3781_s4 + $0xf8] sm:$0xff]  }
  0x17   : > { %2625 = vmatpush3.bf16.msra.mxu1 %v2842_v12  ;;  %2600 = vmatprep.subr.bf16.mxu0 %v2848_v17  ;;  %v2858_v37 = vld [vmem:[%s3781_s4 + $0x40] sm:$0xff]   ;;  %v3107_v43 = vld [vmem:[%s3781_s4 + $0xb8] sm:$0xff]   ;;  %v319_v45 = vld [vmem:[%s3089_s15 + $0x4c] sm:$0x1] }
  0x18   : > { %2626 = vmatprep.subr.bf16.mxu1 %v2843_v16  ;;  %v317_v38 = vld [vmem:[%s3089_s15 + $0x44] sm:$0x1]  ;;  %v3096_v39 = vld [vmem:[%s3089_s15 + $0x40] ss:$8 sps:$4 sm:$0xff]   ;;  %v339_v47 = vunpack.c.l.bf16 %v319_v45  ;;  %v303_v57 = vld [vmem:[%s3089_s15 + $0xc] sm:$0x1] }
  0x19   : > { %451 = vperm.xlu1 %2839, %v401_v9   ;;  %441 = vperm.xlu0 %2838, %v399_v10   ;;  %v3101_v40 = vld [vmem:[%s3779_s2] ss:$0 sm:$0xff]  ;;  %v337_v41 = vunpack.c.l.bf16 %v317_v38  ;;  %v338_v42 = vunpack.c.h.bf16 %v3096_v39  ;;  %v306_v54 = vld [vmem:[%s3089_s15 + $0x8] ss:$16 sps:$4 sm:$0xff]   ;;  %v301_v59 = vld [vmem:[%s3089_s15 + $0x4] sm:$0x1]  ;;  %v323_v1 = vunpack.c.l.bf16 %v303_v57 }
  0x1a   : > { %2601 = vmatpush3.bf16.msra.mxu0 %v2848_v17  ;;  %v3115_v46 = vld [vmem:[%s3780_s3] ss:$0 sm:$0xff]  ;;  %v366_v50 = vmul.f32 %v3101_v40, %v339_v47  ;;  %v326_v58 = vunpack.c.h.bf16 %v306_v54  ;;  %v307_v60 = vld [vmem:[%s3089_s15 + $0x1c] sm:$0x1]  ;;  %v305_v61 = vld [vmem:[%s3089_s15 + $0x14] sm:$0x1]  ;;  %v322_v0 = vunpack.c.l.bf16 %v306_v54  ;;  %v321_v4 = vunpack.c.l.bf16 %v301_v59 }
  0x1b   : > { %2627 = vmatpush3.bf16.msra.mxu1 %v2843_v16  ;;  %2602 = vmatprep.subr.bf16.mxu0 %v2850_v21  ;;  %v364_v44 = vmul.f32 %v3101_v40, %v337_v41  ;;  %v365_v48 = vmul.f32 %v3101_v40, %v338_v42  ;;  %v304_v53 = vld [vmem:[%s3089_s15] ss:$16 sps:$4 sm:$0xff]   ;;  %v327_v5 = vunpack.c.l.bf16 %v307_v60  ;;  %v325_v6 = vunpack.c.l.bf16 %v305_v61  ;;  %vm3254_vm2 = vmor %vm600_vm0, %vm601_vm1 }
  0x1c   : > { %2628 = vmatprep.subr.bf16.mxu1 %v2845_v20  ;;  %v3127_v52 = vadd.f32 %v3115_v46, %v366_v50  ;;  %v324_v55 = vunpack.c.h.bf16 %v304_v53  ;;  %v320_v56 = vunpack.c.l.bf16 %v304_v53  ;;  %v310_v2 = vld [vmem:[%s3089_s15 + $0x20] ss:$8 sps:$4 sm:$0xff]   ;;  %v314_v3 = vld [vmem:[%s3089_s15 + $0x30] ss:$8 sps:$4 sm:$0xff]   ;;  %v353_v7 = vmul.f32 %v3101_v40, %v326_v58  ;;  %vm3385_vm5 = vmor %vm982_vm3, %vm983_vm4 }
  0x1d   : > { %466 = vperm.xlu1 %2839, %v404_v14   ;;  %456 = vperm.xlu0 %2838, %v402_v15   ;;  %v3119_v49 = vadd.f32 %v3115_v46, %v364_v44  ;;  %v3123_v51 = vadd.f32 %v3115_v46, %v365_v48  ;;  %v330_v8 = vunpack.c.h.bf16 %v310_v2  ;;  %v328_v9 = vunpack.c.l.bf16 %v310_v2  ;;  %v313_v44 = vld [vmem:[%s3089_s15 + $0x34] sm:$0x1] }
  0x1e   : > { %2603 = vmatpush3.bf16.msra.mxu0 %v2850_v21  ;;  %v351_v62 = vmul.f32 %v3101_v40, %v324_v55  ;;  %v347_v63 = vmul.f32 %v3101_v40, %v320_v56  ;;  %v334_v10 = vunpack.c.h.bf16 %v314_v3  ;;  %v349_v13 = vmul.f32 %v3101_v40, %v322_v0 }
  0x1f   : > { %2629 = vmatpush3.bf16.msra.mxu1 %v2845_v20  ;;  %2604 = vmatprep.subr.bf16.mxu0 %v2852_v25  ;;  %v350_v14 = vmul.f32 %v3101_v40, %v323_v1  ;;  %v348_v15 = vmul.f32 %v3101_v40, %v321_v4  ;;  %v354_v16 = vmul.f32 %v3101_v40, %v327_v5 }
  0x20   : > { %2630 = vmatprep.subr.bf16.mxu1 %v2847_v24  ;;  %v378_v11 = vadd.f32 %v3115_v46, %v351_v62  ;;  %v374_v12 = vadd.f32 %v3115_v46, %v347_v63  ;;  %v352_v17 = vmul.f32 %v3101_v40, %v325_v6  ;;  %v333_v62 = vunpack.c.l.bf16 %v313_v44 }
  0x21   : > { %486 = vperm.xlu1 %2839, %v408_v18   ;;  %476 = vperm.xlu0 %2838, %v406_v19   ;;  %v380_v18 = vadd.f32 %v3115_v46, %v353_v7  ;;  %v311_v19 = vld [vmem:[%s3089_s15 + $0x2c] sm:$0x1] }
  0x22   : > { %2605 = vmatpush3.bf16.msra.mxu0 %v2852_v25  ;;  %v332_v25 = vunpack.c.l.bf16 %v314_v3 }
  0x23   : > { %2631 = vmatpush3.bf16.msra.mxu1 %v2847_v24  ;;  %2606 = vmatprep.subr.bf16.mxu0 %v2854_v29  ;;  %v361_v24 = vmul.f32 %v3101_v40, %v334_v10 }
  0x24   : > { %2632 = vmatprep.subr.bf16.mxu1 %v2849_v28  ;;  %v359_v54 = vmul.f32 %v3101_v40, %v332_v25 }
  0x25   : > { %471 = vperm.xlu1 %2839, %v405_v22   ;;  %461 = vperm.xlu0 %2838, %v403_v23   ;;  %v357_v22 = vmul.f32 %v3101_v40, %v330_v8  ;;  %v355_v23 = vmul.f32 %v3101_v40, %v328_v9  ;;  %v3179_v53 = vadd.f32 %v3115_v46, %v361_v24 }
  0x26   : > { %2607 = vmatpush3.bf16.msra.mxu0 %v2854_v29  ;;  %v386_v24 = vadd.f32 %v3115_v46, %v359_v54 }
  0x27   : > { %2633 = vmatpush3.bf16.msra.mxu1 %v2849_v28  ;;  %2608 = vmatprep.subr.bf16.mxu0 %v2856_v33  ;;  %v3173_v48 = vadd.f32 %v3115_v46, %v357_v22  ;;  %v3176_v50 = vadd.f32 %v3115_v46, %v355_v23 }
  0x28   : > { %2634 = vmatprep.subr.bf16.mxu1 %v2851_v32 }
  0x29   : > { %491 = vperm.xlu1 %2839, %v409_v26   ;;  %481 = vperm.xlu0 %2838, %v407_v27   ;;  %v309_v26 = vld [vmem:[%s3089_s15 + $0x24] sm:$0x1]  ;;  %v315_v27 = vld [vmem:[%s3089_s15 + $0x3c] sm:$0x1] }
  0x2a   : > { %2609 = vmatpush3.bf16.msra.mxu0 %v2856_v33  ;;  %v3160_v33 = vadd.f32 %v3115_v46, %v354_v16  ;;  %v329_v41 = vunpack.c.l.bf16 %v309_v26  ;;  %v335_v42 = vunpack.c.l.bf16 %v315_v27 }
  0x2b   : > { %2635 = vmatpush3.bf16.msra.mxu1 %v2851_v32  ;;  %2610 = vmatprep.subr.bf16.mxu0 %v2858_v37  ;;  %v375_v32 = vadd.f32 %v3115_v46, %v348_v15 }
  0x2c   : > { %2668 = vmatprep.subr.bf16.mxu1 %v3084_v36  ;;  %v356_v1 = vmul.f32 %v3101_v40, %v329_v41  ;;  %v362_v2 = vmul.f32 %v3101_v40, %v335_v42 }
  0x2d   : > { %501 = vperm.xlu1 %2839, %v411_v30   ;;  %496 = vperm.xlu0 %2838, %v410_v31   ;;  %v376_v30 = vadd.f32 %v3115_v46, %v349_v13  ;;  %v377_v31 = vadd.f32 %v3115_v46, %v350_v14 }
  0x2e   : > { %2611 = vmatpush3.bf16.msra.mxu0 %v2858_v37  ;;  %v383_v44 = vadd.f32 %v3115_v46, %v356_v1  ;;  %v2859_v1 = vld [vmem:[%s3781_s4 + $0xe0] sm:$0xff]  }
  0x2f   : > { %2644 = vmatprep.subr.bf16.mxu0 %v3107_v43 }
  0x31   : > { %511 = vperm.xlu1 %2839, %v413_v34   ;;  %506 = vperm.xlu0 %2838, %v412_v35   ;;  %v3163_v34 = vadd.f32 %v3115_v46, %v352_v17  ;;  %v331_v35 = vunpack.c.l.bf16 %v311_v19  ;;  %v360_v17 = vmul.f32 %v3101_v40, %v333_v62 }
  0x33   : > { %v358_v61 = vmul.f32 %v3101_v40, %v331_v35 }
  0x35   : > { %v3223_v27 = vadd.f32 %v3115_v46, %v358_v61 }
  0x88   : > { %v437_v20 = vpop.permute.xlu1 %436  ;;  %v417_v21 = vpop.permute.xlu0 %416 }
  0x89   : > { %v3154_v28 = vmul.f32 %v437_v20, %v378_v11  ;;  %v514_v29 = vmul.f32 %v417_v21, %v374_v12  ;;  %v2855_v11 = vld [vmem:[%s3781_s4 + $0xf0] sm:$0xff]   ;;  %v336_v21 = vunpack.c.l.bf16 %v3096_v39  ;;  %v2857_v39 = vld [vmem:[%s3781_s4 + $0xe8] sm:$0xff]  }
  0x8b   : > { %v3167_v37 = vpack.c.bf16 %v3154_v28, %v3154_v28  ;;  %v3169_v38 = vpack.c.bf16 %v514_v29, %v514_v29  ;;  %v3240_v54 = vmul.f32 %v3101_v40, %v336_v21 }
  0x8c   : > { %v447_v45 = vpop.permute.xlu1 %446  ;;  %v427_v47 = vpop.permute.xlu0 %426 }
  0x8d   : > { %v632_v55 = vshrl.u32 %v3167_v37, 16  ;;  %v635_v56 = vshll.u32 %v3167_v37, 16  ;;  %v604_v57 = vshrl.u32 %v3169_v38, 16  ;;  %v607_v58 = vshll.u32 %v3169_v38, 16 }
  0x8e   : > { %v3186_v59 = vmul.f32 %v447_v45, %v380_v18  ;;  %v3188_v60 = vmul.f32 %v427_v47, %v376_v30  ;;  %v3234_v45 = vadd.f32 %v3115_v46, %v362_v2  ;;  %v3237_v47 = vadd.f32 %v3115_v46, %v360_v17 }
  0x8f   : > { %v606_v63 = vrot.slane %v604_v57, 4  ;;  %v609_v0 = vrot.slane %v607_v58, 5  ;;  %v634_v12 = vrot.slane %v632_v55, 4  ;;  %v637_v13 = vrot.slane %v635_v56, 5 }
  0x90   : > { %v3195_v3 = vpack.c.bf16 %v3186_v59, %v3186_v59  ;;  %v3199_v4 = vpack.c.bf16 %v3188_v60, %v3188_v60  ;;  %v432_v5 = vpop.permute.xlu1 %431  ;;  %v422_v6 = vpop.permute.xlu0 %421  ;;  %v2475_v7 = vpack.c.bf16 %v3188_v60, %v514_v29  ;;  %v3204_v8 = vpack.c.bf16 %v3186_v59, %v3154_v28 }
  0x91   : > { %v517_v9 = vmul.f32 %v432_v5, %v377_v31  ;;  %v515_v10 = vmul.f32 %v422_v6, %v375_v32  ;;  %v610_v25 = vor.u32 %v609_v0, %v606_v63  ;;  %v638_v32 = vor.u32 %v637_v13, %v634_v12 }
  0x92   : > { %v646_v14 = vshrl.u32 %v3195_v3, 16  ;;  %v649_v15 = vshll.u32 %v3195_v3, 16  ;;  %2636 = vmatprep.mubr.bf16.mxu1 %v2475_v7  ;;  %v618_v16 = vshrl.u32 %v3199_v4, 16  ;;  %v621_v20 = vshll.u32 %v3199_v4, 16 }
  0x93   : > { %v3213_v18 = vpack.c.bf16 %v517_v9, %v517_v9  ;;  %v3215_v19 = vpack.c.bf16 %v515_v10, %v515_v10  ;;  %2637 = vmatmul.mubr.bf16.vlgmr.msra.gmra.mxu1 %v3204_v8  ;;  %v611_v63 = vrot.slane %v610_v25, 4  ;;  %v639_v0 = vrot.slane %v638_v32, 4 }
  0x94   : > { %2669 = vmatpush3.bf16.msra.mxu1 %v3084_v36  ;;  %v452_v22 = vpop.permute.xlu1 %451  ;;  %v442_v23 = vpop.permute.xlu0 %441  ;;  %v620_v26 = vrot.slane %v618_v16, 4  ;;  %v648_v29 = vrot.slane %v646_v14, 4  ;;  %v651_v30 = vrot.slane %v649_v15, 5  ;;  %v623_v42 = vrot.slane %v621_v20, 5 }
  0x95   : > { %v613_v31 = vshll.u32 %v3215_v19, 16  ;;  %2670 = vmatprep.subr.bf16.mxu1 %v2855_v11  ;;  %v627_v36 = vshll.u32 %v3213_v18, 16  ;;  %v521_v35 = vmul.f32 %v452_v22, %v3160_v33  ;;  %v519_v41 = vmul.f32 %v442_v23, %v3163_v34 }
  0x96   : > { %v624_v58 = vor.u32 %v623_v42, %v620_v26  ;;  %v2479_v10 = vpack.c.bf16 %v3154_v28, %v3188_v60  ;;  %v2861_v60 = vld [vmem:[%s3781_s4 + $0xd8] sm:$0xff]  }
  0x97   : > { %v615_v55 = vrot.slane %v613_v31, 5  ;;  %v3242_v56 = vpack.c.bf16 %v521_v35, %v521_v35  ;;  %v3244_v57 = vpack.c.bf16 %v519_v41, %v519_v41  ;;  %v629_v2 = vrot.slane %v627_v36, 5 }
  0x98   : > { %2671 = vmatpush3.bf16.msra.mxu1 %v2855_v11  ;;  %v467_v33 = vpop.permute.xlu1 %466  ;;  %v457_v34 = vpop.permute.xlu0 %456  ;;  %v625_v9 = vrot.slane %v624_v58, 4  ;;  %v2863_v58 = vld [vmem:[%s3781_s4 + $0xd0] sm:$0xff]  }
  0x99   : > { %v3247_v61 = vmul.f32 %v467_v33, %v3173_v48  ;;  %v3250_v62 = vmul.f32 %v457_v34, %v3176_v50  ;;  %2672 = vmatprep.subr.bf16.mxu1 %v2857_v39  ;;  %v655_v48 = vshll.u32 %v3242_v56, 16  ;;  %v641_v5 = vshll.u32 %v3244_v57, 16 }
  0x9a   : > { %v652_v50 = vor.u32 %v651_v30, %v648_v29  ;;  %v616_v15 = vsel %vm3254_vm2, %v611_v63, %v615_v55  ;;  %v3293_v25 = vsel %vm3254_vm2, %v625_v9, %v629_v2 }
  0x9b   : > { %v3265_v6 = vpack.c.bf16 %v3247_v61, %v3247_v61  ;;  %v3269_v7 = vpack.c.bf16 %v3250_v62, %v3250_v62  ;;  %v657_v11 = vrot.slane %v655_v48, 5  ;;  %v643_v12 = vrot.slane %v641_v5, 5  ;;  %v2862_v5 = vld [vmem:[%s3781_s4 + $0xb0] sm:$0xff]  }
  0x9c   : > { %2673 = vmatpush3.bf16.msra.mxu1 %v2857_v39  ;;  %v487_v13 = vpop.permute.xlu1 %486  ;;  %v477_v14 = vpop.permute.xlu0 %476  ;;  %v3277_v16 = vpack.c.bf16 %v3247_v61, %v3250_v62  ;;  %v653_v26 = vrot.slane %v652_v50, 4  ;;  %v2229_v36 = vcombine.low %v616_v15, %v3293_v25 }
  0x9d   : > { %v674_v17 = vshrl.u32 %v3265_v6, 16  ;;  %v677_v20 = vshll.u32 %v3265_v6, 16  ;;  %v660_v21 = vshrl.u32 %v3269_v7, 16  ;;  %v663_v28 = vshll.u32 %v3269_v7, 16  ;;  %2674 = vmatprep.subr.bf16.mxu1 %v2859_v1 }
  0x9e   : > { %v3287_v22 = vmul.f32 %v487_v13, %v3179_v53  ;;  %v3289_v23 = vmul.f32 %v477_v14, %v386_v24  ;;  %2640 = vmatprep.mubr.bf16.mxu1 %v3277_v16  ;;  %v3300_v39 = vsel %vm3254_vm2, %v639_v0, %v643_v12  ;;  %v3314_v33 = vsel %vm3254_vm2, %v653_v26, %v657_v11 }
  0x9f   : > { %v3296_v29 = vrot.slane %v674_v17, 4  ;;  %v662_v30 = vrot.slane %v660_v21, 4  ;;  %v665_v31 = vrot.slane %v663_v28, 5  ;;  %v679_v32 = vrot.slane %v677_v20, 5  ;;  %2612 = vmatprep.mubr.bf16.mxu0 %v2229_v36  ;;  %v2865_v28 = vld [vmem:[%s3781_s4 + $0xc8] sm:$0xff]  }
  0xa0   : > { %v3304_v53 = vpack.c.bf16 %v3287_v22, %v3287_v22  ;;  %v3308_v24 = vpack.c.bf16 %v3289_v23, %v3289_v23  ;;  %2675 = vmatpush3.bf16.msra.mxu1 %v2859_v1  ;;  %v472_v35 = vpop.permute.xlu1 %471  ;;  %v462_v41 = vpop.permute.xlu0 %461  ;;  %v3318_v34 = vpack.c.bf16 %v3287_v22, %v3289_v23  ;;  %v3333_v48 = vcombine.low %v3300_v39, %v3314_v33 }
  0xa1   : > { %v525_v42 = vmul.f32 %v472_v35, %v3223_v27  ;;  %v523_v55 = vmul.f32 %v462_v41, %v383_v44  ;;  %2676 = vmatprep.subr.bf16.mxu1 %v2861_v60  ;;  %v666_v50 = vor.u32 %v665_v31, %v662_v30  ;;  %v390_v14 = vadd.f32 %v3115_v46, %v3240_v54  ;;  %v2864_v30 = vld [vmem:[%s3781_s4 + $0xa8] sm:$0xff]  }
  0xa2   : > { %v702_v63 = vshrl.u32 %v3304_v53, 16  ;;  %v705_v0 = vshll.u32 %v3304_v53, 16  ;;  %v688_v27 = vshrl.u32 %v3308_v24, 16  ;;  %v691_v44 = vshll.u32 %v3308_v24, 16  ;;  %2641 = vmatmul.mubr.bf16.gmra.mxu1 %v3318_v34  ;;  %2613 = vmatmul.mubr.bf16.vlgmr.msra.gmra.mxu0 %v3333_v48 }
  0xa3   : > { %v3327_v1 = vpack.c.bf16 %v525_v42, %v525_v42  ;;  %v3329_v2 = vpack.c.bf16 %v523_v55, %v523_v55  ;;  %2684 = vmatprep.mubr.bf16.mxu1 %v2479_v10  ;;  %2645 = vmatpush3.bf16.msra.mxu0 %v3107_v43  ;;  %v680_v46 = vor.u32 %v679_v32, %v3296_v29  ;;  %v667_v31 = vrot.slane %v666_v50, 4  ;;  %v2867_v42 = vld [vmem:[%s3781_s4 + $0xc0] sm:$0xff]  }
  0xa4   : > { %v690_v9 = vrot.slane %v688_v27, 4  ;;  %v693_v11 = vrot.slane %v691_v44, 5  ;;  %2677 = vmatpush3.bf16.msra.mxu1 %v2861_v60  ;;  %v492_v12 = vpop.permute.xlu1 %491  ;;  %v482_v13 = vpop.permute.xlu0 %481  ;;  %v704_v15 = vrot.slane %v702_v63, 4  ;;  %v707_v17 = vrot.slane %v705_v0, 5  ;;  %2646 = vmatprep.subr.bf16.mxu0 %v2862_v5  ;;  %v2866_v50 = vld [vmem:[%s3781_s4 + $0xa0] sm:$0xff]  }
  0xa5   : > { %v683_v20 = vshll.u32 %v3327_v1, 16  ;;  %v669_v21 = vshll.u32 %v3329_v2, 16  ;;  %2678 = vmatprep.subr.bf16.mxu1 %v2863_v58  ;;  %v529_v10 = vmul.f32 %v492_v12, %v3234_v45  ;;  %v527_v60 = vmul.f32 %v482_v13, %v3237_v47 }
  0xa6   : > { %v694_v41 = vor.u32 %v693_v11, %v690_v9  ;;  %v681_v32 = vrot.slane %v680_v46, 4  ;;  %v708_v55 = vor.u32 %v707_v17, %v704_v15  ;;  %v991_v0 = vrot.slane %v3213_v18, 5 }
  0xa7   : > { %v685_v54 = vrot.slane %v683_v20, 5  ;;  %v671_v26 = vrot.slane %v669_v21, 5  ;;  %v3354_v36 = vpack.c.bf16 %v529_v10, %v529_v10  ;;  %v3356_v35 = vpack.c.bf16 %v527_v60, %v527_v60  ;;  %2647 = vmatpush3.bf16.msra.mxu0 %v2862_v5  ;;  %v2869_v21 = vld [vmem:[%s3781_s4 + $0x178] sm:$0xff]  }
  0xa8   : > { %2679 = vmatpush3.bf16.msra.mxu1 %v2863_v58  ;;  %v502_v43 = vpop.permute.xlu1 %501  ;;  %v497_v45 = vpop.permute.xlu0 %496  ;;  %v987_v27 = vrot.slane %v3215_v19, 5  ;;  %2648 = vmatprep.subr.bf16.mxu0 %v2864_v30  ;;  %v695_v19 = vrot.slane %v694_v41, 4  ;;  %v709_v17 = vrot.slane %v708_v55, 4  ;;  %v2254_v20 = vrot.slane %v3199_v4, 9  ;;  %v2868_v4 = vld [vmem:[%s3781_s4 + $0x98] sm:$0xff]  }
  0xa9   : > { %v3358_v47 = vmul.f32 %v497_v45, %v390_v14  ;;  %2680 = vmatprep.subr.bf16.mxu1 %v2865_v28  ;;  %v3362_v29 = vsel %vm3254_vm2, %v667_v31, %v671_v26  ;;  %v711_v63 = vshll.u32 %v3354_v36, 16  ;;  %v697_v58 = vshll.u32 %v3356_v35, 16 }
  0xaa   : > { %v531_v44 = vmul.f32 %v502_v43, %v3119_v49  ;;  %v3377_v9 = vsel %vm3254_vm2, %v681_v32, %v685_v54  ;;  %v2253_v14 = vrot.slane %v3169_v38, 9  ;;  %v2480_v43 = vpack.c.bf16 %v3250_v62, %v3186_v59  ;;  %v2870_v62 = vld [vmem:[%s3781_s4 + $0x90] sm:$0xff]   ;;  %v2885_v49 = vld [vmem:[%s3781_s4 + $0x1f8] sm:$0xff]  }
  0xab   : > { %v713_v11 = vrot.slane %v711_v63, 5  ;;  %v699_v12 = vrot.slane %v697_v58, 5  ;;  %v3381_v18 = vcombine.low %v3362_v29, %v3377_v9  ;;  %v2483_v15 = vpack.c.bf16 %v3358_v47, %v3358_v47  ;;  %2649 = vmatpush3.bf16.msra.mxu0 %v2864_v30 }
  0xac   : > { %2681 = vmatpush3.bf16.msra.mxu1 %v2865_v28  ;;  %v512_v13 = vpop.permute.xlu1 %511  ;;  %v507_v5 = vpop.permute.xlu0 %506  ;;  %v2484_v60 = vpack.c.bf16 %v531_v44, %v531_v44  ;;  %2650 = vmatprep.subr.bf16.mxu0 %v2866_v50  ;;  %v2481_v59 = vpack.c.bf16 %v3289_v23, %v3247_v61  ;;  %v995_v44 = vrot.slane %v3244_v57, 5  ;;  %v2873_v61 = vld [vmem:[%s3781_s4 + $0x168] sm:$0xff]   ;;  %v2255_v23 = vrot.slane %v3167_v37, 9 }
  0xad   : > { %2682 = vmatprep.subr.bf16.mxu1 %v2867_v42  ;;  %v533_v28 = vmul.f32 %v512_v13, %v3127_v52  ;;  %v3398_v10 = vmul.f32 %v507_v5, %v3123_v51  ;;  %2616 = vmatprep.mubr.bf16.mxu0 %v3381_v18  ;;  %v3403_v38 = vsel %vm3254_vm2, %v695_v19, %v699_v12  ;;  %v1323_v45 = vshrl.u32 %v2483_v15, 16 }
  0xae   : > { %v3410_v46 = vsel %vm3254_vm2, %v709_v17, %v713_v11  ;;  %v988_v51 = vsel %vm3385_vm5, %v2253_v14, %v987_v27  ;;  %v3416_v52 = vsel %vm3385_vm5, %v2254_v20, %v991_v0  ;;  %v1326_v41 = vshll.u32 %v2483_v15, 16  ;;  %v2872_v20 = vld [vmem:[%s3781_s4 + $0x88] sm:$0xff]  }
  0xaf   : > { %v2487_v54 = vpack.c.bf16 %v533_v28, %v533_v28  ;;  %v2485_v26 = vpack.c.bf16 %v3398_v10, %v3358_v47  ;;  %v2486_v30 = vpack.c.bf16 %v3398_v10, %v3398_v10  ;;  %v3424_v31 = vcombine.low %v3403_v38, %v3410_v46  ;;  %2651 = vmatpush3.bf16.msra.mxu0 %v2866_v50 }
  0xb0   : > { %2683 = vmatpush3.bf16.msra.mxu1 %v2867_v42  ;;  %v2277_v58 = vcombine.low %v988_v51, %v3416_v52  ;;  %v2871_v42 = vld [vmem:[%s3781_s4 + $0x170] sm:$0xff]   ;;  %v1485_v0 = vrot.slane %v2484_v60, 5  ;;  %2652 = vmatprep.subr.bf16.mxu0 %v2868_v4  ;;  %v1325_v12 = vrot.slane %v1323_v45, 4  ;;  %v1328_v13 = vrot.slane %v1326_v41, 5  ;;  %v2874_v45 = vld [vmem:[%s3781_s4 + $0x80] sm:$0xff]  }
  0xb1   : > { %2716 = vmatprep.subr.bf16.mxu1 %v2869_v21  ;;  %v1936_v32 = vrot.slane %v2487_v54, 5  ;;  %v1780_v55 = vshrl.u32 %v2486_v30, 16  ;;  %v1783_v63 = vshll.u32 %v2486_v30, 16  ;;  %v2428_v27 = vrot.slane %v2486_v30, 9  ;;  %2617 = vmatmul.mubr.bf16.gmra.mxu0 %v3424_v31 }
  0xb2   : > { %2660 = vmatprep.mubr.bf16.mxu0 %v2277_v58  ;;  %v1789_v5 = vshll.u32 %v2487_v54, 16  ;;  %v2347_v19 = vrot.slane %v2483_v15, 9  ;;  %v1332_v17 = vshll.u32 %v2484_v60, 16  ;;  %v2482_v60 = vpack.c.bf16 %v3358_v47, %v3287_v22  ;;  %v2875_v54 = vld [vmem:[%s3781_s4 + $0x160] sm:$0xff]  }
  0xb3   : > { %v1782_v50 = vrot.slane %v1780_v55, 4  ;;  %v1785_v11 = vrot.slane %v1783_v63, 5  ;;  %2685 = vmatmul.mubr.bf16.vlgmr.msra.gmra.mxu1 %v2480_v43  ;;  %2653 = vmatpush3.bf16.msra.mxu0 %v2868_v4  ;;  %v3445_v57 = vsel %vm3385_vm5, %v2428_v27, %v1936_v32  ;;  %v1329_v4 = vor.u32 %v1328_v13, %v1325_v12  ;;  %v2881_v13 = vld [vmem:[%s3781_s4 + $0x148] sm:$0xff]  }
  0xb4   : > { %2688 = vmatprep.mubr.bf16.mxu1 %v2481_v59  ;;  %2717 = vmatpush3.bf16.msra.mxu1 %v2869_v21  ;;  %v3452_v15 = vsel %vm3385_vm5, %v2347_v19, %v1485_v0  ;;  %v996_v21 = vsel %vm3385_vm5, %v2255_v23, %v995_v44  ;;  %v1791_v28 = vrot.slane %v1789_v5, 5  ;;  %v1334_v30 = vrot.slane %v1332_v17, 5  ;;  %v2883_v19 = vld [vmem:[%s3781_s4 + $0x140] sm:$0xff]   ;;  %v2886_v17 = vld [vmem:[%s3781_s4 + $0x110] sm:$0xff]  }
  0xb5   : > { %v1786_v14 = vor.u32 %v1785_v11, %v1782_v50  ;;  %2718 = vmatprep.subr.bf16.mxu1 %v2871_v42  ;;  %2654 = vmatprep.subr.bf16.mxu0 %v2870_v62  ;;  %v2445_v37 = vcombine.low %v3452_v15, %v3445_v57  ;;  %v2364_v43 = vcombine.low %v3416_v52, %v996_v21  ;;  %v1330_v41 = vrot.slane %v1329_v4, 4  ;;  %v2891_v4 = vld [vmem:[%s3781_s4 + $0x1e0] sm:$0xff]  }
  0xb6   : > { %v999_v55 = vrot.slane %v3242_v56, 5  ;;  %v1007_v22 = vrot.slane %v3327_v1, 5  ;;  %v1003_v63 = vrot.slane %v3329_v2, 5  ;;  %v2256_v58 = vrot.slane %v3195_v3, 9  ;;  %v2876_v1 = vld [vmem:[%s3781_s4 + $0x138] sm:$0xff]  }
  0xb7   : > { %v1787_v51 = vrot.slane %v1786_v14, 4  ;;  %2655 = vmatpush3.bf16.msra.mxu0 %v2870_v62  ;;  %v3474_v52 = vsel %vm3254_vm2, %v1330_v41, %v1334_v30  ;;  %v2257_v40 = vrot.slane %v3269_v7, 9  ;;  %v2258_v2 = vrot.slane %v3265_v6, 9  ;;  %v2878_v7 = vld [vmem:[%s3781_s4 + $0x130] sm:$0xff]   ;;  %v2899_v41 = vld [vmem:[%s3781_s4 + $0x1c0] sm:$0xff]  }
  0xb8   : > { %2719 = vmatpush3.bf16.msra.mxu1 %v2871_v42  ;;  %2656 = vmatprep.subr.bf16.mxu0 %v2872_v20  ;;  %v2877_v42 = vld [vmem:[%s3781_s4 + $0x158] sm:$0xff]   ;;  %v1000_v3 = vsel %vm3385_vm5, %v2256_v58, %v999_v55  ;;  %v2879_v6 = vld [vmem:[%s3781_s4 + $0x150] sm:$0xff]   ;;  %v1015_v62 = vrot.slane %v3354_v36, 5  ;;  %v1011_v44 = vrot.slane %v3356_v35, 5  ;;  %v2259_v11 = vrot.slane %v3308_v24, 9  ;;  %v2880_v36 = vld [vmem:[%s3781_s4 + $0x128] sm:$0xff]  }
  0xb9   : > { %2720 = vmatprep.subr.bf16.mxu1 %v2873_v61  ;;  %v1792_v32 = vsel %vm3254_vm2, %v1787_v51, %v1791_v28  ;;  %v1004_v0 = vsel %vm3385_vm5, %v2257_v40, %v1003_v63  ;;  %v1008_v27 = vsel %vm3385_vm5, %v2258_v2, %v1007_v22  ;;  %v3494_v59 = vcombine.low %v996_v21, %v1000_v3  ;;  %v2882_v24 = vld [vmem:[%s3781_s4 + $0x120] sm:$0xff]   ;;  %v2888_v21 = vld [vmem:[%s3781_s4 + $0x108] sm:$0xff]   ;;  %v2903_v55 = vld [vmem:[%s3781_s4 + $0x230] sm:$0xff]  }
  0xba   : > { %v3481_v56 = vcombine.low %v3474_v52, %v1792_v32  ;;  %v3504_v50 = vcombine.low %v1004_v0, %v1008_v27  ;;  %v2260_v12 = vrot.slane %v3304_v53, 9  ;;  %v1012_v35 = vsel %vm3385_vm5, %v2259_v11, %v1011_v44  ;;  %v2890_v51 = vld [vmem:[%s3781_s4 + $0x100] sm:$0xff]   ;;  %v2901_v32 = vld [vmem:[%s3781_s4 + $0x238] sm:$0xff]   ;;  %v2905_v22 = vld [vmem:[%s3781_s4 + $0x228] sm:$0xff]  }
  0xbb   : > { %2689 = vmatmul.mubr.bf16.gmra.mxu1 %v2482_v60  ;;  %2657 = vmatpush3.bf16.msra.mxu0 %v2872_v20  ;;  %v2335_v14 = vcombine.low %v3293_v25, %v3300_v39  ;;  %v2365_v23 = vcombine.low %v1000_v3, %v1004_v0  ;;  %v2887_v25 = vld [vmem:[%s3781_s4 + $0x1f0] sm:$0xff]   ;;  %v2366_v39 = vcombine.low %v1008_v27, %v1012_v35  ;;  %v2889_v20 = vld [vmem:[%s3781_s4 + $0x1e8] sm:$0xff]   ;;  %v2893_v60 = vld [vmem:[%s3781_s4 + $0x1d8] sm:$0xff]  }
  0xbc   : > { %2721 = vmatpush3.bf16.msra.mxu1 %v2873_v61  ;;  %2732 = vmatprep.mubr.bf16.mxu1 %v2364_v43  ;;  %v1016_v5 = vsel %vm3385_vm5, %v2260_v12, %v1015_v62  ;;  %v2884_v61 = vld [vmem:[%s3781_s4 + $0x118] sm:$0xff]   ;;  %v2336_v30 = vcombine.low %v3314_v33, %v3362_v29  ;;  %v2895_v43 = vld [vmem:[%s3781_s4 + $0x1d0] sm:$0xff]   ;;  %v2897_v33 = vld [vmem:[%s3781_s4 + $0x1c8] sm:$0xff]  }
  0xbd   : > { %2722 = vmatprep.subr.bf16.mxu1 %v2875_v54  ;;  %2658 = vmatprep.subr.bf16.mxu0 %v2874_v45  ;;  %v3520_v53 = vcombine.low %v1012_v35, %v1016_v5  ;;  %v2367_v28 = vcombine.low %v1016_v5, %v3452_v15  ;;  %v2896_v29 = vld [vmem:[%s3781_s4 + $0x1a8] sm:$0xff]   ;;  %v2909_v58 = vld [vmem:[%s3781_s4 + $0x210] sm:$0xff]  }
  0xbe   : > { %v2904_v63 = vld [vmem:[%s3781_s4 + $0x188] sm:$0xff]  }
  0xbf   : > { %2659 = vmatpush3.bf16.msra.mxu0 %v2874_v45  ;;  %v2337_v45 = vcombine.low %v3377_v9, %v3403_v38  ;;  %v2338_v9 = vcombine.low %v3410_v46, %v3474_v52  ;;  %v2898_v38 = vld [vmem:[%s3781_s4 + $0x1a0] sm:$0xff]   ;;  %v2900_v46 = vld [vmem:[%s3781_s4 + $0x198] sm:$0xff]  }
  0xc0   : > { %2723 = vmatpush3.bf16.msra.mxu1 %v2875_v54  ;;  %2692 = vmatprep.subr.bf16.mxu0 %v2876_v1  ;;  %v2892_v54 = vld [vmem:[%s3781_s4 + $0x1b8] sm:$0xff]  }
  0xc1   : > { %2724 = vmatprep.subr.bf16.mxu1 %v2877_v42  ;;  %v2908_v52 = vld [vmem:[%s3781_s4 + $0x218] sm:$0xff]  }
  0xc2   : > { %2661 = vmatmul.mubr.bf16.vlgmr.msra.gmra.mxu0 %v3494_v59 }
  0xc3   : > { %2664 = vmatprep.mubr.bf16.mxu0 %v3504_v50  ;;  %2693 = vmatpush3.bf16.msra.mxu0 %v2876_v1 }
  0xc4   : > { %2725 = vmatpush3.bf16.msra.mxu1 %v2877_v42  ;;  %2694 = vmatprep.subr.bf16.mxu0 %v2878_v7  ;;  %v2910_v42 = vld [vmem:[%s3781_s4 + $0x208] sm:$0xff]  }
  0xc5   : > { %2726 = vmatprep.subr.bf16.mxu1 %v2879_v6 }
  0xc7   : > { %2695 = vmatpush3.bf16.msra.mxu0 %v2878_v7 }
  0xc8   : > { %2727 = vmatpush3.bf16.msra.mxu1 %v2879_v6  ;;  %2696 = vmatprep.subr.bf16.mxu0 %v2880_v36 }
  0xc9   : > { %2728 = vmatprep.subr.bf16.mxu1 %v2881_v13 }
  0xca   : > { %2665 = vmatmul.mubr.bf16.gmra.mxu0 %v3520_v53 }
  0xcb   : > { %2697 = vmatpush3.bf16.msra.mxu0 %v2880_v36  ;;  %2708 = vmatprep.mubr.bf16.mxu0 %v2335_v14 }
  0xcc   : > { %2729 = vmatpush3.bf16.msra.mxu1 %v2881_v13  ;;  %2698 = vmatprep.subr.bf16.mxu0 %v2882_v24 }
  0xcd   : > { %2730 = vmatprep.subr.bf16.mxu1 %v2883_v19 }
  0xcf   : > { %2699 = vmatpush3.bf16.msra.mxu0 %v2882_v24 }
  0xd0   : > { %2731 = vmatpush3.bf16.msra.mxu1 %v2883_v19  ;;  %2700 = vmatprep.subr.bf16.mxu0 %v2884_v61 }
  0xd1   : > { %2764 = vmatprep.subr.bf16.mxu1 %v2885_v49 }
  0xd3   : > { %2733 = vmatmul.mubr.bf16.vlgmr.msra.gmra.mxu1 %v2365_v23  ;;  %2701 = vmatpush3.bf16.msra.mxu0 %v2884_v61 }
  0xd4   : > { %2736 = vmatprep.mubr.bf16.mxu1 %v2366_v39  ;;  %2765 = vmatpush3.bf16.msra.mxu1 %v2885_v49 }
  0xd5   : > { %2766 = vmatprep.subr.bf16.mxu1 %v2887_v25  ;;  %2702 = vmatprep.subr.bf16.mxu0 %v2886_v17 }
  0xd7   : > { %2703 = vmatpush3.bf16.msra.mxu0 %v2886_v17 }
  0xd8   : > { %2767 = vmatpush3.bf16.msra.mxu1 %v2887_v25  ;;  %2704 = vmatprep.subr.bf16.mxu0 %v2888_v21 }
  0xd9   : > { %2768 = vmatprep.subr.bf16.mxu1 %v2889_v20 }
  0xdb   : > { %2737 = vmatmul.mubr.bf16.gmra.mxu1 %v2367_v28  ;;  %2705 = vmatpush3.bf16.msra.mxu0 %v2888_v21 }
  0xdc   : > { %2769 = vmatpush3.bf16.msra.mxu1 %v2889_v20  ;;  %2780 = vmatprep.mubr.bf16.mxu1 %v3333_v48  ;;  %v2894_v48 = vld [vmem:[%s3781_s4 + $0x1b0] sm:$0xff]  }
  0xdd   : > { %2770 = vmatprep.subr.bf16.mxu1 %v2891_v4  ;;  %2706 = vmatprep.subr.bf16.mxu0 %v2890_v51 }
  0xdf   : > { %2707 = vmatpush3.bf16.msra.mxu0 %v2890_v51 }
  0xe0   : > { %2771 = vmatpush3.bf16.msra.mxu1 %v2891_v4  ;;  %2740 = vmatprep.subr.bf16.mxu0 %v2892_v54 }
  0xe1   : > { %2772 = vmatprep.subr.bf16.mxu1 %v2893_v60 }
  0xe2   : > { %2709 = vmatmul.mubr.bf16.vlgmr.msra.gmra.mxu0 %v2336_v30 }
  0xe3   : > { %2712 = vmatprep.mubr.bf16.mxu0 %v2337_v45  ;;  %2741 = vmatpush3.bf16.msra.mxu0 %v2892_v54 }
  0xe4   : > { %2773 = vmatpush3.bf16.msra.mxu1 %v2893_v60  ;;  %2742 = vmatprep.subr.bf16.mxu0 %v2894_v48 }
  0xe5   : > { %2774 = vmatprep.subr.bf16.mxu1 %v2895_v43 }
  0xe7   : > { %2743 = vmatpush3.bf16.msra.mxu0 %v2894_v48 }
  0xe8   : > { %2775 = vmatpush3.bf16.msra.mxu1 %v2895_v43  ;;  %2744 = vmatprep.subr.bf16.mxu0 %v2896_v29 }
  0xe9   : > { %2776 = vmatprep.subr.bf16.mxu1 %v2897_v33 }
  0xea   : > { %2713 = vmatmul.mubr.bf16.gmra.mxu0 %v2338_v9 }
  0xeb   : > { %2745 = vmatpush3.bf16.msra.mxu0 %v2896_v29  ;;  %2756 = vmatprep.mubr.bf16.mxu0 %v3204_v8  ;;  %v2902_v8 = vld [vmem:[%s3781_s4 + $0x190] sm:$0xff]  }
  0xec   : > { %2777 = vmatpush3.bf16.msra.mxu1 %v2897_v33  ;;  %2746 = vmatprep.subr.bf16.mxu0 %v2898_v38 }
  0xed   : > { %2778 = vmatprep.subr.bf16.mxu1 %v2899_v41 }
  0xef   : > { %2747 = vmatpush3.bf16.msra.mxu0 %v2898_v38 }
  0xf0   : > { %2779 = vmatpush3.bf16.msra.mxu1 %v2899_v41  ;;  %2748 = vmatprep.subr.bf16.mxu0 %v2900_v46 }
  0xf1   : > { %2812 = vmatprep.subr.bf16.mxu1 %v2901_v32 }
  0xf3   : > { %2781 = vmatmul.mubr.bf16.vlgmr.msra.gmra.mxu1 %v3381_v18  ;;  %2749 = vmatpush3.bf16.msra.mxu0 %v2900_v46  ;;  %v2907_v18 = vld [vmem:[%s3781_s4 + $0x220] sm:$0xff]  }
  0xf4   : > { %2784 = vmatprep.mubr.bf16.mxu1 %v3424_v31  ;;  %2820 = vmatpush3.bf16.msra.mxu1 %v2901_v32  ;;  %v2906_v31 = vld [vmem:[%s3781_s4 + $0x180] sm:$0xff]  }
  0xf5   : > { %2813 = vmatprep.subr.bf16.mxu1 %v2903_v55  ;;  %2750 = vmatprep.subr.bf16.mxu0 %v2902_v8 }
  0xf7   : > { %2751 = vmatpush3.bf16.msra.mxu0 %v2902_v8 }
  0xf8   : > { %2821 = vmatpush3.bf16.msra.mxu1 %v2903_v55  ;;  %2752 = vmatprep.subr.bf16.mxu0 %v2904_v63 }
  0xf9   : > { %2814 = vmatprep.subr.bf16.mxu1 %v2905_v22 }
  0xfb   : > { %2785 = vmatmul.mubr.bf16.gmra.mxu1 %v3481_v56  ;;  %2753 = vmatpush3.bf16.msra.mxu0 %v2904_v63  ;;  %v2911_v56 = vld [vmem:[%s3781_s4 + $0x200] sm:$0xff]  }
  0xfc   : > { %2822 = vmatpush3.bf16.msra.mxu1 %v2905_v22  ;;  %2808 = vmatprep.mubr.bf16.mxu1 %v3520_v53 }
  0xfd   : > { %2815 = vmatprep.subr.bf16.mxu1 %v2907_v18  ;;  %2754 = vmatprep.subr.bf16.mxu0 %v2906_v31 }
  0xff   : > { %2755 = vmatpush3.bf16.msra.mxu0 %v2906_v31 }
 0x100   : > { %2823 = vmatpush3.bf16.msra.mxu1 %v2907_v18  ;;  %2788 = vmatprep.subr.bf16.mxu0 %v2901_v32 }
 0x101   : > { %2816 = vmatprep.subr.bf16.mxu1 %v2908_v52 }
 0x102   : > { %2757 = vmatmul.mubr.bf16.vlgmr.msra.gmra.mxu0 %v3277_v16 }
 0x103   : > { %2760 = vmatprep.mubr.bf16.mxu0 %v3318_v34  ;;  %2789 = vmatpush3.bf16.msra.mxu0 %v2901_v32 }
 0x104   : > { %2824 = vmatpush3.bf16.msra.mxu1 %v2908_v52  ;;  %2790 = vmatprep.subr.bf16.mxu0 %v2903_v55 }
 0x105   : > { %2817 = vmatprep.subr.bf16.mxu1 %v2909_v58 }
 0x107   : > { %2791 = vmatpush3.bf16.msra.mxu0 %v2903_v55 }
 0x108   : > { %2825 = vmatpush3.bf16.msra.mxu1 %v2909_v58  ;;  %2792 = vmatprep.subr.bf16.mxu0 %v2905_v22 }
 0x109   : > { %2818 = vmatprep.subr.bf16.mxu1 %v2910_v42 }
 0x10a   : > { %2761 = vmatmul.mubr.bf16.gmra.mxu0 %v2485_v26 }
 0x10b   : > { %2793 = vmatpush3.bf16.msra.mxu0 %v2905_v22  ;;  %2804 = vmatprep.mubr.bf16.mxu0 %v3494_v59 }
 0x10c   : > { %2826 = vmatpush3.bf16.msra.mxu1 %v2910_v42  ;;  %2794 = vmatprep.subr.bf16.mxu0 %v2907_v18 }
 0x10d   : > { %2819 = vmatprep.subr.bf16.mxu1 %v2911_v56 }
 0x10f   : > { %2795 = vmatpush3.bf16.msra.mxu0 %v2907_v18 }
 0x110   : > { %2827 = vmatpush3.bf16.msra.mxu1 %v2911_v56  ;;  %2796 = vmatprep.subr.bf16.mxu0 %v2908_v52 }
 0x113   : > { %2809 = vmatmul.mubr.bf16.vlgmr.msra.gmra.mxu1 %v2445_v37  ;;  %2797 = vmatpush3.bf16.msra.mxu0 %v2908_v52 }
 0x114   : > { %2798 = vmatprep.subr.bf16.mxu0 %v2909_v58 }
 0x117   : > { %2799 = vmatpush3.bf16.msra.mxu0 %v2909_v58 }
 0x118   : > { %2800 = vmatprep.subr.bf16.mxu0 %v2910_v42 }
 0x11b   : > { %2801 = vmatpush3.bf16.msra.mxu0 %v2910_v42 }
 0x11c   : > { %2802 = vmatprep.subr.bf16.mxu0 %v2911_v56 }
 0x11f   : > { %2803 = vmatpush3.bf16.msra.mxu0 %v2911_v56 }
 0x122   : > { %2805 = vmatmul.mubr.bf16.vlgmr.msra.gmra.mxu0 %v3504_v50 }
 0x153   : > { %v3638_v16 = vpop.f32.mrf.mxu1 }
 0x155   : > { %v3640_v34 = vpop.f32.mrf.mxu1 }
 0x157   : > { %v3642_v47 = vpop.f32.mrf.mxu1 }
 0x159   : > { %v3644_v10 = vpop.f32.mrf.mxu1 }
 0x162   : > { %v2642_v26 = vpop.f32.mrf.mxu1  ;;  %v3646_v57 = vpop.f32.mrf.mxu0 }
 0x164   : > { %v967_v15 = vpop.f32.mrf.mxu1  ;;  %v3648_v37 = vpop.f32.mrf.mxu0 }
 0x166   : > { %v2643_v1 = vpop.f32.mrf.mxu1  ;;  %v3650_v40 = vpop.f32.mrf.mxu0 }
 0x168   : > { %v970_v2 = vpop.f32.mrf.mxu1  ;;  %v3652_v3 = vpop.f32.mrf.mxu0 }
 0x171   : > { %v2618_v27 = vpop.f32.mrf.mxu0 }
 0x172   : > { %v976_v38 = vadd.f32 %v2642_v26, %v2618_v27 }
 0x173   : > { %v3654_v0 = vpop.f32.mrf.mxu1  ;;  %v846_v7 = vpop.f32.mrf.mxu0 }
 0x174   : > { %v968_v32 = vadd.f32 %v967_v15, %v846_v7 }
 0x175   : > { %v3656_v59 = vpop.f32.mrf.mxu1  ;;  %v2619_v62 = vpop.f32.mrf.mxu0 }
 0x176   : > { %v979_v8 = vadd.f32 %v2643_v1, %v2619_v62 }
 0x177   : > { %v3658_v6 = vpop.f32.mrf.mxu1  ;;  %v849_v50 = vpop.f32.mrf.mxu0 }
 0x178   : > { %v971_v31 = vadd.f32 %v970_v2, %v849_v50 }
 0x179   : > { %v3660_v44 = vpop.f32.mrf.mxu1 }
 0x17b   : > { %v2690_v12 = vpop.f32.mrf.mxu1 }
 0x17d   : > { %v1296_v36 = vpop.f32.mrf.mxu1 }
 0x17f   : > { %v2691_v5 = vpop.f32.mrf.mxu1 }
 0x181   : > { %v1299_v24 = vpop.f32.mrf.mxu1 }
 0x182   : > { %v3662_v11 = vpop.f32.mrf.mxu0 }
 0x184   : > { %v3664_v13 = vpop.f32.mrf.mxu0 }
 0x186   : > { %v3666_v35 = vpop.f32.mrf.mxu0 }
 0x188   : > { %v3668_v53 = vpop.f32.mrf.mxu0 }
 0x18a   : > { %v2666_v14 = vpop.f32.mrf.mxu0 }
 0x18b   : > { %v1169_v46 = vadd.f32 %v2666_v14, %v976_v38 }
 0x18c   : > { %v1148_v61 = vpop.f32.mrf.mxu0 }
 0x18d   : > { %v1167_v22 = vadd.f32 %v1148_v61, %v968_v32  ;;  %v1317_v58 = vadd.f32 %v2690_v12, %v1169_v46  ;;  %v960_v46 = vadd.f32 %v3638_v16, %v3646_v57  ;;  %v3716_v16 = vld [vmem:[%s3782_s5] ss:$0 sm:$0xff] }
 0x18e   : > { %v2667_v25 = vpop.f32.mrf.mxu0 }
 0x18f   : > { %v1170_v52 = vadd.f32 %v2667_v25, %v979_v8 }
 0x190   : > { %v1151_v17 = vpop.f32.mrf.mxu0 }
 0x191   : > { %v1168_v56 = vadd.f32 %v1151_v17, %v971_v31  ;;  %v1318_v7 = vadd.f32 %v2691_v5, %v1170_v52  ;;  %v955_v31 = vadd.f32 %v3644_v10, %v3652_v3 }
 0x193   : > { %v3670_v19 = vpop.f32.mrf.mxu1  ;;  %v1316_v62 = vadd.f32 %v1299_v24, %v1168_v56  ;;  %v1164_v10 = vadd.f32 %v3668_v53, %v955_v31 }
 0x195   : > { %v3672_v49 = vpop.f32.mrf.mxu1 }
 0x197   : > { %v3674_v23 = vpop.f32.mrf.mxu1 }
 0x199   : > { %v3676_v39 = vpop.f32.mrf.mxu1 }
 0x19b   : > { %v2738_v21 = vpop.f32.mrf.mxu1 }
 0x19d   : > { %v1611_v4 = vpop.f32.mrf.mxu1 }
 0x19f   : > { %v2739_v60 = vpop.f32.mrf.mxu1 }
 0x1a1   : > { %v1614_v30 = vpop.f32.mrf.mxu1 }
 0x1a2   : > { %v3678_v20 = vpop.f32.mrf.mxu0 }
 0x1a4   : > { %v3680_v28 = vpop.f32.mrf.mxu0 }
 0x1a6   : > { %v3682_v51 = vpop.f32.mrf.mxu0 }
 0x1a8   : > { %v3684_v54 = vpop.f32.mrf.mxu0 }
 0x1aa   : > { %v2714_v43 = vpop.f32.mrf.mxu0 }
 0x1ac   : > { %v1460_v33 = vpop.f32.mrf.mxu0 }
 0x1ae   : > { %v2715_v9 = vpop.f32.mrf.mxu0 }
 0x1af   : > { %v1482_v1 = vadd.f32 %v2715_v9, %v1318_v7  ;;  %v963_v9 = vadd.f32 %v3642_v47, %v3650_v40  ;;  %v2098_v47 = vld [vmem:[%s3708_s9 + $0x20] sm:$0xff] }
 0x1b0   : > { %v1463_v55 = vpop.f32.mrf.mxu0 }
 0x1b1   : > { %v1480_v50 = vadd.f32 %v1463_v55, %v1316_v62  ;;  %v1166_v52 = vadd.f32 %v3666_v35, %v963_v9  ;;  %v2101_v35 = vld [vmem:[%s3708_s9 + $0x38] sm:$0xff] }
 0x1b3   : > { %v3686_v48 = vpop.f32.mrf.mxu1 }
 0x1b5   : > { %v3688_v45 = vpop.f32.mrf.mxu1 }
 0x1b6   : > { %3789 = vst [vmem:[#allocation2_spill] sm:$0xff] %v3688_v45  ;;  %v1481_v45 = vadd.f32 %v2714_v43, %v1317_v58  ;;  %v1633_v43 = vadd.f32 %v2739_v60, %v1482_v1 }
 0x1b7   : > { %v3690_v29 = vpop.f32.mrf.mxu1 }
 0x1b8   : > { %3790 = vst [vmem:[#allocation3_spill] sm:$0xff] %v3690_v29  ;;  %v1315_v29 = vadd.f32 %v1296_v36, %v1167_v22  ;;  %v1632_v61 = vadd.f32 %v2738_v21, %v1481_v45  ;;  %v952_v21 = vadd.f32 %v3640_v34, %v3648_v37  ;;  %v2100_v22 = vld [vmem:[%s3708_s9 + $0x30] sm:$0xff] }
 0x1b9   : > { %v3692_v41 = vpop.f32.mrf.mxu1 }
 0x1ba   : > { %v1479_v15 = vadd.f32 %v1460_v33, %v1315_v29  ;;  %v1631_v29 = vadd.f32 %v1614_v30, %v1480_v50  ;;  %v1163_v55 = vadd.f32 %v3664_v13, %v952_v21  ;;  %v2099_v50 = vld [vmem:[%s3708_s9 + $0x28] sm:$0xff] }
 0x1bb   : > { %v2786_v18 = vpop.f32.mrf.mxu1 }
 0x1bc   : > { %v1630_v25 = vadd.f32 %v1611_v4, %v1479_v15  ;;  %v1165_v4 = vadd.f32 %v3662_v11, %v960_v46 }
 0x1bd   : > { %v1911_v27 = vpop.f32.mrf.mxu1 }
 0x1be   : > { %v1313_v58 = vadd.f32 %v3654_v0, %v1165_v4  ;;  %v1311_v0 = vadd.f32 %v3656_v59, %v1163_v55  ;;  %v2095_v55 = vld [vmem:[%s3708_s9 + $0x8] sm:$0xff] }
 0x1bf   : > { %v2787_v2 = vpop.f32.mrf.mxu1 }
 0x1c0   : > { %v1477_v3 = vadd.f32 %v3678_v20, %v1313_v58 }
 0x1c1   : > { %v1914_v33 = vpop.f32.mrf.mxu1 }
 0x1c2   : > { %v3694_v63 = vpop.f32.mrf.mxu0 }
 0x1c4   : > { %v3696_v42 = vpop.f32.mrf.mxu0 }
 0x1c6   : > { %v3698_v26 = vpop.f32.mrf.mxu0 }
 0x1c8   : > { %v3700_v14 = vpop.f32.mrf.mxu0 }
 0x1ca   : > { %v2762_v38 = vpop.f32.mrf.mxu0 }
 0x1cb   : > { %v1774_v12 = vadd.f32 %v2762_v38, %v1632_v61  ;;  %v1475_v38 = vadd.f32 %v3680_v28, %v1311_v0 }
 0x1cc   : > { %v1753_v32 = vpop.f32.mrf.mxu0 }
 0x1cd   : > { %v1772_v17 = vadd.f32 %v1753_v32, %v1630_v25  ;;  %v1932_v24 = vadd.f32 %v2786_v18, %v1774_v12  ;;  %v1312_v12 = vadd.f32 %v3660_v44, %v1164_v10  ;;  %v1628_v25 = vadd.f32 %v3670_v19, %v1477_v3 }
 0x1ce   : > { %v2763_v36 = vpop.f32.mrf.mxu0 }
 0x1cf   : > { %v1775_v5 = vadd.f32 %v2763_v36, %v1633_v43  ;;  %v1930_v45 = vadd.f32 %v1911_v27, %v1772_v17  ;;  %v1476_v17 = vadd.f32 %v3684_v54, %v1312_v12  ;;  %v1770_v28 = vadd.f32 %v3694_v63, %v1628_v25 }
 0x1d0   : > { %v1756_v8 = vpop.f32.mrf.mxu0 }
 0x1d1   : > { %v1773_v57 = vadd.f32 %v1756_v8, %v1631_v29  ;;  %v1933_v11 = vadd.f32 %v2787_v2, %v1775_v5  ;;  %v1314_v2 = vadd.f32 %v3658_v6, %v1166_v52  ;;  %v1626_v6 = vadd.f32 %v3672_v49, %v1475_v38  ;;  %v2096_v5 = vld [vmem:[%s3708_s9 + $0x10] sm:$0xff] }
 0x1d2   : > { %v1627_v44 = vadd.f32 %v3676_v39, %v1476_v17  ;;  %v1928_v19 = vadd.f32 %v3686_v48, %v1770_v28  ;;  %v2094_v39 = vld [vmem:[%s3708_s9] sm:$0xff] }
 0x1d3   : > { %v2810_v60 = vpop.f32.mrf.mxu1  ;;  %v1931_v15 = vadd.f32 %v1914_v33, %v1773_v57  ;;  %v1478_v59 = vadd.f32 %v3682_v51, %v1314_v2  ;;  %v1768_v43 = vadd.f32 %v3696_v42, %v1626_v6  ;;  %v3791_v33 = vld [vmem:[#allocation2_spill] sm:$0xff] }
 0x1d4   : > { %v2077_v30 = vadd.f32 %v2810_v60, %v1932_v24  ;;  %v1769_v54 = vadd.f32 %v3700_v14, %v1627_v44  ;;  %v2097_v60 = vld [vmem:[%s3708_s9 + $0x18] sm:$0xff] }
 0x1d5   : > { %v2056_v18 = vpop.f32.mrf.mxu1  ;;  %v1629_v36 = vadd.f32 %v3674_v23, %v1478_v59  ;;  %v1926_v49 = vadd.f32 %v3791_v33, %v1768_v43 }
 0x1d6   : > { %v2092_v34 = vadd.f32 %v3716_v16, %v2077_v30  ;;  %v2075_v37 = vadd.f32 %v2056_v18, %v1930_v45  ;;  %v1927_v4 = vadd.f32 %v3692_v41, %v1769_v54 }
 0x1d7   : > { %v2811_v40 = vpop.f32.mrf.mxu1  ;;  %v1771_v51 = vadd.f32 %v3698_v26, %v1629_v36  ;;  %v3792_v26 = vld [vmem:[#allocation3_spill] sm:$0xff] }
 0x1d8   : > { %v2108_v13 = vadd.f32 %v2100_v22, %v2092_v34  ;;  %v2090_v56 = vadd.f32 %v3716_v16, %v2075_v37  ;;  %v2078_v27 = vadd.f32 %v2811_v40, %v1933_v11 }
 0x1d9   : > { %v2059_v7 = vpop.f32.mrf.mxu1  ;;  %v1929_v8 = vadd.f32 %v3792_v26, %v1771_v51 }
 0x1da   : > { %2116 = vst [vmem:[%s3730_s13 + $0x30] sm:$0xff] %v2108_v13  ;;  %v2106_v1 = vadd.f32 %v2098_v47, %v2090_v56  ;;  %v2093_v62 = vadd.f32 %v3716_v16, %v2078_v27  ;;  %v2076_v61 = vadd.f32 %v2059_v7, %v1931_v15 }
 0x1dc   : > { %2114 = vst [vmem:[%s3730_s13 + $0x20] sm:$0xff] %v2106_v1  ;;  %v2109_v53 = vadd.f32 %v2101_v35, %v2093_v62  ;;  %v2091_v20 = vadd.f32 %v3716_v16, %v2076_v61 }
 0x1de   : > { %2117 = vst [vmem:[%s3730_s13 + $0x38] sm:$0xff] %v2109_v53  ;;  %v2107_v32 = vadd.f32 %v2099_v50, %v2091_v20 }
 0x1e0   : > { %2115 = vst [vmem:[%s3730_s13 + $0x28] sm:$0xff] %v2107_v32 }
 0x1e2   : > { %v2806_v46 = vpop.f32.mrf.mxu0 }
 0x1e3   : > { %v2073_v63 = vadd.f32 %v2806_v46, %v1928_v19 }
 0x1e4   : > { %v2040_v29 = vpop.f32.mrf.mxu0 }
 0x1e5   : > { %v2088_v42 = vadd.f32 %v3716_v16, %v2073_v63  ;;  %v2071_v23 = vadd.f32 %v2040_v29, %v1926_v49 }
 0x1e6   : > { %v2807_v48 = vpop.f32.mrf.mxu0 }
 0x1e7   : > { %v2104_v24 = vadd.f32 %v2096_v5, %v2088_v42  ;;  %v2086_v14 = vadd.f32 %v3716_v16, %v2071_v23  ;;  %v2074_v21 = vadd.f32 %v2807_v48, %v1929_v8 }
 0x1e8   : > { %v2043_v57 = vpop.f32.mrf.mxu0 }
 0x1e9   : > { %2112 = vst [vmem:[%s3730_s13 + $0x10] sm:$0xff] %v2104_v24  ;;  %v2102_v30 = vadd.f32 %v2094_v39, %v2086_v14  ;;  %v2089_v45 = vadd.f32 %v3716_v16, %v2074_v21  ;;  %v2072_v9 = vadd.f32 %v2043_v57, %v1927_v4 }
 0x1eb   : > { %2110 = vst [vmem:[%s3730_s13] sm:$0xff] %v2102_v30  ;;  %v2105_v22 = vadd.f32 %v2097_v60, %v2089_v45  ;;  %v2087_v18 = vadd.f32 %v3716_v16, %v2072_v9 }
 0x1ed   : > { %2113 = vst [vmem:[%s3730_s13 + $0x18] sm:$0xff] %v2105_v22  ;;  %v2103_v34 = vadd.f32 %v2095_v55, %v2087_v18 }
 0x1ef   : > { %2111 = vst [vmem:[%s3730_s13 + $0x8] sm:$0xff] %v2103_v34 }
 0x1f0 PF: > { %s17_s24 = sadd.s32 1, %s2918_s24  }
 0x1f1   : > { %p14_p4 = scmp.ge.s32.totalorder %s17_s24, 4  }
 0x1f3   :  { %16 = sbr.rel (!%p14_p4) target bundleno = 1 (0x1), region = 89 }

</bundles_post_ra>
